<compile_context>
chip_gen: v5e
topology: v5e:2x2
jax: 0.10.0
libtpu: 0.0.40
codegen_flags: <defaults>
</compile_context>

<pallas_src>
import functools

import jax
import jax.numpy as jnp
from jax.experimental import pallas as pl
from jax.experimental.pallas import tpu as pltpu


def _layer_norm(v, gamma, beta, eps=1e-5):
    v = v.astype(jnp.float32)
    mu = jnp.mean(v, axis=-1, keepdims=True)
    var = jnp.mean((v - mu) ** 2, axis=-1, keepdims=True)
    return (v - mu) * jax.lax.rsqrt(var + eps) * gamma + beta


def _attn_kernel(x_ref, lat_ref, mx_ref, ml_ref,
                 gm_ref, bm_ref, gl_ref, bl_ref,
                 wkvq_ref, wo_ref, out_ref, *, heads, dim_head, approx_recip):
    bt, n1, D = x_ref.shape
    _, n2, _ = lat_ref.shape
    inner = heads * dim_head
    cdt = wkvq_ref.dtype                      # matmul operand dtype (f32 / bf16)

    # ---- LayerNorms (f32), flattened over (bt*n) rows ---------------------
    xn = _layer_norm(x_ref[...].reshape(bt * n1, D), gm_ref[...], bm_ref[...])
    ln = _layer_norm(lat_ref[...].reshape(bt * n2, D), gl_ref[...], bl_ref[...])

    # ---- Projections -------------------------------------------------------
    # Latent path: ONE fused dot over [wkv | wq*scale]  (D, 3*inner).
    w_all = wkvq_ref[...]
    qkv_l = jnp.dot(ln.astype(cdt), w_all,
                    preferred_element_type=jnp.float32)           # (bt*n2, 3*inner)
    # x path reuses the kv columns of the same fused weight.
    kv_x = jnp.dot(xn.astype(cdt), w_all[:, :2 * inner],
                   preferred_element_type=jnp.float32)            # (bt*n1, 2*inner)

    def split_heads(t, n, groups):
        # (bt*n, groups*inner) -> (groups*heads, bt, n, dim_head); heads OUTERMOST
        # so subsequent leading-dim slices / merges are free.  One relayout per
        # projection result (instead of one per q/k/v tensor).
        t4 = t.astype(cdt).reshape(bt, n, groups * heads, dim_head)
        return jnp.transpose(t4, (2, 0, 1, 3))

    lat_h = split_heads(qkv_l, n2, 3)         # (3h, bt, n2, dh): [k | v | q]
    x_h = split_heads(kv_x, n1, 2)            # (2h, bt, n1, dh): [k | v]
    kl, vl, qh = lat_h[:heads], lat_h[heads:2 * heads], lat_h[2 * heads:]
    kx, vx = x_h[:heads], x_h[heads:]

    hb = heads * bt

    def qk(q, k, n_k):                        # single-batch-dim 3-D MXU matmul
        s = jnp.einsum('bqd,bkd->bqk',
                       q.reshape(hb, n2, dim_head),
                       k.reshape(hb, n_k, dim_head),
                       preferred_element_type=jnp.float32)
        return s.reshape(heads, bt, n2, n_k)

    sim_x = qk(qh, kx, n1)
    sim_l = qk(qh, kl, n2)

    # torch parity: amax over the full (unmasked) row, subtracted before masking.
    m_all = jnp.maximum(jnp.max(sim_x, axis=-1, keepdims=True),
                        jnp.max(sim_l, axis=-1, keepdims=True))   # (h, bt, n2, 1)

    mx = mx_ref[...][None]                    # (1, bt, 1, n1)
    ml = ml_ref[...][None]                    # (1, bt, 1, n2)
    # exp(sim - amax) * mask == exp(masked_fill(sim - amax, -1e4)): arguments are
    # <= 0 and masked exps underflow to exactly 0 in f32, but the compare+select
    # is replaced by a single multiply (VALU saving).
    # NOTE: a fully-masked row makes denom == 0 (NaN out); callers must keep at
    # least one attendable key per row (same caveat as the torch module).
    p_x = jnp.exp(sim_x - m_all) * mx
    p_l = jnp.exp(sim_l - m_all) * ml

    denom = (jnp.sum(p_x, axis=-1, keepdims=True)
             + jnp.sum(p_l, axis=-1, keepdims=True))              # (h, bt, n2, 1)
    inv = (pl.reciprocal(denom, approx=True) if approx_recip      # EUP slot, ~free
           else 1.0 / denom)                                      # exact f32 parity

    def pv(p, v, n_k):
        return jnp.einsum('bqk,bkd->bqd',
                          p.reshape(hb, n2, n_k).astype(cdt),     # cast p once
                          v.reshape(hb, n_k, dim_head),
                          preferred_element_type=jnp.float32)

    o = pv(p_x, vx, n1) + pv(p_l, vl, n2)                         # (h*bt, n2, dh) f32
    o = o.reshape(heads, bt, n2, dim_head) * inv                  # normalize (f32)

    # ---- Output projection without re-merging heads into lanes ------------
    # wo pre-reshaped host-side to (heads, dim_head, D): head-batched
    # (bt*n2, dh) @ (dh, D), then a cheap VPU sum over heads replaces the
    # previous transpose + materialized copy + (inner, D) dot.
    o3 = o.reshape(heads, bt * n2, dim_head).astype(cdt)
    out = jnp.einsum('hrd,hdo->hro', o3, wo_ref[...],
                     preferred_element_type=jnp.float32)          # (h, bt*n2, D)
    out = jnp.sum(out, axis=0)                                    # (bt*n2, D)
    out_ref[...] = out.astype(out_ref.dtype)


def prepare_params(params, *, heads, dim_head, matmul_dtype=jnp.bfloat16):
    """One-time weight transform: fold the q scale into wq, fuse [wkv | wq*scale]
    into one (D, 3*inner) matrix, reshape wo to (heads, dim_head, D), cast for MXU."""
    scale = dim_head ** (-0.5)
    D = params["wq_t"].shape[0]
    wkvq = jnp.concatenate([params["wkv_t"], params["wq_t"] * scale], axis=1)
    return {
        "gm": params["gm"].astype(jnp.float32),
        "bm": params["bm"].astype(jnp.float32),
        "gl": params["gl"].astype(jnp.float32),
        "bl": params["bl"].astype(jnp.float32),
        "wkvq_t": wkvq.astype(matmul_dtype),                       # (D, 3*inner)
        "wo_hd": params["wo_t"].reshape(heads, dim_head, D).astype(matmul_dtype),
    }


def _pick_block_b(b, n2, block_b):
    if block_b is None:
        # Feed the MXU >= 128 flattened latent rows per step if possible ...
        block_b = min(b, max(1, pl.cdiv(128, max(n2, 1))))
        # ... but keep >= 2 grid steps so v7x megacore can shard the batch axis.
        if b >= 2:
            block_b = min(block_b, b // 2)
    block_b = max(1, min(block_b, b))
    # block_b must divide b and keep the flat output block sublane-aligned.
    while block_b > 1 and (b % block_b or (block_b * n2) % 8):
        block_b -= 1
    if b % block_b or ((block_b * n2) % 8 and block_b != b):
        block_b = b           # full-batch block is always legal (full array dims)
    return block_b


def _vmem_limit(block_b, n1, n2, D, heads, dim_head, w_itemsize, out_itemsize):
    """Approximate footprint (double-buffered I/O blocks + weights + f32
    intermediates) with 2x headroom, clamped to [32, 40] MiB (v7x-safe)."""
    inner = heads * dim_head
    f4 = 4
    io = 2 * (f4 * block_b * (n1 * D + n2 * D + n1 + n2)
              + out_itemsize * block_b * n2 * D)
    w = 2 * (w_itemsize * (D * 3 * inner + inner * D) + f4 * 4 * D)
    inter = f4 * block_b * ((n1 + n2) * D + n2 * 3 * inner + n1 * 2 * inner
                            + 3 * heads * n2 * (n1 + n2)
                            + 2 * heads * n2 * dim_head + heads * n2 * D)
    return int(min(40 << 20, max(32 << 20, 2 * (io + w + inter))))


def sequence_compressor_attention(x, latents, mask, prep, *, heads, dim_head,
                                  block_b=None, out_dtype=jnp.float32,
                                  vmem_limit_bytes=None):
    b, n1, D = x.shape
    _, n2, _ = latents.shape
    inner = heads * dim_head
    L = n1 + n2
    assert mask.shape == (b, L)

    block_b = _pick_block_b(b, n2, block_b)
    grid = (b // block_b,)

    if vmem_limit_bytes is None:   # override upward on v6e (128 MiB VMEM) if desired
        vmem_limit_bytes = _vmem_limit(block_b, n1, n2, D, heads, dim_head,
                                       jnp.dtype(prep["wkvq_t"].dtype).itemsize,
                                       jnp.dtype(out_dtype).itemsize)

    # Split the mask once on the host (matches the separate x / latent kv paths).
    mask_x = mask[:, :n1].astype(jnp.float32).reshape(b, 1, n1)
    mask_l = mask[:, n1:].astype(jnp.float32).reshape(b, 1, n2)

    approx = jnp.dtype(prep["wkvq_t"].dtype) != jnp.dtype(jnp.float32)
    kernel = functools.partial(_attn_kernel, heads=heads, dim_head=dim_head,
                               approx_recip=bool(approx))

    out_flat = pl.pallas_call(
        kernel,
        out_shape=jax.ShapeDtypeStruct((b * n2, D), out_dtype),
        grid=grid,
        in_specs=[
            pl.BlockSpec((block_b, n1, D), lambda i: (i, 0, 0)),   # x
            pl.BlockSpec((block_b, n2, D), lambda i: (i, 0, 0)),   # latents
            pl.BlockSpec((block_b, 1, n1), lambda i: (i, 0, 0)),   # mask over x keys
            pl.BlockSpec((block_b, 1, n2), lambda i: (i, 0, 0)),   # mask over latent keys
            pl.BlockSpec((1, D), lambda i: (0, 0)),                # norm_media gamma
            pl.BlockSpec((1, D), lambda i: (0, 0)),                # norm_media beta
            pl.BlockSpec((1, D), lambda i: (0, 0)),                # norm_latents gamma
            pl.BlockSpec((1, D), lambda i: (0, 0)),                # norm_latents beta
            pl.BlockSpec((D, 3 * inner), lambda i: (0, 0)),        # fused [wkv | wq*scale]
            pl.BlockSpec((heads, dim_head, D), lambda i: (0, 0, 0)),  # wo as (h, dh, D)
        ],
        out_specs=pl.BlockSpec((block_b * n2, D), lambda i: (i, 0)),
        compiler_params=pltpu.CompilerParams(
            dimension_semantics=("parallel",),       # shards across v7x's 2 TCs
            vmem_limit_bytes=vmem_limit_bytes,
        ),
    )(x, latents, mask_x, mask_l,
      prep["gm"], prep["bm"], prep["gl"], prep["bl"],
      prep["wkvq_t"], prep["wo_hd"])
    return out_flat.reshape(b, n2, D)


def reference(x, latents, mask, params, *, heads, dim_head):
    """Pure-JAX mirror of the PyTorch forward (f32), for correctness checking."""
    scale = dim_head ** (-0.5)
    inner = heads * dim_head
    b, n1, _ = x.shape
    n2 = latents.shape[1]

    xn = _layer_norm(x, params["gm"][0], params["bm"][0])
    latn = _layer_norm(latents, params["gl"][0], params["bl"][0])
    q = latn @ params["wq_t"]
    kv_in = jnp.concatenate([xn, latn], axis=1)
    kv = kv_in @ params["wkv_t"]
    k, v = kv[..., :inner], kv[..., inner:]

    def split(t):
        return t.reshape(t.shape[0], t.shape[1], heads, dim_head).transpose(0, 2, 1, 3)

    qh = split(q) * scale
    kh = split(k)
    vh = split(v)
    sim = jnp.einsum("bhqd,bhkd->bhqk", qh, kh)
    sim = sim - jnp.max(sim, axis=-1, keepdims=True)
    m = mask[:, None, None, :]
    sim = jnp.where(m == 0.0, -10000.0, sim)
    attn = jax.nn.softmax(sim, axis=-1)
    out = jnp.einsum("bhqk,bhkd->bhqd", attn, vh)
    out = out.transpose(0, 2, 1, 3).reshape(b, n2, inner)
    return out @ params["wo_t"]


if __name__ == "__main__":
    # Small shapes: b=4, n1=16 media tokens, n2=8 latent tokens, dim=32,
    # heads=4, dim_head=16 (inner_dim=64).  block_b=2 -> grid length 2.
    b, n1, n2, D = 4, 16, 8, 32
    heads, dim_head = 4, 16
    inner = heads * dim_head
    L = n1 + n2

    key = jax.random.PRNGKey(0)
    keys = jax.random.split(key, 6)
    x = jax.random.normal(keys[0], (b, n1, D), jnp.float32)
    latents = jax.random.normal(keys[1], (b, n2, D), jnp.float32)
    mask = (jax.random.uniform(keys[2], (b, L)) > 0.2).astype(jnp.float32)
    mask = mask.at[:, 0].set(1.0)   # at least one attendable key per row

    params = {
        "gm": jnp.ones((1, D), jnp.float32),
        "bm": jnp.zeros((1, D), jnp.float32),
        "gl": jnp.ones((1, D), jnp.float32),
        "bl": jnp.zeros((1, D), jnp.float32),
        "wq_t": 0.1 * jax.random.normal(keys[3], (D, inner), jnp.float32),
        "wkv_t": 0.1 * jax.random.normal(keys[4], (D, 2 * inner), jnp.float32),
        "wo_t": 0.1 * jax.random.normal(keys[5], (inner, D), jnp.float32),
    }

    ref = reference(x, latents, mask, params, heads=heads, dim_head=dim_head)

    # f32-matmul path: tight check (exact reciprocal) against the torch-mirroring reference.
    prep_f32 = prepare_params(params, heads=heads, dim_head=dim_head,
                              matmul_dtype=jnp.float32)
    out_f32 = jax.block_until_ready(
        sequence_compressor_attention(x, latents, mask, prep_f32,
                                      heads=heads, dim_head=dim_head, block_b=2))
    assert out_f32.shape == (b, n2, D)
    assert jnp.allclose(out_f32, ref, atol=1e-3, rtol=1e-2), \
        "f32 Pallas kernel mismatch vs reference"

    # bf16-MXU path (perf default): looser tolerance (bf16 operand rounding).
    prep_bf16 = prepare_params(params, heads=heads, dim_head=dim_head,
                               matmul_dtype=jnp.bfloat16)
    out_bf16 = jax.block_until_ready(
        sequence_compressor_attention(x, latents, mask, prep_bf16,
                                      heads=heads, dim_head=dim_head, block_b=2))
    assert out_bf16.shape == (b, n2, D)
    assert jnp.allclose(out_bf16, ref, atol=5e-3, rtol=5e-2), \
        "bf16 Pallas kernel mismatch vs reference"

    print("KERNEL_OK")
</pallas_src>

<mosaic_0001>
module attributes {stable_mosaic.version = 11 : i64} {
  func.func @_attn_kernel(%arg0: i32, %arg1: memref<2x16x32xf32, #tpu.memory_space<vmem>>, %arg2: memref<2x8x32xf32, #tpu.memory_space<vmem>>, %arg3: memref<2x1x16xf32, #tpu.memory_space<vmem>>, %arg4: memref<2x1x8xf32, #tpu.memory_space<vmem>>, %arg5: memref<1x32xf32, #tpu.memory_space<vmem>>, %arg6: memref<1x32xf32, #tpu.memory_space<vmem>>, %arg7: memref<1x32xf32, #tpu.memory_space<vmem>>, %arg8: memref<1x32xf32, #tpu.memory_space<vmem>>, %arg9: memref<32x192xf32, #tpu.memory_space<vmem>>, %arg10: memref<4x16x32xf32, #tpu.memory_space<vmem>>, %arg11: memref<16x32xf32, #tpu.memory_space<vmem>>) attributes {dimension_semantics = [#tpu.dimension_semantics<parallel>], iteration_bounds = array<i64: 2>, scalar_prefetch = 0 : i64, scratch_operands = 0 : i64, tpu.core_type = #tpu.core_type<tc>, window_params = [{transform_indices = @transform_0, window_bounds = array<i64: 2, 16, 32>}, {transform_indices = @transform_1, window_bounds = array<i64: 2, 8, 32>}, {transform_indices = @transform_2, window_bounds = array<i64: 2, 1, 16>}, {transform_indices = @transform_3, window_bounds = array<i64: 2, 1, 8>}, {pipeline_mode = #tpu.pipeline_mode<synchronous>, transform_indices = @transform_4, window_bounds = array<i64: 1, 32>}, {pipeline_mode = #tpu.pipeline_mode<synchronous>, transform_indices = @transform_5, window_bounds = array<i64: 1, 32>}, {pipeline_mode = #tpu.pipeline_mode<synchronous>, transform_indices = @transform_6, window_bounds = array<i64: 1, 32>}, {pipeline_mode = #tpu.pipeline_mode<synchronous>, transform_indices = @transform_7, window_bounds = array<i64: 1, 32>}, {pipeline_mode = #tpu.pipeline_mode<synchronous>, transform_indices = @transform_8, window_bounds = array<i64: 32, 192>}, {pipeline_mode = #tpu.pipeline_mode<synchronous>, transform_indices = @transform_9, window_bounds = array<i64: 4, 16, 32>}, {transform_indices = @transform_10, window_bounds = array<i64: 16, 32>}]} {
    %c0 = arith.constant 0 : index
    %c0_0 = arith.constant 0 : index
    %c0_1 = arith.constant 0 : index
    %0 = vector.load %arg1[%c0, %c0_0, %c0_1] : memref<2x16x32xf32, #tpu.memory_space<vmem>>, vector<2x16x32xf32>
    %1 = vector.shape_cast %0 : vector<2x16x32xf32> to vector<32x32xf32>
    %c0_2 = arith.constant 0 : index
    %c0_3 = arith.constant 0 : index
    %2 = vector.load %arg5[%c0_2, %c0_3] : memref<1x32xf32, #tpu.memory_space<vmem>>, vector<1x32xf32>
    %c0_4 = arith.constant 0 : index
    %c0_5 = arith.constant 0 : index
    %3 = vector.load %arg6[%c0_4, %c0_5] : memref<1x32xf32, #tpu.memory_space<vmem>>, vector<1x32xf32>
    %cst = arith.constant dense<0.000000e+00> : vector<32xf32>
    %4 = vector.multi_reduction <add>, %1, %cst [1] : vector<32x32xf32> to vector<32xf32>
    %5 = vector.shape_cast %4 : vector<32xf32> to vector<32x1xf32>
    %cst_6 = arith.constant 3.200000e+01 : f32
    %6 = vector.broadcast %cst_6 : f32 to vector<32x1xf32>
    %7 = arith.divf %5, %6 : vector<32x1xf32>
    %8 = vector.broadcast %7 : vector<32x1xf32> to vector<32x32xf32>
    %9 = arith.subf %1, %8 : vector<32x32xf32>
    %10 = arith.mulf %9, %9 : vector<32x32xf32>
    %cst_7 = arith.constant dense<0.000000e+00> : vector<32xf32>
    %11 = vector.multi_reduction <add>, %10, %cst_7 [1] : vector<32x32xf32> to vector<32xf32>
    %12 = vector.shape_cast %11 : vector<32xf32> to vector<32x1xf32>
    %cst_8 = arith.constant 3.200000e+01 : f32
    %13 = vector.broadcast %cst_8 : f32 to vector<32x1xf32>
    %14 = arith.divf %12, %13 : vector<32x1xf32>
    %15 = vector.broadcast %7 : vector<32x1xf32> to vector<32x32xf32>
    %16 = arith.subf %1, %15 : vector<32x32xf32>
    %cst_9 = arith.constant 9.99999974E-6 : f32
    %17 = vector.broadcast %cst_9 : f32 to vector<32x1xf32>
    %18 = arith.addf %14, %17 : vector<32x1xf32>
    %19 = math.rsqrt %18 : vector<32x1xf32>
    %20 = vector.broadcast %19 : vector<32x1xf32> to vector<32x32xf32>
    %21 = arith.mulf %16, %20 : vector<32x32xf32>
    %22 = vector.broadcast %2 : vector<1x32xf32> to vector<32x32xf32>
    %23 = arith.mulf %21, %22 : vector<32x32xf32>
    %24 = vector.broadcast %3 : vector<1x32xf32> to vector<32x32xf32>
    %25 = arith.addf %23, %24 : vector<32x32xf32>
    %c0_10 = arith.constant 0 : index
    %c0_11 = arith.constant 0 : index
    %c0_12 = arith.constant 0 : index
    %26 = vector.load %arg2[%c0_10, %c0_11, %c0_12] : memref<2x8x32xf32, #tpu.memory_space<vmem>>, vector<2x8x32xf32>
    %27 = vector.shape_cast %26 : vector<2x8x32xf32> to vector<16x32xf32>
    %c0_13 = arith.constant 0 : index
    %c0_14 = arith.constant 0 : index
    %28 = vector.load %arg7[%c0_13, %c0_14] : memref<1x32xf32, #tpu.memory_space<vmem>>, vector<1x32xf32>
    %c0_15 = arith.constant 0 : index
    %c0_16 = arith.constant 0 : index
    %29 = vector.load %arg8[%c0_15, %c0_16] : memref<1x32xf32, #tpu.memory_space<vmem>>, vector<1x32xf32>
    %cst_17 = arith.constant dense<0.000000e+00> : vector<16xf32>
    %30 = vector.multi_reduction <add>, %27, %cst_17 [1] : vector<16x32xf32> to vector<16xf32>
    %31 = vector.shape_cast %30 : vector<16xf32> to vector<16x1xf32>
    %cst_18 = arith.constant 3.200000e+01 : f32
    %32 = vector.broadcast %cst_18 : f32 to vector<16x1xf32>
    %33 = arith.divf %31, %32 : vector<16x1xf32>
    %34 = vector.broadcast %33 : vector<16x1xf32> to vector<16x32xf32>
    %35 = arith.subf %27, %34 : vector<16x32xf32>
    %36 = arith.mulf %35, %35 : vector<16x32xf32>
    %cst_19 = arith.constant dense<0.000000e+00> : vector<16xf32>
    %37 = vector.multi_reduction <add>, %36, %cst_19 [1] : vector<16x32xf32> to vector<16xf32>
    %38 = vector.shape_cast %37 : vector<16xf32> to vector<16x1xf32>
    %cst_20 = arith.constant 3.200000e+01 : f32
    %39 = vector.broadcast %cst_20 : f32 to vector<16x1xf32>
    %40 = arith.divf %38, %39 : vector<16x1xf32>
    %41 = vector.broadcast %33 : vector<16x1xf32> to vector<16x32xf32>
    %42 = arith.subf %27, %41 : vector<16x32xf32>
    %cst_21 = arith.constant 9.99999974E-6 : f32
    %43 = vector.broadcast %cst_21 : f32 to vector<16x1xf32>
    %44 = arith.addf %40, %43 : vector<16x1xf32>
    %45 = math.rsqrt %44 : vector<16x1xf32>
    %46 = vector.broadcast %45 : vector<16x1xf32> to vector<16x32xf32>
    %47 = arith.mulf %42, %46 : vector<16x32xf32>
    %48 = vector.broadcast %28 : vector<1x32xf32> to vector<16x32xf32>
    %49 = arith.mulf %47, %48 : vector<16x32xf32>
    %50 = vector.broadcast %29 : vector<1x32xf32> to vector<16x32xf32>
    %51 = arith.addf %49, %50 : vector<16x32xf32>
    %c0_22 = arith.constant 0 : index
    %c0_23 = arith.constant 0 : index
    %52 = vector.load %arg9[%c0_22, %c0_23] : memref<32x192xf32, #tpu.memory_space<vmem>>, vector<32x192xf32>
    %cst_24 = arith.constant dense<0.000000e+00> : vector<16x192xf32>
    %53 = tpu.matmul %51, %52, %cst_24 {dimension_numbers = #tpu.dot_dimension_numbers<[1], [0], [0], [1], [0, 0, 1, 1], [], []>} : vector<16x32xf32>, vector<32x192xf32>, vector<16x192xf32> -> vector<16x192xf32>
    %54 = vector.extract_strided_slice %52 {offsets = [0, 0], sizes = [32, 128], strides = [1, 1]} : vector<32x192xf32> to vector<32x128xf32>
    %cst_25 = arith.constant dense<0.000000e+00> : vector<32x128xf32>
    %55 = tpu.matmul %25, %54, %cst_25 {dimension_numbers = #tpu.dot_dimension_numbers<[1], [0], [0], [1], [0, 0, 1, 1], [], []>} : vector<32x32xf32>, vector<32x128xf32>, vector<32x128xf32> -> vector<32x128xf32>
    %56 = vector.shape_cast %53 : vector<16x192xf32> to vector<2x8x12x16xf32>
    %57 = tpu.transpose %56, [2, 0, 1, 3] : vector<2x8x12x16xf32> -> vector<12x2x8x16xf32>
    %58 = vector.shape_cast %55 : vector<32x128xf32> to vector<2x16x8x16xf32>
    %59 = tpu.transpose %58, [2, 0, 1, 3] : vector<2x16x8x16xf32> -> vector<8x2x16x16xf32>
    %60 = vector.extract_strided_slice %57 {offsets = [0, 0, 0, 0], sizes = [4, 2, 8, 16], strides = [1, 1, 1, 1]} : vector<12x2x8x16xf32> to vector<4x2x8x16xf32>
    %61 = vector.extract_strided_slice %57 {offsets = [4, 0, 0, 0], sizes = [4, 2, 8, 16], strides = [1, 1, 1, 1]} : vector<12x2x8x16xf32> to vector<4x2x8x16xf32>
    %62 = vector.extract_strided_slice %57 {offsets = [8, 0, 0, 0], sizes = [4, 2, 8, 16], strides = [1, 1, 1, 1]} : vector<12x2x8x16xf32> to vector<4x2x8x16xf32>
    %63 = vector.extract_strided_slice %59 {offsets = [0, 0, 0, 0], sizes = [4, 2, 16, 16], strides = [1, 1, 1, 1]} : vector<8x2x16x16xf32> to vector<4x2x16x16xf32>
    %64 = vector.extract_strided_slice %59 {offsets = [4, 0, 0, 0], sizes = [4, 2, 16, 16], strides = [1, 1, 1, 1]} : vector<8x2x16x16xf32> to vector<4x2x16x16xf32>
    %65 = vector.shape_cast %62 : vector<4x2x8x16xf32> to vector<8x8x16xf32>
    %66 = vector.shape_cast %63 : vector<4x2x16x16xf32> to vector<8x16x16xf32>
    "tpu.trace_start"() <{level = 10 : i32, message = "bqd,bkd->bqk"}> : () -> ()
    %cst_26 = arith.constant dense<0.000000e+00> : vector<8x8x16xf32>
    %67 = tpu.matmul %65, %66, %cst_26 {dimension_numbers = #tpu.dot_dimension_numbers<[2], [2], [1], [1], [0, 0, 0, 1, 1, 1], [0], [0]>} : vector<8x8x16xf32>, vector<8x16x16xf32>, vector<8x8x16xf32> -> vector<8x8x16xf32>
    "tpu.trace_stop"() : () -> ()
    %68 = vector.shape_cast %67 : vector<8x8x16xf32> to vector<4x2x8x16xf32>
    %69 = vector.shape_cast %62 : vector<4x2x8x16xf32> to vector<8x8x16xf32>
    %70 = vector.shape_cast %60 : vector<4x2x8x16xf32> to vector<8x8x16xf32>
    "tpu.trace_start"() <{level = 10 : i32, message = "bqd,bkd->bqk"}> : () -> ()
    %cst_27 = arith.constant dense<0.000000e+00> : vector<8x8x8xf32>
    %71 = tpu.matmul %69, %70, %cst_27 {dimension_numbers = #tpu.dot_dimension_numbers<[2], [2], [1], [1], [0, 0, 0, 1, 1, 1], [0], [0]>} : vector<8x8x16xf32>, vector<8x8x16xf32>, vector<8x8x8xf32> -> vector<8x8x8xf32>
    "tpu.trace_stop"() : () -> ()
    %72 = vector.shape_cast %71 : vector<8x8x8xf32> to vector<4x2x8x8xf32>
    %cst_28 = arith.constant dense<0xFF800000> : vector<4x2x8xf32>
    %73 = vector.multi_reduction <maximumf>, %68, %cst_28 [3] : vector<4x2x8x16xf32> to vector<4x2x8xf32>
    %74 = vector.shape_cast %73 : vector<4x2x8xf32> to vector<4x2x8x1xf32>
    %cst_29 = arith.constant dense<0xFF800000> : vector<4x2x8xf32>
    %75 = vector.multi_reduction <maximumf>, %72, %cst_29 [3] : vector<4x2x8x8xf32> to vector<4x2x8xf32>
    %76 = vector.shape_cast %75 : vector<4x2x8xf32> to vector<4x2x8x1xf32>
    %77 = arith.maximumf %74, %76 : vector<4x2x8x1xf32>
    %c0_30 = arith.constant 0 : index
    %c0_31 = arith.constant 0 : index
    %c0_32 = arith.constant 0 : index
    %78 = vector.load %arg3[%c0_30, %c0_31, %c0_32] : memref<2x1x16xf32, #tpu.memory_space<vmem>>, vector<2x1x16xf32>
    %79 = vector.shape_cast %78 : vector<2x1x16xf32> to vector<1x2x1x16xf32>
    %c0_33 = arith.constant 0 : index
    %c0_34 = arith.constant 0 : index
    %c0_35 = arith.constant 0 : index
    %80 = vector.load %arg4[%c0_33, %c0_34, %c0_35] : memref<2x1x8xf32, #tpu.memory_space<vmem>>, vector<2x1x8xf32>
    %81 = vector.shape_cast %80 : vector<2x1x8xf32> to vector<1x2x1x8xf32>
    %82 = vector.broadcast %77 : vector<4x2x8x1xf32> to vector<4x2x8x16xf32>
    %83 = arith.subf %68, %82 : vector<4x2x8x16xf32>
    %84 = math.exp %83 : vector<4x2x8x16xf32>
    %85 = vector.broadcast %79 : vector<1x2x1x16xf32> to vector<4x2x8x16xf32>
    %86 = arith.mulf %84, %85 : vector<4x2x8x16xf32>
    %87 = vector.broadcast %77 : vector<4x2x8x1xf32> to vector<4x2x8x8xf32>
    %88 = arith.subf %72, %87 : vector<4x2x8x8xf32>
    %89 = math.exp %88 : vector<4x2x8x8xf32>
    %90 = vector.broadcast %81 : vector<1x2x1x8xf32> to vector<4x2x8x8xf32>
    %91 = arith.mulf %89, %90 : vector<4x2x8x8xf32>
    %cst_36 = arith.constant dense<0.000000e+00> : vector<4x2x8xf32>
    %92 = vector.multi_reduction <add>, %86, %cst_36 [3] : vector<4x2x8x16xf32> to vector<4x2x8xf32>
    %93 = vector.shape_cast %92 : vector<4x2x8xf32> to vector<4x2x8x1xf32>
    %cst_37 = arith.constant dense<0.000000e+00> : vector<4x2x8xf32>
    %94 = vector.multi_reduction <add>, %91, %cst_37 [3] : vector<4x2x8x8xf32> to vector<4x2x8xf32>
    %95 = vector.shape_cast %94 : vector<4x2x8xf32> to vector<4x2x8x1xf32>
    %96 = arith.addf %93, %95 : vector<4x2x8x1xf32>
    %cst_38 = arith.constant 1.000000e+00 : f32
    %97 = vector.broadcast %cst_38 : f32 to vector<4x2x8x1xf32>
    %98 = arith.divf %97, %96 : vector<4x2x8x1xf32>
    %99 = vector.shape_cast %86 : vector<4x2x8x16xf32> to vector<8x8x16xf32>
    %100 = vector.shape_cast %64 : vector<4x2x16x16xf32> to vector<8x16x16xf32>
    "tpu.trace_start"() <{level = 10 : i32, message = "bqk,bkd->bqd"}> : () -> ()
    %cst_39 = arith.constant dense<0.000000e+00> : vector<8x8x16xf32>
    %101 = tpu.matmul %99, %100, %cst_39 {dimension_numbers = #tpu.dot_dimension_numbers<[2], [1], [1], [2], [0, 0, 0, 1, 1, 2], [0], [0]>} : vector<8x8x16xf32>, vector<8x16x16xf32>, vector<8x8x16xf32> -> vector<8x8x16xf32>
    "tpu.trace_stop"() : () -> ()
    %102 = vector.shape_cast %91 : vector<4x2x8x8xf32> to vector<8x8x8xf32>
    %103 = vector.shape_cast %61 : vector<4x2x8x16xf32> to vector<8x8x16xf32>
    "tpu.trace_start"() <{level = 10 : i32, message = "bqk,bkd->bqd"}> : () -> ()
    %cst_40 = arith.constant dense<0.000000e+00> : vector<8x8x16xf32>
    %104 = tpu.matmul %102, %103, %cst_40 {dimension_numbers = #tpu.dot_dimension_numbers<[2], [1], [1], [2], [0, 0, 0, 1, 1, 2], [0], [0]>} : vector<8x8x8xf32>, vector<8x8x16xf32>, vector<8x8x16xf32> -> vector<8x8x16xf32>
    "tpu.trace_stop"() : () -> ()
    %105 = arith.addf %101, %104 : vector<8x8x16xf32>
    %106 = vector.shape_cast %105 : vector<8x8x16xf32> to vector<4x2x8x16xf32>
    %107 = vector.broadcast %98 : vector<4x2x8x1xf32> to vector<4x2x8x16xf32>
    %108 = arith.mulf %106, %107 : vector<4x2x8x16xf32>
    %109 = vector.shape_cast %108 : vector<4x2x8x16xf32> to vector<4x16x16xf32>
    %c0_41 = arith.constant 0 : index
    %c0_42 = arith.constant 0 : index
    %c0_43 = arith.constant 0 : index
    %110 = vector.load %arg10[%c0_41, %c0_42, %c0_43] : memref<4x16x32xf32, #tpu.memory_space<vmem>>, vector<4x16x32xf32>
    "tpu.trace_start"() <{level = 10 : i32, message = "hrd,hdo->hro"}> : () -> ()
    %cst_44 = arith.constant dense<0.000000e+00> : vector<4x16x32xf32>
    %111 = tpu.matmul %109, %110, %cst_44 {dimension_numbers = #tpu.dot_dimension_numbers<[2], [1], [1], [2], [0, 0, 0, 1, 1, 2], [0], [0]>} : vector<4x16x16xf32>, vector<4x16x32xf32>, vector<4x16x32xf32> -> vector<4x16x32xf32>
    "tpu.trace_stop"() : () -> ()
    %cst_45 = arith.constant dense<0.000000e+00> : vector<16x32xf32>
    %112 = vector.multi_reduction <add>, %111, %cst_45 [0] : vector<4x16x32xf32> to vector<16x32xf32>
    %c0_46 = arith.constant 0 : index
    %c0_47 = arith.constant 0 : index
    %113 = vector.load %arg11[%c0_46, %c0_47] : memref<16x32xf32, #tpu.memory_space<vmem>>, vector<16x32xf32>
    tpu.vector_store %arg11[%c0_46, %c0_47], %112 {strides = array<i32>} : memref<16x32xf32, #tpu.memory_space<vmem>>, vector<16x32xf32>,
    return
  }
  func.func @transform_0(%arg0: i32) -> (i32, i32, i32) {
    %c0_i32 = arith.constant 0 : i32
    %c0_i32_0 = arith.constant 0 : i32
    %c0_i32_1 = arith.constant 0 : i32
    return %arg0, %c0_i32, %c0_i32_0 : i32, i32, i32
  }
  func.func @transform_1(%arg0: i32) -> (i32, i32, i32) {
    %c0_i32 = arith.constant 0 : i32
    %c0_i32_0 = arith.constant 0 : i32
    %c0_i32_1 = arith.constant 0 : i32
    return %arg0, %c0_i32, %c0_i32_0 : i32, i32, i32
  }
  func.func @transform_2(%arg0: i32) -> (i32, i32, i32) {
    %c0_i32 = arith.constant 0 : i32
    %c0_i32_0 = arith.constant 0 : i32
    %c0_i32_1 = arith.constant 0 : i32
    return %arg0, %c0_i32, %c0_i32_0 : i32, i32, i32
  }
  func.func @transform_3(%arg0: i32) -> (i32, i32, i32) {
    %c0_i32 = arith.constant 0 : i32
    %c0_i32_0 = arith.constant 0 : i32
    %c0_i32_1 = arith.constant 0 : i32
    return %arg0, %c0_i32, %c0_i32_0 : i32, i32, i32
  }
  func.func @transform_4(%arg0: i32) -> (i32, i32) {
    %c0_i32 = arith.constant 0 : i32
    %c0_i32_0 = arith.constant 0 : i32
    %c0_i32_1 = arith.constant 0 : i32
    return %c0_i32, %c0_i32_0 : i32, i32
  }
  func.func @transform_5(%arg0: i32) -> (i32, i32) {
    %c0_i32 = arith.constant 0 : i32
    %c0_i32_0 = arith.constant 0 : i32
    %c0_i32_1 = arith.constant 0 : i32
    return %c0_i32, %c0_i32_0 : i32, i32
  }
  func.func @transform_6(%arg0: i32) -> (i32, i32) {
    %c0_i32 = arith.constant 0 : i32
    %c0_i32_0 = arith.constant 0 : i32
    %c0_i32_1 = arith.constant 0 : i32
    return %c0_i32, %c0_i32_0 : i32, i32
  }
  func.func @transform_7(%arg0: i32) -> (i32, i32) {
    %c0_i32 = arith.constant 0 : i32
    %c0_i32_0 = arith.constant 0 : i32
    %c0_i32_1 = arith.constant 0 : i32
    return %c0_i32, %c0_i32_0 : i32, i32
  }
  func.func @transform_8(%arg0: i32) -> (i32, i32) {
    %c0_i32 = arith.constant 0 : i32
    %c0_i32_0 = arith.constant 0 : i32
    %c0_i32_1 = arith.constant 0 : i32
    return %c0_i32, %c0_i32_0 : i32, i32
  }
  func.func @transform_9(%arg0: i32) -> (i32, i32, i32) {
    %c0_i32 = arith.constant 0 : i32
    %c0_i32_0 = arith.constant 0 : i32
    %c0_i32_1 = arith.constant 0 : i32
    %c0_i32_2 = arith.constant 0 : i32
    return %c0_i32, %c0_i32_0, %c0_i32_1 : i32, i32, i32
  }
  func.func @transform_10(%arg0: i32) -> (i32, i32) {
    %c0_i32 = arith.constant 0 : i32
    %c0_i32_0 = arith.constant 0 : i32
    return %arg0, %c0_i32 : i32, i32
  }
}

</mosaic_0001>

<bundles_post_ra>
// kernel: tpu_custom_call.1
= control target key start
LH: loop header
LB: loop body
LE: loop exit
PB: predicated region body
PF: predicated region fallthrough
CT: control target
= control target key end

     0   :  { %s6611_s0 = inlined_call_operand.hbm [shape: f32[4,16,32], index: 0, kind: input, shape index: {}]   ;;  %s6612_s1 = inlined_call_operand.hbm [shape: f32[4,8,32], index: 1, kind: input, shape index: {}]   ;;  %s6613_s2 = inlined_call_operand.hbm [shape: f32[4,1,16], index: 2, kind: input, shape index: {}]   ;;  %s6614_s3 = inlined_call_operand.hbm [shape: f32[4,1,8], index: 3, kind: input, shape index: {}]   ;;  %s6615_s4 = inlined_call_operand.vmem [shape: f32[1,32], index: 4, kind: input, shape index: {}]   ;;  %s6616_s5 = inlined_call_operand.vmem [shape: f32[1,32], index: 5, kind: input, shape index: {}]   ;;  %s6617_s6 = inlined_call_operand.vmem [shape: f32[1,32], index: 6, kind: input, shape index: {}]   ;;  %s6618_s7 = inlined_call_operand.vmem [shape: f32[1,32], index: 7, kind: input, shape index: {}]   ;;  %s6619_s8 = inlined_call_operand.hbm [shape: f32[32,192], index: 8, kind: input, shape index: {}]   ;;  %s6620_s9 = inlined_call_operand.hbm [shape: f32[4,16,32], index: 9, kind: input, shape index: {}]   ;;  %s6621_s10 = inlined_call_operand.hbm [shape: f32[32,32], index: 10, kind: output, shape index: {}]  }
   0x1   :  { %6659 = sst [smem:[#allocation52_spill]] %s6612_s1 }
   0x2   :  { %6660 = sst [smem:[#allocation53_spill]] %s6619_s8 }
   0x3   :  { %6661 = sst [smem:[#allocation54_spill]] %s6620_s9 }
   0x4   :  { %6662 = sst [smem:[#allocation55_spill]] %s6621_s10 }
   0x5   :  { %15 = vsyncpa [#allocation3], 0 }
   0x6   :  { %17 = vsyncpa [#allocation3 + $0x1], 0 }
   0x7   :  { %18 = vsyncpa [#allocation6], 0 }
   0x8   :  { %20 = vsyncpa [#allocation6 + $0x1], 0 }
   0x9   :  { %21 = vsyncpa [#allocation9], 0 }
   0xa   :  { %23 = vsyncpa [#allocation9 + $0x1], 0 }
   0xb   :  { %24 = vsyncpa [#allocation12], 0 }
   0xc   :  { %25 = vsyncpa [#allocation4], 0 }
   0xd   :  { %27 = vsyncpa [#allocation4 + $0x1], 0  ;;  %s4564_s13 = smov 0   ;;  %s4566_s14 = smov 0  }
   0xe   :  { %s4568_s15 = smov 0   ;;  %s4570_s16 = smov 0  }
   0xf LB: > { %6663 = sst [smem:[#allocation20_spill]] %s4476_s13  ;;  %s4585_s17 = sadd.s32 4294967295, %s4488_s16   ;;  %s4488_s16 = sphi %s4570_s16, %s6797_s16   ;;  %s4484_s15 = sphi %s4568_s15, %s6799_s15   ;;  %s4480_s14 = sphi %s4566_s14, %s6801_s14   ;;  %s4476_s13 = sphi %s4564_s13, %s6800_s13  }
  0x10   : > { %6664 = sst [smem:[#allocation21_spill]] %s4484_s15  ;;  %s3952_s18 = sadd.s32 4294967294, %s4488_s16  }
  0x11   : > { %p53_p0 = scmp.ne.s32.totalorder %s4480_s14, %s4476_s13  ;;  %p6629_p1 = scmp.eq.s32.totalorder %s4585_s17, 0 }
  0x12   : > { %p281_p2 = scmp.eq.s32.totalorder %s4585_s17, 1  ;;  %p287_p3 = scmp.eq.s32.totalorder %s3952_s18, 1 }
  0x13   : > { %p4594_p4 = por %p6629_p1, %p53_p0  ;;  %p3953_p5 = scmp.ge.s32.totalorder %s4488_s16, 1 }
  0x14   : > { %p4599_p6 = por %p287_p3, %p53_p0  ;;  %p294_p7 = scmp.lt.s32.totalorder %s4488_s16, 3 }
  0x15   : > { %s6668_s8 = sld [smem:[#allocation53_spill]]  ;;  %s4490_s25 = smov [#allocation10]  }
  0x16   : > { %s6666_s20 = scalar_select %p4599_p6, 1, 0 }
  0x17   : > { %p4607_p8 = pnand %p3953_p5, %p294_p7  ;;  %s319_s26 = sshll.u32 %s4490_s25, 4  ;;  %s320_s26 = int_to_ptr.vmem [resolvable:$true] %s319_s26 }
  0x18   : > { %6667 = sst [smem:[#allocation22_spill]] %s6666_s20  ;;  %s4621_s28 = sadd.s32 1, %s4488_s16  }
  0x19   : > { %p4075_p9 = pneg %p4607_p8  ;;  %6671 = sst [smem:[#allocation23_spill]] %s4621_s28 }
  0x1a   : > { %s4491_s29 = smov 256   ;;  %s6622_s30 = smov 16  }
  0x1b   : > { %s317_s23 = sshll.u32 %s6668_s8, 4  ;;  %p4615_p10 = pnand %p4075_p9, %p6629_p1  ;;  %s318_s23 = int_to_ptr.hbm [resolvable:$true] %s317_s23 }
  0x1c   : > { %s37_s11 = ssub.s32 %s4488_s16, %s4621_s28  ;;  %s40_s12 = sadd.s32 1, %s4484_s15 }
  0x1d   : > { %4078 = dma.hbm_to_vmem [thread:$0]  (!%p4615_p10), %s318_s23, 1024, %s320_s26, [#allocation9], %s4491_s29, %s4491_s29, %s6622_s30  }
  0x1e   : > { %p38_p12 = scmp.eq.s32.totalorder %s37_s11, 0  ;;  %p47_p13 = scmp.ne.s32.totalorder %s4484_s15, %s4480_s14 }
  0x1f   : > { %p48_p0 = scmp.eq.s32.totalorder %s4488_s16, 0  ;;  %p4101_p7 = scmp.lt.s32.totalorder %s4488_s16, 2 }
  0x20   : > { %s4633_s18 = scalar_select %p38_p12, %s4484_s15, %s40_s12  }
  0x21   : > { %p49_p3 = por %p48_p0, %p47_p13  ;;  %p4637_p5 = por %p281_p2, %p47_p13 }
  0x22   : > { %6672 = sst [smem:[#allocation24_spill]] %s4633_s18  ;;  %s4643_s22 = sand.u32 1, %s4484_s15  }
  0x23   : > { %s6673_s21 = scalar_select %p4637_p5, 1, 0 }
  0x24   : > { %s6630_s25 = sand.u32 1, %s4488_s16   ;;  %p4646_p9 = pnand %p4101_p7, %p49_p3 }
  0x25   : > { %6674 = sst [smem:[#allocation25_spill]] %s6673_s21  ;;  %s3961_s26 = sshll.u32 %s4643_s22, 4 }
  0x26   : > { %s4055_s29 = sshll.u32 %s4488_s16, 4  ;;  %s6676_s1 = sld [smem:[#allocation52_spill]] }
  0x27   : > { %s374_s8 = scalar_lea.vmem [#allocation5], %s3961_s26  ;;  %s4657_s15 = scalar_lea.sflag [#allocation6], %s6630_s25 }
  0x28   : > { %s382_s18 = sshll.u32 %s374_s8, 4  ;;  %p4260_p12 = pneg %p4646_p9  ;;  %s383_s18 = int_to_ptr.vmem [resolvable:$true] %s382_s18 }
  0x2c   : > { %s379_s30 = scalar_lea.hbm %s6676_s1, %s4055_s29  ;;  %s4263_s8 = scalar_lea.hbm %s6676_s1, 32 }
  0x2d   : > { %s380_s28 = sshll.u32 %s379_s30, 4  ;;  %s381_s28 = int_to_ptr.hbm [resolvable:$true] %s380_s28 }
  0x2e   : > { %s4256_s20 = sshra.s32 %s381_s28, 4  ;;  %s4257_s20 = int_to_ptr.hbm [resolvable:$true] %s4256_s20 }
  0x2f   : > { %s4258_s13 = scalar_lea.hbm %s4257_s20, 16  ;;  %p4264_p3 = scmp.lt.s32.totalorder %s4257_s20, %s6676_s1 }
  0x30   : > { %p4259_p2 = scmp.ne.s32.totalorder %s4257_s20, %s4258_s13  ;;  %p4265_p7 = scmp.lt.s32.totalorder %s4263_s8, %s4258_s13 }
  0x32   : > { %p4261_p13 = pnand %p4260_p12, %p4259_p2  ;;  %p4266_p11 = por %p4265_p7, %p4264_p3 }
  0x34   : > { %p4262_p0 = pneg %p4261_p13 }
  0x36   : > { %p4267_p1 = pnand %p4266_p11, %p4262_p0 }
  0x38   : > { %4270 = shalt.err (!%p4267_p1)
}
  0x39   : > { %s4493_s12 = smov 128   ;;  %s4494_s25 = smov 8  }
  0x3a   : > { %4088 = dma.hbm_to_vmem [thread:$0]  (!%p4646_p9), %s381_s28, 256, %s383_s18, %s4657_s15, %s4493_s12, %s4493_s12, %s4494_s25  }
  0x3b   : > { %s6677_s9 = sld [smem:[#allocation54_spill]]  ;;  %s4495_s20 = smov [#allocation11]  }
  0x3c   : > { %s333_s8 = sshll.u32 %s4495_s20, 4  ;;  %s3957_s30 = sshll.u32 %s4643_s22, 5  ;;  %s334_s8 = int_to_ptr.vmem [resolvable:$true] %s333_s8 }
  0x3d   : > { %s4054_s26 = sshll.u32 %s4488_s16, 5  ;;  %s351_s10 = scalar_lea.vmem [#allocation2], %s3957_s30 }
  0x3e   : > { %s357_s28 = scalar_lea.hbm %s6611_s0, %s4054_s26  ;;  %s360_s11 = sshll.u32 %s351_s10, 4  ;;  %s361_s11 = int_to_ptr.vmem [resolvable:$true] %s360_s11 }
  0x3f   : > { %s358_s18 = sshll.u32 %s357_s28, 4  ;;  %s348_s29 = scalar_lea.sflag [#allocation3], %s4643_s22  ;;  %s359_s18 = int_to_ptr.hbm [resolvable:$true] %s358_s18 }
  0x40   : > { %s4316_s20 = sshra.s32 %s359_s18, 4  ;;  %s4317_s20 = int_to_ptr.hbm [resolvable:$true] %s4316_s20 }
  0x41   : > { %s331_s13 = sshll.u32 %s6677_s9, 4  ;;  %s4318_s9 = scalar_lea.hbm %s4317_s20, 32  ;;  %s332_s13 = int_to_ptr.hbm [resolvable:$true] %s331_s13 }
  0x42   : > { %4081 = dma.hbm_to_vmem [thread:$0]  (!%p4615_p10), %s332_s13, 1024, %s334_s8, [#allocation12], %s4493_s12, %s4493_s12, %s4494_s25  }
  0x43   : > { %p4319_p1 = scmp.ne.s32.totalorder %s4317_s20, %s4318_s9  ;;  %s4323_s8 = scalar_lea.hbm %s6611_s0, 64 }
  0x44   : > { %p4324_p2 = scmp.lt.s32.totalorder %s4317_s20, %s6611_s0  ;;  %p4325_p13 = scmp.lt.s32.totalorder %s4323_s8, %s4318_s9 }
  0x45   : > { %p4321_p11 = pnand %p4319_p1, %p4260_p12 }
  0x46   : > { %p4326_p0 = por %p4325_p13, %p4324_p2 }
  0x47   : > { %p4322_p10 = pneg %p4321_p11 }
  0x49   : > { %p4327_p3 = pnand %p4326_p0, %p4322_p10 }
  0x4b   : > { %4330 = shalt.err (!%p4327_p3)
}
  0x4c   : > { %4085 = dma.hbm_to_vmem [thread:$0]  (!%p4646_p9), %s359_s18, 512, %s361_s11, %s348_s29, %s4493_s12, %s4493_s12, %s4494_s25  }
  0x4d   : > { %s3964_s10 = sshll.u32 %s4643_s22, 1  ;;  %s3965_s30 = sshll.u32 %s4488_s16, 1 }
  0x4e   : > { %s400_s27 = scalar_lea.hbm %s6613_s2, %s3965_s30  ;;  %s396_s9 = scalar_lea.vmem [#allocation7], %s3964_s10 }
  0x4f   : > { %s401_s20 = sshll.u32 %s400_s27, 4  ;;  %s403_s13 = sshll.u32 %s396_s9, 4  ;;  %s402_s20 = int_to_ptr.hbm [resolvable:$true] %s401_s20  ;;  %s404_s13 = int_to_ptr.vmem [resolvable:$true] %s403_s13 }
  0x50   : > { %s4346_s8 = sshra.s32 %s402_s20, 4  ;;  %s4353_s12 = scalar_lea.hbm %s6613_s2, 4  ;;  %s4347_s8 = int_to_ptr.hbm [resolvable:$true] %s4346_s8 }
  0x51   : > { %s4348_s1 = scalar_lea.hbm %s4347_s8, 2  ;;  %p4354_p10 = scmp.lt.s32.totalorder %s4347_s8, %s6613_s2 }
  0x52   : > { %p4349_p7 = scmp.ne.s32.totalorder %s4347_s8, %s4348_s1  ;;  %p4355_p2 = scmp.lt.s32.totalorder %s4353_s12, %s4348_s1 }
  0x54   : > { %p4351_p1 = pnand %p4349_p7, %p4260_p12  ;;  %p4356_p13 = por %p4355_p2, %p4354_p10 }
  0x56   : > { %p4352_p11 = pneg %p4351_p1 }
  0x58   : > { %p4357_p0 = pnand %p4356_p13, %p4352_p11 }
  0x5a   : > { %4360 = shalt.err (!%p4357_p0)
}
  0x5b   : > { %s4496_s29 = smov 1   ;;  %s6678_s21 = smov 16  }
  0x5c   : > { %4091 = dma.hbm_to_vmem [thread:$0]  (!%p4646_p9), %s402_s20, 32, %s404_s13, %s4657_s15, %s6678_s21, %s6678_s21, %s4496_s29  }
  0x5d   : > { %s421_s27 = scalar_lea.hbm %s6614_s3, %s3965_s30  ;;  %s417_s9 = scalar_lea.vmem [#allocation8], %s3964_s10 }
  0x5e   : > { %s424_s25 = sshll.u32 %s417_s9, 4  ;;  %s422_s8 = sshll.u32 %s421_s27, 4  ;;  %s425_s25 = int_to_ptr.vmem [resolvable:$true] %s424_s25  ;;  %s423_s8 = int_to_ptr.hbm [resolvable:$true] %s422_s8 }
  0x5f   : > { %s6679_s1 = sand.u32 1, %s4488_s16   ;;  %s4376_s12 = sshra.s32 %s423_s8, 4  ;;  %s4377_s12 = int_to_ptr.hbm [resolvable:$true] %s4376_s12 }
  0x60   : > { %s414_s22 = scalar_lea.sflag [#allocation9], %s6679_s1  ;;  %s4378_s18 = scalar_lea.hbm %s4377_s12, 2 }
  0x61   : > { %p4379_p3 = scmp.ne.s32.totalorder %s4377_s12, %s4378_s18  ;;  %s4383_s13 = scalar_lea.hbm %s6614_s3, 4 }
  0x62   : > { %p4384_p11 = scmp.lt.s32.totalorder %s4377_s12, %s6614_s3  ;;  %p4385_p10 = scmp.lt.s32.totalorder %s4383_s13, %s4378_s18 }
  0x63   : > { %p4381_p7 = pnand %p4379_p3, %p4260_p12 }
  0x64   : > { %p4386_p2 = por %p4385_p10, %p4384_p11 }
  0x65   : > { %p4382_p1 = pneg %p4381_p7 }
  0x67   : > { %p4387_p13 = pnand %p4386_p2, %p4382_p1 }
  0x69   : > { %4390 = shalt.err (!%p4387_p13)
}
  0x6a   : > { %4094 = dma.hbm_to_vmem [thread:$0]  (!%p4646_p9), %s423_s8, 32, %s425_s25, %s414_s22, %s6678_s21, %s6678_s21, %s4496_s29  }
  0x6b   : > { %436 = sbr.rel (%p4607_p8) target bundleno = 1429 (0x595), region = 60 }
  0x70   : > { %s4744_s11 = sand.u32 1, %s4480_s14  }
  0x71   : > { %s3969_s26 = sshll.u32 %s4744_s11, 5  ;;  %s439_s28 = scalar_lea.sflag [#allocation3], %s4744_s11 }
  0x72   : > { %s4748_s27 = scalar_lea.vmem [#allocation2], %s3969_s26 }
  0x73   : > { %4451 = dma.done.wait (%p4594_p4), %s439_s28, 512  }
  0x74   : > { %4453 = vsyncadd (%p4594_p4), %s439_s28, 4294966784  ;;  %s448_s24 = sand.u32 1, %s4585_s17   ;;  %s3970_s23 = sshll.u32 %s4744_s11, 4 }
  0x75   : > { %s449_s29 = scalar_lea.sflag [#allocation6], %s448_s24  ;;  %s452_s21 = scalar_lea.vmem [#allocation5], %s3970_s23 }
  0x76   : > { %4455 = dma.done.wait (%p4594_p4), %s449_s29, 288  }
  0x77   : > { %4457 = vsyncadd (%p4594_p4), %s449_s29, 4294967008  ;;  %s3971_s9 = sshll.u32 %s4744_s11, 1  ;;  %s469_s8 = scalar_lea.sflag [#allocation9], %s448_s24 }
  0x78   : > { %s4763_s25 = scalar_lea.vmem [#allocation7], %s3971_s9  ;;  %s4765_s1 = scalar_lea.vmem [#allocation8], %s3971_s9 }
  0x79   : > { %4459 = dma.done.wait (%p4594_p4), %s469_s8, 32  }
  0x7a   : > { %4461 = vsyncadd (%p4594_p4), %s469_s8, 4294967264  ;;  %p6680_p8 = scmp.eq.s32.totalorder %s4585_s17, 0 }
  0x7c   : > { %4463 = dma.done.wait (%p6680_p8), [#allocation9], 1024   ;;  %p6681_p9 = pmov %p6680_p8 }
  0x7d   : > { %p6682_p12 = pmov %p6680_p8 }
  0x7e   : > { %4465 = vsyncadd (%p6681_p9), [#allocation9], 4294966272 }
  0x7f   : > { %4467 = dma.done.wait (%p6682_p12), [#allocation12], 1024   ;;  %p6683_p0 = pmov %p6680_p8 }
  0x80   : > { %vm546_vm0 = vcmask 261120   ;;  %v656_v0 = vld [vmem:[%s452_s21] sm:$0xff]  ;;  %v657_v6 = vld [vmem:[%s452_s21 + $0x8] sm:$0xff]  ;;  %v4497_v12 = vmov 32.0   ;;  %s4498_s10 = smov 112   ;;  %s4499_s26 = smov 32  }
  0x81   : > { %4469 = vsyncadd (%p6683_p0), [#allocation12], 4294966272  ;;  %v542_v1 = vld [vmem:[%s4748_s27 + $0x10] sm:$0xff]  ;;  %v540_v2 = vld [vmem:[%s4748_s27] sm:$0xff]  ;;  %v660_v3 = vsel %vm546_vm0, %v656_v0, 0.0  ;;  %v663_v9 = vsel %vm546_vm0, %v657_v6, 0.0  ;;  %4164 = vrcp.f32 %v4497_v12 }
  0x82   : > { %v553_v4 = vsel %vm546_vm0, %v542_v1, 0.0  ;;  %v547_v5 = vsel %vm546_vm0, %v540_v2, 0.0  ;;  %661 = vadd.xlane.f32.xlu2 %v660_v3  ;;  %v543_v7 = vld [vmem:[%s4748_s27 + $0x18] sm:$0xff]  ;;  %v541_v8 = vld [vmem:[%s4748_s27 + $0x8] sm:$0xff]  ;;  %v721_v59 = vld [vmem:[#allocation10 + $0x38] sm:$0xff]  ;;  %s4500_s28 = smov 96  }
  0x83   : > { %554 = vadd.xlane.f32.xlu1 %v553_v4  ;;  %548 = vadd.xlane.f32.xlu0 %v547_v5  ;;  %v556_v10 = vsel %vm546_vm0, %v543_v7, 0.0  ;;  %v550_v11 = vsel %vm546_vm0, %v541_v8, 0.0  ;;  %v720_v49 = vld [vmem:[#allocation10 + $0x30] sm:$0xff]  ;;  %v718_v50 = vld [vmem:[#allocation10 + $0x20] sm:$0xff]  ;;  %v719_v61 = vld [vmem:[#allocation10 + $0x28] sm:$0xff]  ;;  %s4501_s27 = smov 16  }
  0x84   : > { %798 = vmatpush.msra.mxu2 %v720_v49  ;;  %740 = vmatpush.msra.mxu0 %v720_v49  ;;  %v716_v51 = vld [vmem:[#allocation10 + $0x10] sm:$0xff]  ;;  %v714_v52 = vld [vmem:[#allocation10] sm:$0xff]  ;;  %s4502_s24 = smov 80   ;;  %s4503_s29 = smov 64  }
  0x85   : > { %763 = vmatpush.msra.mxu1 %v721_v59  ;;  %s4504_s21 = smov 48   ;;  %s534_s9 = scalar_lea.vmem [#allocation13], %s3970_s23 }
  0x86   : > { %799 = vmatpush.msra.mxu2 %v718_v50  ;;  %741 = vmatpush.msra.mxu0 %v718_v50  ;;  %s6792_s19 = sld [smem:[#allocation55_spill]]  ;;  %s3791_s18 = sshll.u32 %s534_s9, 4  ;;  %s3792_s18 = int_to_ptr.vmem [resolvable:$true] %s3791_s18 }
  0x87   : > { %v4165_v13 = vpop.eup %4164  ;;  %764 = vmatpush.msra.mxu1 %v719_v61 }
  0x88   : > { %v560_v14 = vmul.f32 32.0, %v4165_v13  ;;  %vm564_vm1 = vweird.f32 %v4165_v13  ;;  %800 = vmatpush.msra.mxu2 %v716_v51  ;;  %742 = vmatpush.msra.mxu0 %v716_v51 }
  0x8a   : > { %664 = vadd.xlane.f32.xlu2 %v663_v9  ;;  %v561_v15 = vsub.f32 1.0, %v560_v14  ;;  %801 = vmatpush.msra.mxu2 %v714_v52 }
  0x8b   : > { %557 = vadd.xlane.f32.xlu1 %v556_v10  ;;  %551 = vadd.xlane.f32.xlu0 %v550_v11 }
  0x8c   : > { %v562_v16 = vmul.f32 %v4165_v13, %v561_v15  ;;  %743 = vmatpush.msra.mxu0 %v714_v52 }
  0x8e   : > { %v563_v17 = vadd.f32 %v4165_v13, %v562_v16 }
  0x90   : > { %v4789_v18 = vsel %vm564_vm1, %v4165_v13, %v563_v17 }
  0xf5   : > { %v662_v19 = vpop.xlane.xlu2 %661 }
  0xf6   : > { %v555_v20 = vpop.xlane.xlu1 %554  ;;  %v549_v22 = vpop.xlane.xlu0 %548  ;;  %v666_v35 = vmul.f32 %v662_v19, %v4789_v18 }
  0xf7   : > { %v568_v21 = vmul.f32 %v4789_v18, %v555_v20  ;;  %v566_v23 = vmul.f32 %v4789_v18, %v549_v22 }
  0xf8   : > { %v4817_v42 = vsub.f32 %v656_v0, %v666_v35 }
  0xf9   : > { %v4793_v24 = vsub.f32 %v542_v1, %v568_v21  ;;  %v4795_v25 = vsub.f32 %v540_v2, %v566_v23  ;;  %v717_v1 = vld [vmem:[#allocation10 + $0x18] sm:$0xff] }
  0xfa   : > { %v670_v47 = vmul.f32 %v4817_v42, %v4817_v42  ;;  %765 = vmatpush.msra.mxu1 %v717_v1 }
  0xfb   : > { %v576_v26 = vmul.f32 %v4793_v24, %v4793_v24  ;;  %v574_v27 = vmul.f32 %v4795_v25, %v4795_v25 }
  0xfc   : > { %v672_v48 = vsel %vm546_vm0, %v670_v47, 0.0 }
  0xfd   : > { %v584_v28 = vsel %vm546_vm0, %v576_v26, 0.0  ;;  %v665_v29 = vpop.xlane.xlu2 %664  ;;  %v578_v31 = vsel %vm546_vm0, %v574_v27, 0.0 }
  0xfe   : > { %585 = vadd.xlane.f32.xlu2 %v584_v28  ;;  %v558_v30 = vpop.xlane.xlu1 %557  ;;  %v667_v32 = vmul.f32 %v665_v29, %v4789_v18  ;;  %579 = vadd.xlane.f32.xlu0 %v578_v31  ;;  %v552_v34 = vpop.xlane.xlu0 %551 }
  0xff   : > { %v569_v33 = vmul.f32 %v4789_v18, %v558_v30  ;;  %v567_v36 = vmul.f32 %v4789_v18, %v552_v34 }
 0x100   : > { %v4807_v37 = vsub.f32 %v657_v6, %v667_v32  ;;  %v715_v6 = vld [vmem:[#allocation10 + $0x8] sm:$0xff] }
 0x101   : > { %v4809_v38 = vsub.f32 %v543_v7, %v569_v33  ;;  %v4811_v39 = vsub.f32 %v541_v8, %v567_v36  ;;  %766 = vmatpush.msra.mxu1 %v715_v6  ;;  %v4157_v33 = vld [vmem:[%s6616_s5] ss:$0 sm:$0xff] }
 0x102   : > { %v671_v40 = vmul.f32 %v4807_v37, %v4807_v37 }
 0x103   : > { %v577_v41 = vmul.f32 %v4809_v38, %v4809_v38  ;;  %v575_v43 = vmul.f32 %v4811_v39, %v4811_v39 }
 0x104   : > { %v675_v44 = vsel %vm546_vm0, %v671_v40, 0.0 }
 0x105   : > { %v587_v45 = vsel %vm546_vm0, %v577_v41, 0.0  ;;  %v581_v46 = vsel %vm546_vm0, %v575_v43, 0.0 }
 0x106   : > { %676 = vadd.xlane.f32.xlu2 %v675_v44  ;;  %588 = vadd.xlane.f32.xlu0 %v587_v45 }
 0x107   : > { %582 = vadd.xlane.f32.xlu1 %v581_v46 }
 0x10f   : > { %673 = vadd.xlane.f32.xlu1 %v672_v48 }
 0x171   : > { %v586_v53 = vpop.xlane.xlu2 %585  ;;  %v580_v55 = vpop.xlane.xlu0 %579 }
 0x172   : > { %v592_v54 = vmul.f32 %v586_v53, %v4789_v18  ;;  %v590_v56 = vmul.f32 %v580_v55, %v4789_v18 }
 0x174   : > { %v4829_v57 = vadd.f32 1e-05, %v592_v54  ;;  %v594_v58 = vadd.f32 1e-05, %v590_v56 }
 0x176   : > { %4166 = vrsqrt.f32 %v4829_v57  ;;  %vm604_vm3 = vweird.f32 %v594_v58  ;;  %vm624_vm5 = vweird.f32 %v4829_v57 }
 0x177   : > { %4168 = vrsqrt.f32 %v594_v58 }
 0x179   : > { %v677_v60 = vpop.xlane.xlu2 %676  ;;  %v589_v0 = vpop.xlane.xlu0 %588 }
 0x17a   : > { %v679_v62 = vmul.f32 %v677_v60, %v4789_v18  ;;  %v583_v63 = vpop.xlane.xlu1 %582  ;;  %v593_v3 = vmul.f32 %v589_v0, %v4789_v18 }
 0x17b   : > { %v591_v2 = vmul.f32 %v583_v63, %v4789_v18 }
 0x17c   : > { %v4835_v4 = vpop.eup %4166  ;;  %v4837_v5 = vadd.f32 1e-05, %v679_v62  ;;  %v4839_v9 = vadd.f32 1e-05, %v593_v3 }
 0x17d   : > { %v4169_v7 = vpop.eup %4168  ;;  %v595_v8 = vadd.f32 1e-05, %v591_v2  ;;  %v619_v10 = vmul.f32 %v4835_v4, %v4829_v57  ;;  %vm625_vm6 = vweird.f32 %v4835_v4 }
 0x17e   : > { %v599_v11 = vmul.f32 %v4169_v7, %v594_v58  ;;  %4170 = vrsqrt.f32 %v4837_v5  ;;  %vm605_vm2 = vweird.f32 %v4169_v7  ;;  %vm4870_vm8 = vmor %vm624_vm5, %vm625_vm6  ;;  %vm698_vm11 = vweird.f32 %v4837_v5 }
 0x17f   : > { %4172 = vrsqrt.f32 %v595_v8  ;;  %v620_v13 = vmul.f32 %v4835_v4, %v619_v10  ;;  %vm606_vm4 = vmor %vm604_vm3, %vm605_vm2  ;;  %vm614_vm9 = vweird.f32 %v595_v8  ;;  %vm634_vm13 = vweird.f32 %v4839_v9 }
 0x180   : > { %v600_v12 = vmul.f32 %v4169_v7, %v599_v11  ;;  %4174 = vrsqrt.f32 %v4839_v9  ;;  %vm880_vm5 = vcmask 1047556   ;;  %vm2532_vm6 = vcmask 130048  }
 0x181   : > { %v621_v23 = vmul.f32 0.5, %v620_v13 }
 0x182   : > { %v601_v14 = vmul.f32 0.5, %v600_v12  ;;  %v674_v15 = vpop.xlane.xlu1 %673 }
 0x183   : > { %v678_v16 = vmul.f32 %v674_v15, %v4789_v18  ;;  %v4858_v18 = vld [vmem:[%s6615_s4] ss:$0 sm:$0xff]  ;;  %v622_v34 = vsub.f32 1.5, %v621_v23 }
 0x184   : > { %v4847_v17 = vpop.eup %4170  ;;  %v602_v19 = vsub.f32 1.5, %v601_v14 }
 0x185   : > { %v4173_v20 = vpop.eup %4172  ;;  %v680_v21 = vadd.f32 1e-05, %v678_v16  ;;  %v693_v28 = vmul.f32 %v4847_v17, %v4837_v5  ;;  %v623_v45 = vmul.f32 %v4835_v4, %v622_v34  ;;  %vm699_vm12 = vweird.f32 %v4847_v17 }
 0x186   : > { %v4849_v22 = vpop.eup %4174  ;;  %v603_v26 = vmul.f32 %v4169_v7, %v602_v19  ;;  %v609_v27 = vmul.f32 %v4173_v20, %v595_v8  ;;  %vm615_vm7 = vweird.f32 %v4173_v20  ;;  %vm4885_vm1 = vmor %vm698_vm11, %vm699_vm12 }
 0x187   : > { %v629_v29 = vmul.f32 %v4849_v22, %v4839_v9  ;;  %4176 = vrsqrt.f32 %v680_v21  ;;  %v694_v40 = vmul.f32 %v4847_v17, %v693_v28  ;;  %vm616_vm10 = vmor %vm614_vm9, %vm615_vm7  ;;  %v627_v54 = vsel %vm4870_vm8, %v4835_v4, %v623_v45  ;;  %v4158_v4 = vld [vmem:[%s6617_s6] ss:$0 sm:$0xff] }
 0x188   : > { %v607_v30 = vsel %vm606_vm4, %v4169_v7, %v603_v26  ;;  %v610_v31 = vmul.f32 %v4173_v20, %v609_v27  ;;  %vm635_vm14 = vweird.f32 %v4849_v22  ;;  %v640_v60 = vmul.f32 %v627_v54, %v4793_v24  ;;  %v4159_v7 = vld [vmem:[%s6618_s7] ss:$0 sm:$0xff] }
 0x189   : > { %v638_v32 = vmul.f32 %v607_v30, %v4795_v25  ;;  %v630_v36 = vmul.f32 %v4849_v22, %v629_v29  ;;  %v695_v49 = vmul.f32 0.5, %v694_v40  ;;  %vm636_vm2 = vmor %vm634_vm13, %vm635_vm14  ;;  %vm688_vm3 = vweird.f32 %v680_v21 }
 0x18a   : > { %v611_v35 = vmul.f32 0.5, %v610_v31  ;;  %v647_v2 = vmul.f32 %v4858_v18, %v640_v60  ;;  %v4505_v27 = vmov 1983009808   ;;  %vm2973_vm7 = vcmask 64512  }
 0x18b   : > { %v645_v41 = vmul.f32 %v4858_v18, %v638_v32  ;;  %v631_v48 = vmul.f32 0.5, %v630_v36  ;;  %v696_v56 = vsub.f32 1.5, %v695_v49  ;;  %v885_v28 = vunpack.c.l.s4 %v4505_v27 }
 0x18c   : > { %v612_v43 = vsub.f32 1.5, %v611_v35  ;;  %v654_v8 = vadd.f32 %v4157_v33, %v647_v2  ;;  %v4506_v36 = vmov 1934713408  }
 0x18d   : > { %v652_v44 = vadd.f32 %v4157_v33, %v645_v41  ;;  %v4177_v25 = vpop.eup %4176  ;;  %v632_v55 = vsub.f32 1.5, %v631_v48  ;;  %v697_v63 = vmul.f32 %v4847_v17, %v696_v56  ;;  %v5017_v31 = vunpack.c.0.s8 %v885_v28 }
 0x18e   : > { %v613_v47 = vmul.f32 %v4173_v20, %v612_v43  ;;  %v683_v50 = vmul.f32 %v4177_v25, %v680_v21  ;;  %vm689_vm15 = vweird.f32 %v4177_v25  ;;  %v933_v40 = vunpack.c.l.s4 %v4506_v36 }
 0x18f   : > { %3980 = vmatmul.msk.f32.vlgmr.msra.gmra.mxu2 %vm546_vm0, %v652_v44  ;;  %v633_v62 = vmul.f32 %v4849_v22, %v632_v55  ;;  %vm690_vm4 = vmor %vm688_vm3, %vm689_vm15  ;;  %v701_v5 = vsel %vm4885_vm1, %v4847_v17, %v697_v63 }
 0x190   : > { %v617_v51 = vsel %vm616_vm10, %v4173_v20, %v613_v47  ;;  %v684_v52 = vmul.f32 %v4177_v25, %v683_v50  ;;  %v703_v11 = vmul.f32 %v701_v5, %v4807_v37  ;;  %v5034_v50 = vunpack.c.0.s8 %v933_v40 }
 0x191   : > { %v639_v53 = vmul.f32 %v617_v51, %v4811_v39  ;;  %v637_v3 = vsel %vm636_vm2, %v4849_v22, %v633_v62 }
 0x192   : > { %v685_v57 = vmul.f32 0.5, %v684_v52  ;;  %v641_v9 = vmul.f32 %v637_v3, %v4809_v38  ;;  %v708_v12 = vmul.f32 %v4158_v4, %v703_v11 }
 0x193   : > { %v646_v58 = vmul.f32 %v4858_v18, %v639_v53 }
 0x194   : > { %v686_v59 = vsub.f32 1.5, %v685_v57  ;;  %v713_v14 = vadd.f32 %v4159_v7, %v708_v12 }
 0x195   : > { %v653_v39 = vadd.f32 %v4157_v33, %v646_v58 }
 0x196   : > { %v687_v0 = vmul.f32 %v4177_v25, %v686_v59 }
 0x197   : > { %3981 = vmatmul.msk.f32.gmra.mxu2 %vm546_vm0, %v653_v39 }
 0x198   : > { %v691_v1 = vsel %vm690_vm4, %v4177_v25, %v687_v0 }
 0x199   : > { %v702_v24 = vmul.f32 %v691_v1, %v4817_v42  ;;  %v648_v42 = vmul.f32 %v4858_v18, %v641_v9 }
 0x19b   : > { %v707_v6 = vmul.f32 %v4158_v4, %v702_v24  ;;  %v655_v13 = vadd.f32 %v4157_v33, %v648_v42 }
 0x19d   : > { %v712_v10 = vadd.f32 %v4159_v7, %v707_v6 }
 0x19f   : > { %3982 = vmatmul.msk.f32.gmra.mxu2 %vm546_vm0, %v654_v8  ;;  %3976 = vmatmul.msk.f32.vlgmr.msra.gmra.mxu0 %vm546_vm0, %v712_v10 }
 0x1a0   : > { %3978 = vmatmul.msk.f32.vlgmr.msra.gmra.mxu1 %vm546_vm0, %v712_v10 }
 0x1a7   : > { %3983 = vmatmul.msk.f32.gmra.mxu2 %vm546_vm0, %v655_v13  ;;  %3977 = vmatmul.msk.f32.gmra.mxu0 %vm546_vm0, %v713_v14 }
 0x1a8   : > { %3979 = vmatmul.msk.f32.gmra.mxu1 %vm546_vm0, %v713_v14 }
 0x212   : > { %v4913_v38 = vpop.f32.mrf.mxu2 }
 0x213   : > { %1552 = vrot.lane.b32.xlu0 %v4913_v38, %s4498_s10  ;;  %v1638_v52 = vrot.slane %v4913_v38, 4 }
 0x21a   : > { %v4947_v17 = vpop.f32.mrf.mxu2 }
 0x21b   : > { %1612 = vrot.lane.b32.xlu0 %v4913_v38, %s4499_s26  ;;  %v1750_v3 = vrot.slane %v4947_v17, 4 }
 0x21c   : > { %v4927_v15 = vpop.f32.mrf.mxu0 }
 0x21d   : > { %v4919_v37 = vpop.f32.mrf.mxu1  ;;  %v882_v57 = vrot.slane %v4927_v15, 4 }
 0x21e   : > { %867 = vrot.lane.b32.xlu1 %v4919_v37, %s4500_s28  ;;  %861 = vrot.lane.b32.xlu2 %v4919_v37, %s4498_s10  ;;  %v994_v41 = vrot.slane %v4919_v37, 4 }
 0x222   : > { %v4963_v19 = vpop.f32.mrf.mxu2 }
 0x223   : > { %1624 = vrot.lane.b32.xlu0 %v4913_v38, %s4501_s27  ;;  %v1862_v42 = vrot.slane %v4963_v19, 4 }
 0x224   : > { %v5007_v23 = vpop.f32.mrf.mxu0 }
 0x225   : > { %v4933_v16 = vpop.f32.mrf.mxu1 }
 0x226   : > { %873 = vrot.lane.b32.xlu2 %v4919_v37, %s4502_s24  ;;  %829 = vrot.lane.b32.xlu1 %v4927_v15, %s4502_s24 }
 0x22a   : > { %v4981_v20 = vpop.f32.mrf.mxu2 }
 0x22b   : > { %863 = vrot.lane.b32.xlu0 %v4933_v16, %s4498_s10 }
 0x22e   : > { %823 = vrot.lane.b32.xlu2 %v4927_v15, %s4500_s28  ;;  %1588 = vrot.lane.b32.xlu1 %v4913_v38, %s4503_s29 }
 0x233   : > { %875 = vrot.lane.b32.xlu0 %v4933_v16, %s4502_s24 }
 0x236   : > { %1600 = vrot.lane.b32.xlu1 %v4913_v38, %s4504_s21  ;;  %1564 = vrot.lane.b32.xlu2 %v4913_v38, %s4500_s28 }
 0x23b   : > { %1554 = vrot.lane.b32.xlu0 %v4947_v17, %s4498_s10 }
 0x23e   : > { %1576 = vrot.lane.b32.xlu2 %v4913_v38, %s4502_s24  ;;  %1566 = vrot.lane.b32.xlu1 %v4947_v17, %s4500_s28 }
 0x243   : > { %1578 = vrot.lane.b32.xlu0 %v4947_v17, %s4502_s24 }
 0x246   : > { %869 = vrot.lane.b32.xlu2 %v4933_v16, %s4500_s28  ;;  %1614 = vrot.lane.b32.xlu1 %v4947_v17, %s4499_s26 }
 0x24b   : > { %1626 = vrot.lane.b32.xlu0 %v4947_v17, %s4501_s27 }
 0x24e   : > { %1590 = vrot.lane.b32.xlu2 %v4947_v17, %s4503_s29  ;;  %1556 = vrot.lane.b32.xlu1 %v4963_v19, %s4498_s10 }
 0x253   : > { %1568 = vrot.lane.b32.xlu0 %v4963_v19, %s4500_s28 }
 0x256   : > { %1602 = vrot.lane.b32.xlu2 %v4947_v17, %s4504_s21  ;;  %1616 = vrot.lane.b32.xlu1 %v4963_v19, %s4499_s26 }
 0x25b   : > { %1580 = vrot.lane.b32.xlu0 %v4963_v19, %s4502_s24 }
 0x25e   : > { %1592 = vrot.lane.b32.xlu2 %v4963_v19, %s4503_s29  ;;  %1628 = vrot.lane.b32.xlu1 %v4963_v19, %s4501_s27 }
 0x263   : > { %1558 = vrot.lane.b32.xlu0 %v4981_v20, %s4498_s10 }
 0x266   : > { %1604 = vrot.lane.b32.xlu2 %v4963_v19, %s4504_s21  ;;  %1594 = vrot.lane.b32.xlu1 %v4981_v20, %s4503_s29 }
 0x26b   : > { %1606 = vrot.lane.b32.xlu0 %v4981_v20, %s4504_s21 }
 0x26e   : > { %1582 = vrot.lane.b32.xlu1 %v4981_v20, %s4502_s24  ;;  %1570 = vrot.lane.b32.xlu2 %v4981_v20, %s4500_s28 }
 0x273   : > { %847 = vrot.lane.b32.xlu0 %v4927_v15, %s4499_s26 }
 0x276   : > { %1630 = vrot.lane.b32.xlu1 %v4981_v20, %s4501_s27  ;;  %1618 = vrot.lane.b32.xlu2 %v4981_v20, %s4499_s26 }
 0x278   : > { %v862_v21 = vpop.permute.xlu2 %861 }
 0x279   : > { %v1006_v30 = vrot.slane %v862_v21, 4 }
 0x27b   : > { %853 = vrot.lane.b32.xlu0 %v4927_v15, %s4501_s27 }
 0x27e   : > { %835 = vrot.lane.b32.xlu1 %v4927_v15, %s4503_s29  ;;  %817 = vrot.lane.b32.xlu2 %v4927_v15, %s4498_s10 }
 0x280   : > { %v874_v22 = vpop.permute.xlu2 %873 }
 0x281   : > { %v1004_v18 = vrot.slane %v874_v22, 4  ;;  %v1007_v32 = vsel %vm880_vm5, %v874_v22, %v1006_v30  ;;  %v1974_v22 = vrot.slane %v4981_v20, 4 }
 0x282   : > { %v1015_v35 = vperm.slane %v1007_v32, %v5017_v31 }
 0x283   : > { %831 = vrot.lane.b32.xlu0 %v5007_v23, %s4502_s24  ;;  %v1005_v33 = vsel %vm880_vm5, %v1004_v18, %v862_v21 }
 0x284   : > { %v1011_v43 = vperm.slane %v1005_v33, %v5017_v31  ;;  %v1028_v49 = vrot.slane %v1015_v35, 4 }
 0x285   : > { %v5011_v26 = vpop.permute.xlu0 %1552 }
 0x286   : > { %825 = vrot.lane.b32.xlu1 %v5007_v23, %s4500_s28  ;;  %841 = vrot.lane.b32.xlu2 %v4927_v15, %s4504_s21  ;;  %v1016_v53 = vrot.slane %v1011_v43, 4  ;;  %v1650_v0 = vrot.slane %v5011_v26, 4 }
 0x288   : > { %v824_v29 = vpop.permute.xlu2 %823 }
 0x289   : > { %v879_v54 = vrot.slane %v824_v29, 4  ;;  %v883_v1 = vsel %vm880_vm5, %v824_v29, %v882_v57 }
 0x28b   : > { %837 = vrot.lane.b32.xlu0 %v5007_v23, %s4503_s29  ;;  %v881_v24 = vsel %vm880_vm5, %v879_v54, %v4927_v15  ;;  %v5076_v15 = vperm.slane %v883_v1, %v5017_v31 }
 0x28d   : > { %v5023_v34 = vpop.permute.xlu0 %1612 }
 0x28e   : > { %819 = vrot.lane.b32.xlu1 %v5007_v23, %s4498_s10  ;;  %849 = vrot.lane.b32.xlu2 %v5007_v23, %s4499_s26  ;;  %s4426_s10 = scalar_lea.hbm %s6792_s19, 32 }
 0x290   : > { %v868_v44 = vpop.permute.xlu1 %867  ;;  %v1565_v25 = vpop.permute.xlu2 %1564 }
 0x291   : > { %v992_v45 = vrot.slane %v868_v44, 4  ;;  %v995_v46 = vsel %vm880_vm5, %v868_v44, %v994_v41  ;;  %v1636_v48 = vrot.slane %v1565_v25, 4  ;;  %v1639_v59 = vsel %vm880_vm5, %v1565_v25, %v1638_v52 }
 0x292   : > { %v1003_v47 = vperm.slane %v995_v46, %v5017_v31  ;;  %v1647_v6 = vperm.slane %v1639_v59, %v5017_v31 }
 0x293   : > { %v993_v51 = vsel %vm880_vm5, %v992_v45, %v4919_v37  ;;  %v1637_v63 = vsel %vm880_vm5, %v1636_v48, %v4913_v38  ;;  %v1162_v38 = vrot.slane %v4933_v16, 4  ;;  %v5073_v37 = vperm.slane %v881_v24, %v5017_v31 }
 0x294   : > { %v999_v55 = vperm.slane %v993_v51, %v5017_v31  ;;  %v1030_v56 = vrot.slane %v1003_v47, 4  ;;  %v1029_v58 = vsel %vm880_vm5, %v1028_v49, %v1003_v47  ;;  %v1643_v11 = vperm.slane %v1637_v63, %v5017_v31 }
 0x295   : > { %v5043_v39 = vpop.permute.xlu0 %1624  ;;  %v1035_v5 = vperm.slane %v1029_v58, %v5034_v50  ;;  %v1698_v28 = vrot.slane %v1647_v6, 4  ;;  %v1660_v47 = vrot.slane %v5023_v34, 4 }
 0x296   : > { %v1017_v60 = vsel %vm880_vm5, %v1016_v53, %v999_v55  ;;  %v1018_v61 = vrot.slane %v999_v55, 4  ;;  %v1031_v62 = vsel %vm880_vm5, %v1015_v35, %v1030_v56  ;;  %843 = vrot.lane.b32.xlu1 %v5007_v23, %s4504_s21  ;;  %855 = vrot.lane.b32.xlu2 %v5007_v23, %s4501_s27  ;;  %v1686_v32 = vrot.slane %v1643_v11, 4 }
 0x297   : > { %v1039_v2 = vperm.slane %v1031_v62, %v5034_v50  ;;  %v5065_v9 = vperm.slane %v1017_v60, %v5034_v50  ;;  %v1044_v27 = vrot.slane %v1035_v5, 4  ;;  %v1672_v49 = vrot.slane %v5043_v39, 4 }
 0x298   : > { %v1019_v4 = vsel %vm880_vm5, %v1011_v43, %v1018_v61  ;;  %v5062_v7 = vpop.permute.xlu1 %829  ;;  %v1577_v8 = vpop.permute.xlu2 %1576 }
 0x299   : > { %v1046_v10 = vrot.slane %v1039_v2, 4  ;;  %v1027_v12 = vperm.slane %v1019_v4, %v5034_v50  ;;  %v1648_v13 = vrot.slane %v1577_v8, 4  ;;  %v1651_v14 = vsel %vm880_vm5, %v1577_v8, %v1650_v0 }
 0x29a   : > { %v1659_v18 = vperm.slane %v1651_v14, %v5017_v31  ;;  %v1040_v30 = vrot.slane %v5065_v9, 4  ;;  %v1045_v48 = vsel %vm880_vm5, 0.0, %v1044_v27 }
 0x29b   : > { %v1047_v21 = vsel %vm880_vm5, 0.0, %v1046_v10  ;;  %v1649_v29 = vsel %vm880_vm5, %v1648_v13, %v5011_v26  ;;  %v5086_v40 = vrot.slane %v1027_v12, 4  ;;  %v5109_v59 = vsel %vm880_vm5, %v1046_v10, %v1035_v5 }
 0x29c   : > { %v1655_v33 = vperm.slane %v1649_v29, %v5017_v31  ;;  %v1344_v41 = vrot.slane %v1047_v21, 4  ;;  %v1696_v43 = vrot.slane %v1659_v18, 4  ;;  %v1699_v44 = vsel %vm880_vm5, %v1659_v18, %v1698_v28 }
 0x29d   : > { %v864_v35 = vpop.permute.xlu0 %863  ;;  %v5097_v54 = vsel %vm880_vm5, 0.0, %v1040_v30  ;;  %v5102_v57 = vperm.slane %v1699_v44, %v5034_v50  ;;  %v5106_v58 = vsel %vm880_vm5, 0.0, %v5086_v40 }
 0x29e   : > { %v1684_v45 = vrot.slane %v1655_v33, 4  ;;  %v1687_v46 = vsel %vm880_vm5, %v1655_v33, %v1686_v32  ;;  %v1697_v51 = vsel %vm880_vm5, %v1696_v43, %v1647_v6  ;;  %v1345_v60 = vsel %vm880_vm5, %v1344_v41, %v1045_v48 }
 0x29f   : > { %v5113_v61 = vperm.slane %v1687_v46, %v5034_v50  ;;  %v5116_v62 = vperm.slane %v1697_v51, %v5034_v50  ;;  %v1174_v24 = vrot.slane %v864_v35, 4  ;;  %v5126_v8 = vperm.slane %v1345_v60, %v5017_v31 }
 0x2a0   : > { %v1589_v52 = vpop.permute.xlu1 %1588  ;;  %v870_v53 = vpop.permute.xlu2 %869  ;;  %v1685_v56 = vsel %vm880_vm5, %v1684_v45, %v1643_v11  ;;  %v1746_v10 = vrot.slane %v5102_v57, 4 }
 0x2a1   : > { %v1661_v63 = vsel %vm880_vm5, %v1660_v47, %v1589_v52  ;;  %v1160_v0 = vrot.slane %v870_v53, 4  ;;  %v1163_v1 = vsel %vm880_vm5, %v870_v53, %v1162_v38  ;;  %v5121_v2 = vperm.slane %v1685_v56, %v5034_v50  ;;  %6688 = vst [vmem:[#allocation26_spill] sm:$0xff] %v5126_v8 }
 0x2a2   : > { %v1662_v4 = vrot.slane %v1589_v52, 4  ;;  %v1171_v5 = vperm.slane %v1163_v1, %v5017_v31  ;;  %v1667_v13 = vperm.slane %v1661_v63, %v5017_v31  ;;  %v1738_v27 = vrot.slane %v5113_v61, 4 }
 0x2a3   : > { %v1161_v11 = vsel %vm880_vm5, %v1160_v0, %v4933_v16  ;;  %v1742_v28 = vrot.slane %v5116_v62, 4  ;;  %v1734_v30 = vrot.slane %v5121_v2, 4 }
 0x2a4   : > { %v1167_v14 = vperm.slane %v1161_v11, %v5017_v31  ;;  %v1198_v29 = vrot.slane %v1171_v5, 4  ;;  %v1663_v16 = vsel %vm880_vm5, %v5023_v34, %v1662_v4  ;;  %v1710_v48 = vrot.slane %v1667_v13, 4 }
 0x2a5   : > { %v876_v12 = vpop.permute.xlu0 %875  ;;  %v1671_v34 = vperm.slane %v1663_v16, %v5017_v31 }
 0x2a6   : > { %v1172_v38 = vrot.slane %v876_v12, 4  ;;  %v1175_v21 = vsel %vm880_vm5, %v876_v12, %v1174_v24  ;;  %v1186_v32 = vrot.slane %v1167_v14, 4 }
 0x2a7   : > { %v1183_v18 = vperm.slane %v1175_v21, %v5017_v31 }
 0x2a8   : > { %v1173_v33 = vsel %vm880_vm5, %v1172_v38, %v864_v35  ;;  %v1601_v41 = vpop.permute.xlu1 %1600  ;;  %v5141_v43 = vpop.permute.xlu2 %1590 }
 0x2a9   : > { %v1179_v44 = vperm.slane %v1173_v33, %v5017_v31  ;;  %v1196_v45 = vrot.slane %v1183_v18, 4  ;;  %v1199_v46 = vsel %vm880_vm5, %v1183_v18, %v1198_v29  ;;  %v1673_v47 = vsel %vm880_vm5, %v1672_v49, %v1601_v41 }
 0x2aa   : > { %v1207_v51 = vperm.slane %v1199_v46, %v5034_v50  ;;  %v1674_v52 = vrot.slane %v1601_v41, 4  ;;  %v1679_v53 = vperm.slane %v1673_v47, %v5017_v31  ;;  %v1722_v33 = vrot.slane %v1671_v34, 4 }
 0x2ab   : > { %v1184_v56 = vrot.slane %v1179_v44, 4  ;;  %v1187_v35 = vsel %vm880_vm5, %v1179_v44, %v1186_v32  ;;  %v1197_v60 = vsel %vm880_vm5, %v1196_v45, %v1171_v5  ;;  %v1774_v45 = vrot.slane %v5141_v43, 4 }
 0x2ac   : > { %v1195_v63 = vperm.slane %v1187_v35, %v5034_v50  ;;  %v1203_v0 = vperm.slane %v1197_v60, %v5034_v50  ;;  %v1214_v1 = vrot.slane %v1207_v51, 4  ;;  %v1675_v49 = vsel %vm880_vm5, %v5043_v39, %v1674_v52 }
 0x2ad   : > { %v1185_v24 = vsel %vm880_vm5, %v1184_v56, %v1167_v14  ;;  %v1683_v4 = vperm.slane %v1675_v49, %v5017_v31  ;;  %v1708_v11 = vrot.slane %v1679_v53, 4  ;;  %v1711_v12 = vsel %vm880_vm5, %v1679_v53, %v1710_v48  ;;  %v1555_v38 = vpop.permute.xlu0 %1554 }
 0x2ae   : > { %v5159_v21 = vperm.slane %v1185_v24, %v5034_v50  ;;  %v5161_v5 = vrot.slane %v1195_v63, 4  ;;  %v1212_v29 = vrot.slane %v1203_v0, 4  ;;  %v1215_v18 = vsel %vm880_vm5, 0.0, %v1214_v1 }
 0x2af   : > { %v1505_v16 = vsel %vm880_vm5, %v1214_v1, %v1203_v0  ;;  %v1510_v32 = vrot.slane %v1215_v18, 4  ;;  %v1709_v39 = vsel %vm880_vm5, %v1708_v11, %v1667_v13  ;;  %v1719_v14 = vperm.slane %v1711_v12, %v5034_v50 }
 0x2b0   : > { %v5169_v41 = vsel %vm880_vm5, 0.0, %v5161_v5  ;;  %v1213_v44 = vsel %vm880_vm5, 0.0, %v1212_v29  ;;  %v5173_v46 = vpop.permute.xlu2 %1602  ;;  %v1567_v47 = vpop.permute.xlu1 %1566  ;;  %v5176_v48 = vperm.slane %v1505_v16, %v5017_v31  ;;  %v1715_v13 = vperm.slane %v1709_v39, %v5034_v50 }
 0x2b1   : > { %v1511_v51 = vsel %vm880_vm5, %v1510_v32, %v1213_v44  ;;  %v1720_v52 = vrot.slane %v1683_v4, 4  ;;  %v1723_v56 = vsel %vm880_vm5, %v1683_v4, %v1722_v33  ;;  %v1736_v35 = vrot.slane %v1719_v14, 4 }
 0x2b2   : > { %v5185_v60 = vsel %vm880_vm5, %v5086_v40, %v5065_v9  ;;  %v1731_v1 = vperm.slane %v1723_v56, %v5034_v50  ;;  %v5191_v49 = vsel %vm880_vm5, %v1715_v13, %v1734_v30  ;;  %v5194_v24 = vperm.slane %v1511_v51, %v5017_v31 }
 0x2b3   : > { %v1721_v0 = vsel %vm880_vm5, %v1720_v52, %v1671_v34  ;;  %6689 = vst [vmem:[#allocation27_spill] sm:$0xff] %v5191_v49  ;;  %v5199_v11 = vsel %vm880_vm5, %v1736_v35, %v5113_v61  ;;  %v5202_v9 = vsel %vm880_vm5, %v1719_v14, %v1738_v27  ;;  %v1732_v34 = vrot.slane %v1715_v13, 4 }
 0x2b4   : > { %v1727_v4 = vperm.slane %v1721_v0, %v5034_v50  ;;  %6690 = vst [vmem:[#allocation28_spill] sm:$0xff] %v5199_v11  ;;  %v5208_v30 = vsel %vm880_vm5, %v1731_v1, %v1746_v10  ;;  %v1744_v18 = vrot.slane %v1731_v1, 4  ;;  %v2084_v16 = vrot.slane %v5199_v11, 4 }
 0x2b5   : > { %6691 = vst [vmem:[#allocation29_spill] sm:$0xff] %v5202_v9  ;;  %v1579_v29 = vpop.permute.xlu0 %1578  ;;  %v2096_v61 = vrot.slane %v5202_v9, 4  ;;  %v1762_v32 = vrot.slane %v1555_v38, 4  ;;  %v1748_v27 = vrot.slane %v1567_v47, 4  ;;  %v1751_v14 = vsel %vm880_vm5, %v1567_v47, %v1750_v3 }
 0x2b6   : > { %6692 = vst [vmem:[#allocation30_spill] sm:$0xff] %v5208_v30  ;;  %v1740_v39 = vrot.slane %v1727_v4, 4  ;;  %v1760_v33 = vrot.slane %v1579_v29, 4  ;;  %v1786_v10 = vrot.slane %v5173_v46, 4  ;;  %v1759_v51 = vperm.slane %v1751_v14, %v5017_v31 }
 0x2b7   : > { %v1763_v13 = vsel %vm880_vm5, %v1579_v29, %v1762_v32  ;;  %v1749_v35 = vsel %vm880_vm5, %v1748_v27, %v4947_v17  ;;  %v5231_v29 = vsel %vm880_vm5, %v1744_v18, %v5102_v57  ;;  %v5242_v57 = vsel %vm880_vm5, %v1732_v34, %v5121_v2 }
 0x2b8   : > { %v1615_v52 = vpop.permute.xlu1 %1614  ;;  %v5220_v56 = vpop.permute.xlu2 %1592  ;;  %v1761_v0 = vsel %vm880_vm5, %v1760_v33, %v1555_v38  ;;  %v1771_v1 = vperm.slane %v1763_v13, %v5017_v31  ;;  %v1755_v47 = vperm.slane %v1749_v35, %v5017_v31  ;;  %v1810_v12 = vrot.slane %v1759_v51, 4  ;;  %6693 = vst [vmem:[#allocation31_spill] sm:$0xff] %v5231_v29 }
 0x2b9   : > { %v1772_v3 = vrot.slane %v1615_v52, 4  ;;  %v1767_v40 = vperm.slane %v1761_v0, %v5017_v31  ;;  %v1775_v14 = vsel %vm880_vm5, %v1615_v52, %v1774_v45  ;;  %6694 = vst [vmem:[#allocation32_spill] sm:$0xff] %v5242_v57  ;;  %v2097_v53 = vsel %vm880_vm5, %v2096_v61, %v5191_v49 }
 0x2ba   : > { %v1808_v32 = vrot.slane %v1771_v1, 4  ;;  %v1783_v38 = vperm.slane %v1775_v14, %v5017_v31  ;;  %v1798_v27 = vrot.slane %v1755_v47, 4  ;;  %v1811_v13 = vsel %vm880_vm5, %v1771_v1, %v1810_v12 }
 0x2bb   : > { %v1773_v17 = vsel %vm880_vm5, %v1772_v3, %v5141_v43  ;;  %v1796_v33 = vrot.slane %v1767_v40, 4  ;;  %v1819_v45 = vperm.slane %v1811_v13, %v5034_v50  ;;  %v5246_v43 = vsel %vm880_vm5, %v1740_v39, %v5116_v62 }
 0x2bc   : > { %v1779_v35 = vperm.slane %v1773_v17, %v5017_v31  ;;  %v1809_v0 = vsel %vm880_vm5, %v1808_v32, %v1759_v51  ;;  %6695 = vst [vmem:[#allocation33_spill] sm:$0xff] %v5246_v43  ;;  %v1799_v3 = vsel %vm880_vm5, %v1767_v40, %v1798_v27  ;;  %v1886_v51 = vrot.slane %v5220_v56, 4 }
 0x2bd   : > { %v1627_v52 = vpop.permute.xlu0 %1626  ;;  %v1797_v18 = vsel %vm880_vm5, %v1796_v33, %v1755_v47  ;;  %v5251_v12 = vperm.slane %v1809_v0, %v5034_v50  ;;  %v5258_v14 = vperm.slane %v1799_v3, %v5034_v50  ;;  %v1834_v2 = vrot.slane %v1783_v38, 4 }
 0x2be   : > { %v5255_v1 = vperm.slane %v1797_v18, %v5034_v50  ;;  %v1784_v34 = vrot.slane %v1627_v52, 4  ;;  %v1858_v32 = vrot.slane %v1819_v45, 4  ;;  %v1822_v39 = vrot.slane %v1779_v35, 4 }
 0x2bf   : > { %v1787_v17 = vsel %vm880_vm5, %v1627_v52, %v1786_v10  ;;  %v5268_v27 = vsel %vm880_vm5, %v1727_v4, %v1742_v28  ;;  %v1854_v33 = vrot.slane %v5251_v12, 4  ;;  %v2085_v18 = vsel %vm880_vm5, %v2084_v16, %v5242_v57 }
 0x2c0   : > { %v5261_v47 = vpop.permute.xlu2 %1604  ;;  %v5263_v40 = vpop.permute.xlu1 %1556  ;;  %6696 = vst [vmem:[#allocation34_spill] sm:$0xff] %v5268_v27  ;;  %v1785_v13 = vsel %vm880_vm5, %v1784_v34, %v5173_v46  ;;  %v1795_v0 = vperm.slane %v1787_v17, %v5017_v31  ;;  %v1846_v10 = vrot.slane %v5255_v1, 4  ;;  %v1850_v52 = vrot.slane %v5258_v14, 4 }
 0x2c1   : > { %v1791_v3 = vperm.slane %v1785_v13, %v5017_v31  ;;  %v1898_v63 = vrot.slane %v5261_v47, 4  ;;  %v2108_v46 = vrot.slane %v5231_v29, 4  ;;  %v5295_v36 = vperm.slane %v2085_v18, %v5017_v31 }
 0x2c2   : > { %v1832_v28 = vrot.slane %v1795_v0, 4  ;;  %v1835_v4 = vsel %vm880_vm5, %v1795_v0, %v1834_v2  ;;  %v1874_v2 = vrot.slane %v5263_v40, 4 }
 0x2c3   : > { %v1820_v34 = vrot.slane %v1791_v3, 4  ;;  %v1823_v17 = vsel %vm880_vm5, %v1791_v3, %v1822_v39  ;;  %v1843_v16 = vperm.slane %v1835_v4, %v5034_v50 }
 0x2c4   : > { %v5290_v13 = vperm.slane %v1823_v17, %v5034_v50  ;;  %v1833_v62 = vsel %vm880_vm5, %v1832_v28, %v1783_v38  ;;  %v5306_v17 = vperm.slane %v2097_v53, %v5017_v31  ;;  %v5310_v38 = vsel %vm880_vm5, %v2108_v46, %v5246_v43 }
 0x2c5   : > { %v1569_v0 = vpop.permute.xlu0 %1568  ;;  %v1821_v39 = vsel %vm880_vm5, %v1820_v34, %v1779_v35  ;;  %v5299_v3 = vperm.slane %v1833_v62, %v5034_v50  ;;  %v1856_v4 = vrot.slane %v1843_v16, 4  ;;  %v5302_v6 = vsel %vm880_vm5, %v1843_v16, %v1858_v32 }
 0x2c6   : > { %v1827_v61 = vperm.slane %v1821_v39, %v5034_v50  ;;  %v1848_v35 = vrot.slane %v5290_v13, 4  ;;  %v5316_v62 = vsel %vm880_vm5, %v5290_v13, %v1850_v52  ;;  %v1860_v28 = vrot.slane %v1569_v0, 4 }
 0x2c7   : > { %6697 = vst [vmem:[#allocation35_spill] sm:$0xff] %v5316_v62  ;;  %v5320_v32 = vsel %vm880_vm5, %v5299_v3, %v1854_v33  ;;  %v5323_v16 = vsel %vm880_vm5, %v1856_v4, %v1819_v45  ;;  %v1863_v18 = vsel %vm880_vm5, %v1569_v0, %v1862_v42  ;;  %v1852_v46 = vrot.slane %v5299_v3, 4 }
 0x2c8   : > { %v1617_v34 = vpop.permute.xlu1 %1616  ;;  %v1571_v53 = vpop.permute.xlu2 %1570  ;;  %6698 = vst [vmem:[#allocation36_spill] sm:$0xff] %v5323_v16  ;;  %v2234_v39 = vrot.slane %v5320_v32, 4  ;;  %v1861_v52 = vsel %vm880_vm5, %v1860_v28, %v4963_v19  ;;  %v1871_v33 = vperm.slane %v1863_v18, %v5017_v31  ;;  %v1844_v44 = vrot.slane %v1827_v61, 4 }
 0x2c9   : > { %v1884_v13 = vrot.slane %v1617_v34, 4  ;;  %v1887_v26 = vsel %vm880_vm5, %v1617_v34, %v1886_v51  ;;  %v1867_v4 = vperm.slane %v1861_v52, %v5017_v31  ;;  %v1972_v55 = vrot.slane %v1571_v53, 4 }
 0x2ca   : > { %v2235_v45 = vsel %vm880_vm5, %v5302_v6, %v2234_v39  ;;  %v1895_v25 = vperm.slane %v1887_v26, %v5017_v31  ;;  %v1975_v19 = vsel %vm880_vm5, %v1571_v53, %v1974_v22  ;;  %v1922_v34 = vrot.slane %v1871_v33, 4 }
 0x2cb   : > { %v1885_v42 = vsel %vm880_vm5, %v1884_v13, %v5220_v56  ;;  %v5346_v0 = vperm.slane %v2235_v45, %v5017_v31  ;;  %v1973_v26 = vsel %vm880_vm5, %v1972_v55, %v4981_v20  ;;  %v1910_v52 = vrot.slane %v1867_v4, 4 }
 0x2cc   : > { %v1891_v18 = vperm.slane %v1885_v42, %v5017_v31  ;;  %v5352_v3 = vperm.slane %v1973_v26, %v5017_v31  ;;  %v1946_v22 = vrot.slane %v1895_v25, 4  ;;  %v5356_v53 = vperm.slane %v1975_v19, %v5017_v31 }
 0x2cd   : > { %6699 = vst [vmem:[#allocation37_spill] sm:$0xff] %v5346_v0  ;;  %v1581_v28 = vpop.permute.xlu0 %1580  ;;  %v5363_v55 = vsel %vm880_vm5, %v1844_v44, %v5255_v1  ;;  %v5381_v1 = vsel %vm880_vm5, %v1848_v35, %v5258_v14 }
 0x2ce   : > { %v1872_v56 = vrot.slane %v1581_v28, 4  ;;  %v1875_v39 = vsel %vm880_vm5, %v1581_v28, %v1874_v2  ;;  %v1934_v45 = vrot.slane %v1891_v18, 4  ;;  %6700 = vst [vmem:[#allocation38_spill] sm:$0xff] %v5363_v55  ;;  %v5368_v2 = vsel %vm880_vm5, %v1827_v61, %v1846_v10 }
 0x2cf   : > { %v1883_v13 = vperm.slane %v1875_v39, %v5017_v31  ;;  %6701 = vst [vmem:[#allocation39_spill] sm:$0xff] %v5368_v2 }
 0x2d0   : > { %v1873_v42 = vsel %vm880_vm5, %v1872_v56, %v5263_v40  ;;  %v1629_v20 = vpop.permute.xlu1 %1628  ;;  %v5377_v56 = vpop.permute.xlu2 %1618  ;;  %6702 = vst [vmem:[#allocation40_spill] sm:$0xff] %v5381_v1 }
 0x2d1   : > { %v1879_v26 = vperm.slane %v1873_v42, %v5017_v31  ;;  %v1920_v19 = vrot.slane %v1883_v13, 4  ;;  %v1923_v28 = vsel %vm880_vm5, %v1883_v13, %v1922_v34  ;;  %v1896_v39 = vrot.slane %v1629_v20, 4 }
 0x2d2   : > { %v1931_v40 = vperm.slane %v1923_v28, %v5034_v50  ;;  %v1899_v44 = vsel %vm880_vm5, %v1629_v20, %v1898_v63 }
 0x2d3   : > { %v1908_v10 = vrot.slane %v1879_v26, 4  ;;  %v1911_v61 = vsel %vm880_vm5, %v1879_v26, %v1910_v52  ;;  %v1921_v34 = vsel %vm880_vm5, %v1920_v19, %v1871_v33  ;;  %v1897_v13 = vsel %vm880_vm5, %v1896_v39, %v5261_v47 }
 0x2d4   : > { %v5389_v28 = vperm.slane %v1911_v61, %v5034_v50  ;;  %v1927_v63 = vperm.slane %v1921_v34, %v5034_v50  ;;  %v1903_v20 = vperm.slane %v1897_v13, %v5017_v31  ;;  %v1907_v35 = vperm.slane %v1899_v44, %v5017_v31 }
 0x2d5   : > { %v1909_v14 = vsel %vm880_vm5, %v1908_v10, %v1867_v4  ;;  %v1996_v52 = vrot.slane %v5377_v56, 4  ;;  %v2196_v33 = vrot.slane %v5381_v1, 4  ;;  %v1970_v19 = vrot.slane %v1931_v40, 4  ;;  %v5401_v61 = vpop.permute.xlu0 %1558 }
 0x2d6   : > { %v5398_v26 = vperm.slane %v1909_v14, %v5034_v50  ;;  %v1962_v47 = vrot.slane %v5389_v28, 4  ;;  %v1932_v39 = vrot.slane %v1903_v20, 4  ;;  %v1966_v34 = vrot.slane %v1927_v63, 4 }
 0x2d7   : > { %v1935_v13 = vsel %vm880_vm5, %v1903_v20, %v1934_v45  ;;  %v1944_v51 = vrot.slane %v1907_v35, 4  ;;  %v1947_v4 = vsel %vm880_vm5, %v1907_v35, %v1946_v22  ;;  %v2197_v42 = vsel %vm880_vm5, %v2196_v33, %v5363_v55 }
 0x2d8   : > { %v1933_v44 = vsel %vm880_vm5, %v1932_v39, %v1891_v18  ;;  %v5407_v10 = vperm.slane %v1935_v13, %v5034_v50  ;;  %v1955_v14 = vperm.slane %v1947_v4, %v5034_v50  ;;  %v1595_v29 = vpop.permute.xlu1 %1594  ;;  %v5418_v45 = vsel %vm880_vm5, %v1852_v46, %v5251_v12 }
 0x2d9   : > { %v5413_v43 = vperm.slane %v1933_v44, %v5034_v50  ;;  %v1945_v9 = vsel %vm880_vm5, %v1944_v51, %v1895_v25  ;;  %6703 = vst [vmem:[#allocation41_spill] sm:$0xff] %v5418_v45  ;;  %v2208_v18 = vrot.slane %v5316_v62, 4  ;;  %v5432_v25 = vperm.slane %v2197_v42, %v5017_v31 }
 0x2da   : > { %v1951_v22 = vperm.slane %v1945_v9, %v5034_v50  ;;  %v5424_v20 = vsel %vm880_vm5, %v5407_v10, %v1962_v47  ;;  %v1968_v35 = vrot.slane %v1955_v14, 4  ;;  %v5429_v13 = vsel %vm880_vm5, %v1955_v14, %v1970_v19  ;;  %v818_v14 = vpop.permute.xlu2 %817 }
 0x2db   : > { %v2209_v12 = vsel %vm880_vm5, %v2208_v18, %v5368_v2  ;;  %v1998_v4 = vrot.slane %v1595_v29, 4 }
 0x2dc   : > { %v1964_v46 = vrot.slane %v1951_v22, 4  ;;  %v5438_v51 = vsel %vm880_vm5, %v1951_v22, %v1966_v34  ;;  %v5441_v47 = vsel %vm880_vm5, %v1968_v35, %v1931_v40  ;;  %v5447_v42 = vperm.slane %v2209_v12, %v5017_v31 }
 0x2dd   : > { %v6704_v34 = vrot.slane %v5323_v16, 4  ;;  %v6705_v40 = vrot.slane %v5302_v6, 4  ;;  %v2132_v6 = vrot.slane %v5306_v17, 4 }
 0x2de   : > { %v2244_v18 = vrot.slane %v5447_v42, 4  ;;  %v5468_v19 = vsel %vm880_vm5, %v1964_v46, %v1927_v63 }
 0x2df   : > { %v2221_v22 = vsel %vm880_vm5, %v6704_v34, %v5418_v45  ;;  %v2233_v35 = vsel %vm880_vm5, %v6705_v40, %v5320_v32  ;;  %v6706_v32 = vrot.slane %v5208_v30, 4  ;;  %v5487_v34 = vperm.slane %v5310_v38, %v5017_v31 }
 0x2e0   : > { %v5461_v44 = vperm.slane %v2221_v22, %v5017_v31  ;;  %v5464_v12 = vperm.slane %v2233_v35, %v5017_v31  ;;  %v5476_v22 = vpop.permute.xlu0 %1606  ;;  %v5478_v33 = vpop.permute.xlu1 %1582  ;;  %v2245_v35 = vsel %vm880_vm5, %v2244_v18, %v5432_v25  ;;  %v1997_v18 = vsel %vm880_vm5, %v1996_v52, %v1595_v29 }
 0x2e1   : > { %v2121_v40 = vsel %vm880_vm5, %v6706_v32, %v5268_v27  ;;  %v2251_v46 = vperm.slane %v2245_v35, %v5034_v50  ;;  %v6707_v30 = vrot.slane %v5062_v7, 4  ;;  %v2133_v38 = vsel %vm880_vm5, %v2132_v6, %v5295_v36 }
 0x2e2   : > { %v2268_v9 = vrot.slane %v5464_v12, 4  ;;  %v5490_v32 = vperm.slane %v2121_v40, %v5017_v31  ;;  %v2139_v57 = vperm.slane %v2133_v38, %v5034_v50  ;;  %v1999_v52 = vsel %vm880_vm5, %v5377_v56, %v1998_v4 }
 0x2e3   : > { %v893_v63 = vsel %vm880_vm5, %v6707_v30, %v818_v14  ;;  %v2294_v49 = vrot.slane %v2251_v46, 4  ;;  %v894_v29 = vrot.slane %v818_v14, 4 }
 0x2e4   : > { %v2269_v39 = vsel %vm880_vm5, %v2268_v9, %v5461_v44  ;;  %v2156_v40 = vrot.slane %v5490_v32, 4  ;;  %v899_v11 = vperm.slane %v893_v63, %v5017_v31  ;;  %v2182_v56 = vrot.slane %v2139_v57, 4 }
 0x2e5   : > { %v2275_v35 = vperm.slane %v2269_v39, %v5034_v50  ;;  %v5511_v39 = vperm.slane %v1997_v18, %v5017_v31  ;;  %v895_v38 = vsel %vm880_vm5, %v5062_v7, %v894_v29  ;;  %v5525_v18 = vperm.slane %v5185_v60, %v5017_v31 }
 0x2e6   : > { %v2157_v30 = vsel %vm880_vm5, %v2156_v40, %v5487_v34  ;;  %v903_v14 = vperm.slane %v895_v38, %v5017_v31  ;;  %v6709_v7 = vrot.slane %v5073_v37, 4  ;;  %v6710_v29 = vrot.slane %v5076_v15, 4 }
 0x2e7   : > { %v2292_v9 = vrot.slane %v2275_v35, 4  ;;  %v2295_v0 = vsel %vm880_vm5, %v2275_v35, %v2294_v49  ;;  %v2163_v6 = vperm.slane %v2157_v30, %v5034_v50  ;;  %v5520_v49 = vperm.slane %v1999_v52, %v5017_v31  ;;  %6708 = vst [vmem:[#allocation42_spill] sm:$0xff] %v5525_v18 }
 0x2e8   : > { %3990 = vmatpush.xpose.msk.msrb.mxu0 %vm2532_vm6, %v2295_v0  ;;  %v928_v35 = vrot.slane %v899_v11, 4  ;;  %v931_v63 = vsel %vm880_vm5, %v899_v11, %v6709_v7  ;;  %v940_v52 = vrot.slane %v903_v14, 4  ;;  %v6711_v60 = vrot.slane %v5106_v58, 4  ;;  %v5542_v38 = vpop.permute.xlu0 %847  ;;  %v5554_v7 = vpop.permute.xlu2 %841 }
 0x2e9   : > { %v2293_v4 = vsel %vm880_vm5, %v2292_v9, %v2251_v46  ;;  %v2180_v0 = vrot.slane %v2163_v6, 4  ;;  %v2183_v40 = vsel %vm880_vm5, %v2163_v6, %v2182_v56  ;;  %v5533_v46 = vperm.slane %v931_v63, %v5034_v50 }
 0x2ea   : > { %3984 = vmatpush.xpose.msk.msra.mxu3 %vm2532_vm6, %v2293_v4  ;;  %v943_v9 = vsel %vm880_vm5, %v903_v14, %v6710_v29  ;;  %v1334_v30 = vsel %vm880_vm5, %v6711_v60, %v5097_v54  ;;  %v1631_v4 = vpop.permute.xlu1 %1630  ;;  %v929_v6 = vsel %vm880_vm5, %v928_v35, %v5073_v37  ;;  %v941_v63 = vsel %vm880_vm5, %v940_v52, %v5076_v15 }
 0x2eb   : > { %v5548_v56 = vperm.slane %v943_v9, %v5034_v50  ;;  %v5552_v14 = vperm.slane %v1334_v30, %v5017_v31  ;;  %v2181_v54 = vsel %vm880_vm5, %v2180_v0, %v2139_v57  ;;  %v5558_v58 = vperm.slane %v929_v6, %v5034_v50 }
 0x2ec   : > { %3991 = vmatpush.xpose.msk.msrb.mxu0 %vm2532_vm6, %v2183_v40  ;;  %v5564_v37 = vperm.slane %v5109_v59, %v5017_v31  ;;  %v2046_v35 = vrot.slane %v5511_v39, 4  ;;  %v2058_v40 = vrot.slane %v5520_v49, 4  ;;  %v5572_v0 = vperm.slane %v941_v63, %v5034_v50 }
 0x2ed   : > { %6712 = vst [vmem:[#allocation43_spill] sm:$0xff] %v5552_v14  ;;  %v1350_v57 = vrot.slane %v5552_v14, 4  ;;  %v1362_v59 = vrot.slane %v5126_v8, 4  ;;  %v1984_v30 = vrot.slane %v5478_v33, 4  ;;  %v6714_v6 = vrot.slane %v5401_v61, 4 }
 0x2ee   : > { %6713 = vst [vmem:[#allocation44_spill] sm:$0xff] %v5564_v37  ;;  %3985 = vmatpush.xpose.msk.msra.mxu3 %vm2532_vm6, %v2181_v54  ;;  %v2008_v27 = vrot.slane %v1631_v4, 4  ;;  %v6721_v14 = vrot.slane %v5007_v23, 4 }
 0x2ef   : > { %v1351_v60 = vsel %vm880_vm5, %v1350_v57, %v5525_v18  ;;  %v1987_v54 = vsel %vm880_vm5, %v5478_v33, %v6714_v6  ;;  %v1363_v11 = vsel %vm880_vm5, %v1362_v59, %v5564_v37  ;;  %v2010_v57 = vrot.slane %v5476_v22, 4 }
 0x2f0   : > { %v1357_v63 = vperm.slane %v1351_v60, %v5034_v50  ;;  %v1995_v9 = vperm.slane %v1987_v54, %v5017_v31  ;;  %v1369_v29 = vperm.slane %v1363_v11, %v5034_v50  ;;  %v1985_v52 = vsel %vm880_vm5, %v1984_v30, %v5401_v61 }
 0x2f1   : > { %v1991_v33 = vperm.slane %v1985_v52, %v5017_v31  ;;  %v6715_v60 = vrot.slane %v5356_v53, 4  ;;  %v2009_v11 = vsel %vm880_vm5, %v2008_v27, %v5476_v22  ;;  %v2011_v54 = vsel %vm880_vm5, %v1631_v4, %v2010_v57  ;;  %v5620_v22 = vpop.permute.xlu2 %849 }
 0x2f2   : > { %v1376_v16 = vrot.slane %v1357_v63, 4  ;;  %v2032_v6 = vrot.slane %v1995_v9, 4  ;;  %v1374_v45 = vrot.slane %v1369_v29, 4  ;;  %v6716_v30 = vrot.slane %v5352_v3, 4 }
 0x2f3   : > { %v2035_v59 = vsel %vm880_vm5, %v1995_v9, %v6715_v60  ;;  %v2020_v61 = vrot.slane %v1991_v33, 4  ;;  %v854_v9 = vpop.permute.xlu0 %853  ;;  %v836_v60 = vpop.permute.xlu1 %835  ;;  %v904_v4 = vrot.slane %v5542_v38, 4 }
 0x2f4   : > { %v2043_v15 = vperm.slane %v2035_v59, %v5034_v50  ;;  %v5603_v62 = vsel %vm880_vm5, %v1369_v29, %v1376_v16  ;;  %v2023_v52 = vsel %vm880_vm5, %v1991_v33, %v6716_v30  ;;  %v2033_v2 = vsel %vm880_vm5, %v2032_v6, %v5356_v53 }
 0x2f5   : > { %v5612_v1 = vsel %vm880_vm5, %v1374_v45, %v1357_v63  ;;  %3992 = vmatmul.msk.f32.vlgmr.msrb.gmra.mxu0 %vm2532_vm6, %v5603_v62  ;;  %v5617_v27 = vperm.slane %v2023_v52, %v5034_v50  ;;  %v918_v16 = vrot.slane %v5554_v7, 4  ;;  %v2021_v53 = vsel %vm880_vm5, %v2020_v61, %v5352_v3 }
 0x2f6   : > { %3986 = vmatmul.msk.f32.vlgmr.msra.gmra.mxu3 %vm2532_vm6, %v5612_v1  ;;  %v2015_v45 = vperm.slane %v2009_v11, %v5017_v31  ;;  %v2019_v29 = vperm.slane %v2011_v54, %v5017_v31  ;;  %v5630_v63 = vperm.slane %v2021_v53, %v5034_v50  ;;  %v2039_v57 = vperm.slane %v2033_v2, %v5034_v50 }
 0x2f7   : > { %v2082_v33 = vrot.slane %v2043_v15, 4  ;;  %v916_v6 = vrot.slane %v854_v9, 4  ;;  %v2074_v3 = vrot.slane %v5617_v27, 4  ;;  %v906_v8 = vrot.slane %v836_v60, 4 }
 0x2f8   : > { %v2044_v30 = vrot.slane %v2015_v45, 4  ;;  %v2047_v52 = vsel %vm880_vm5, %v2015_v45, %v2046_v35  ;;  %v2056_v59 = vrot.slane %v2019_v29, 4  ;;  %v2059_v55 = vsel %vm880_vm5, %v2019_v29, %v2058_v40 }
 0x2f9   : > { %v5637_v61 = vperm.slane %v2047_v52, %v5034_v50  ;;  %v2067_v11 = vperm.slane %v2059_v55, %v5034_v50  ;;  %v917_v54 = vsel %vm880_vm5, %v916_v6, %v5554_v7  ;;  %v919_v35 = vsel %vm880_vm5, %v854_v9, %v918_v16  ;;  %v5668_v37 = vpop.permute.xlu2 %855 }
 0x2fa   : > { %v2045_v2 = vsel %vm880_vm5, %v2044_v30, %v5511_v39  ;;  %v2057_v53 = vsel %vm880_vm5, %v2056_v59, %v5520_v49  ;;  %v923_v40 = vperm.slane %v917_v54, %v5017_v31  ;;  %v2078_v45 = vrot.slane %v2039_v57, 4 }
 0x2fb   : > { %v2051_v29 = vperm.slane %v2045_v2, %v5034_v50  ;;  %v2063_v52 = vperm.slane %v2057_v53, %v5034_v50  ;;  %v5652_v55 = vsel %vm880_vm5, %v5637_v61, %v2074_v3  ;;  %v2080_v7 = vrot.slane %v2067_v11, 4 }
 0x2fc   : > { %6717 = vst [vmem:[#allocation45_spill] sm:$0xff] %v5652_v55  ;;  %v5655_v6 = vsel %vm880_vm5, %v2067_v11, %v2082_v33  ;;  %v927_v49 = vperm.slane %v919_v35, %v5017_v31  ;;  %v2070_v9 = vrot.slane %v5630_v63, 4  ;;  %v2072_v59 = vrot.slane %v5637_v61, 4  ;;  %v826_v33 = vpop.permute.xlu1 %825 }
 0x2fd   : > { %v2076_v16 = vrot.slane %v2063_v52, 4  ;;  %v2079_v30 = vsel %vm880_vm5, %v2063_v52, %v2078_v45  ;;  %v5663_v54 = vsel %vm880_vm5, %v2080_v7, %v2043_v15  ;;  %v2432_v3 = vrot.slane %v5652_v55, 4  ;;  %v5678_v7 = vpop.permute.xlu0 %831 }
 0x2fe   : > { %6718 = vst [vmem:[#allocation46_spill] sm:$0xff] %v5663_v54  ;;  %v2458_v2 = vrot.slane %v2079_v30, 4  ;;  %v952_v53 = vrot.slane %v923_v40, 4  ;;  %v2068_v11 = vrot.slane %v2051_v29, 4  ;;  %v2456_v39 = vrot.slane %v5655_v6, 4 }
 0x2ff   : > { %v905_v35 = vsel %vm880_vm5, %v904_v4, %v836_v60  ;;  %v5671_v61 = vsel %vm880_vm5, %v2076_v16, %v2039_v57  ;;  %v964_v45 = vrot.slane %v927_v49, 4  ;;  %v2444_v55 = vrot.slane %v5663_v54, 4 }
 0x300   : > { %6719 = vst [vmem:[#allocation47_spill] sm:$0xff] %v5671_v61  ;;  %v5675_v15 = vsel %vm880_vm5, %v5655_v6, %v2458_v2  ;;  %v911_v52 = vperm.slane %v905_v35, %v5017_v31  ;;  %v907_v4 = vsel %vm880_vm5, %v5542_v38, %v906_v8  ;;  %v1048_v60 = vrot.slane %v826_v33, 4 }
 0x301   : > { %6720 = vst [vmem:[#allocation48_spill] sm:$0xff] %v5675_v15  ;;  %v1051_v57 = vsel %vm880_vm5, %v826_v33, %v6721_v14  ;;  %v915_v16 = vperm.slane %v907_v4, %v5017_v31  ;;  %v1060_v18 = vrot.slane %v5678_v7, 4  ;;  %v6722_v15 = vrot.slane %v5558_v58, 4 }
 0x302   : > { %v953_v6 = vsel %vm880_vm5, %v952_v53, %v911_v52  ;;  %v954_v2 = vrot.slane %v911_v52, 4  ;;  %v1049_v54 = vsel %vm880_vm5, %v1048_v60, %v5007_v23  ;;  %v5694_v8 = vperm.slane %v1051_v57, %v5017_v31 }
 0x303   : > { %v959_v35 = vperm.slane %v953_v6, %v5034_v50  ;;  %v965_v14 = vsel %vm880_vm5, %v964_v45, %v915_v16  ;;  %v966_v33 = vrot.slane %v915_v16, 4  ;;  %v5699_v53 = vperm.slane %v1049_v54, %v5017_v31 }
 0x304   : > { %v955_v38 = vsel %vm880_vm5, %v923_v40, %v954_v2  ;;  %v5703_v4 = vperm.slane %v965_v14, %v5034_v50  ;;  %v5711_v40 = vsel %vm880_vm5, %v2068_v11, %v5630_v63  ;;  %v5714_v54 = vsel %vm880_vm5, %v2051_v29, %v2070_v9 }
 0x305   : > { %v963_v52 = vperm.slane %v955_v38, %v5034_v50  ;;  %v976_v6 = vrot.slane %v959_v35, 4  ;;  %v979_v23 = vsel %vm880_vm5, %v959_v35, %v6722_v15  ;;  %v967_v60 = vsel %vm880_vm5, %v927_v49, %v966_v33  ;;  %6723 = vst [vmem:[#allocation49_spill] sm:$0xff] %v5711_v40 }
 0x306   : > { %v1230_v57 = vrot.slane %v979_v23, 4  ;;  %6724 = vst [vmem:[#allocation50_spill] sm:$0xff] %v5714_v54  ;;  %v5717_v45 = vperm.slane %v967_v60, %v5034_v50  ;;  %v6725_v15 = vrot.slane %v5533_v46, 4  ;;  %v1098_v63 = vrot.slane %v5699_v53, 4 }
 0x307   : > { %v5721_v16 = vsel %vm880_vm5, %v976_v6, %v5558_v58  ;;  %v980_v2 = vrot.slane %v963_v52, 4  ;;  %v1110_v29 = vrot.slane %v5694_v8, 4  ;;  %v5739_v14 = vsel %vm880_vm5, %v2072_v59, %v5617_v27 }
 0x308   : > { %v983_v49 = vsel %vm880_vm5, %v963_v52, %v6725_v15  ;;  %6726 = vst [vmem:[#allocation51_spill] sm:$0xff] %v5739_v14  ;;  %v6727_v52 = vrot.slane %v5548_v56, 4  ;;  %v2420_v60 = vrot.slane %v5739_v14, 4  ;;  %v820_v15 = vpop.permute.xlu1 %819  ;;  %v2433_v27 = vsel %vm880_vm5, %v2432_v3, %v5714_v54 }
 0x309   : > { %v1228_v38 = vrot.slane %v983_v49, 4  ;;  %v5731_v9 = vsel %vm880_vm5, %v980_v2, %v5533_v46  ;;  %v5735_v58 = vsel %vm880_vm5, %v983_v49, %v1230_v57  ;;  %v838_v2 = vpop.permute.xlu0 %837  ;;  %v2445_v59 = vsel %vm880_vm5, %v2444_v55, %v5671_v61 }
 0x30a   : > { %v5746_v6 = vsel %vm880_vm5, %v5717_v45, %v6727_v52  ;;  %v2457_v49 = vsel %vm880_vm5, %v2456_v39, %v2079_v30  ;;  %v2421_v52 = vsel %vm880_vm5, %v2420_v60, %v5711_v40  ;;  %v2439_v11 = vperm.slane %v2433_v27, %v5017_v31 }
 0x30b   : > { %v5751_v57 = vsel %vm880_vm5, %v1228_v38, %v979_v23  ;;  %v2451_v46 = vperm.slane %v2445_v59, %v5017_v31  ;;  %v2463_v33 = vperm.slane %v2457_v49, %v5017_v31  ;;  %v2427_v23 = vperm.slane %v2421_v52, %v5017_v31 }
 0x30c   : > { %v6728_v38 = vrot.slane %v5620_v22, 4  ;;  %v1074_v35 = vrot.slane %v838_v2, 4  ;;  %v1061_v55 = vsel %vm880_vm5, %v1060_v18, %v820_v15  ;;  %v2468_v14 = vrot.slane %v2439_v11, 4 }
 0x30d   : > { %v2492_v39 = vrot.slane %v2463_v33, 4  ;;  %v2494_v30 = vrot.slane %v2451_v46, 4  ;;  %v2470_v27 = vrot.slane %v2427_v23, 4  ;;  %v1062_v49 = vrot.slane %v820_v15, 4 }
 0x30e   : > { %v1073_v3 = vsel %vm880_vm5, %v6728_v38, %v838_v2  ;;  %v1075_v59 = vsel %vm880_vm5, %v5620_v22, %v1074_v35  ;;  %v1067_v52 = vperm.slane %v1061_v55, %v5017_v31  ;;  %v2469_v40 = vsel %vm880_vm5, %v2468_v14, %v2427_v23 }
 0x30f   : > { %v5769_v60 = vperm.slane %v1073_v3, %v5017_v31  ;;  %v2493_v38 = vsel %vm880_vm5, %v2492_v39, %v2451_v46  ;;  %v5777_v2 = vperm.slane %v1075_v59, %v5017_v31  ;;  %v2475_v54 = vperm.slane %v2469_v40, %v5034_v50 }
 0x310   : > { %v2499_v3 = vperm.slane %v2493_v38, %v5034_v50  ;;  %v2471_v61 = vsel %vm880_vm5, %v2439_v11, %v2470_v27  ;;  %v2495_v22 = vsel %vm880_vm5, %v2463_v33, %v2494_v30  ;;  %v1063_v46 = vsel %vm880_vm5, %v5678_v7, %v1062_v49 }
 0x311   : > { %v1122_v18 = vrot.slane %v5769_v60, 4  ;;  %v1134_v35 = vrot.slane %v5777_v2, 4  ;;  %v5786_v15 = vperm.slane %v2471_v61, %v5034_v50  ;;  %v5789_v14 = vperm.slane %v2495_v22, %v5034_v50 }
 0x312   : > { %v2516_v23 = vrot.slane %v2499_v3, 4  ;;  %v2518_v55 = vrot.slane %v2475_v54, 4  ;;  %v1071_v40 = vperm.slane %v1063_v46, %v5017_v31  ;;  %v1096_v39 = vrot.slane %v1067_v52, 4 }
 0x313   : > { %v2520_v11 = vrot.slane %v5789_v14, 4  ;;  %v1099_v33 = vsel %vm880_vm5, %v1067_v52, %v1098_v63  ;;  %v6729_v30 = vrot.slane %v5413_v43, 4  ;;  %v6730_v27 = vrot.slane %v5398_v26, 4 }
 0x314   : > { %v2517_v59 = vsel %vm880_vm5, %v2516_v23, %v2475_v54  ;;  %v2519_v49 = vsel %vm880_vm5, %v2499_v3, %v2518_v55  ;;  %v1097_v38 = vsel %vm880_vm5, %v1096_v39, %v5699_v53  ;;  %v5813_v63 = vperm.slane %v1099_v33, %v5034_v50 }
 0x315   : > { %v5800_v61 = vsel %vm880_vm5, %v6729_v30, %v5398_v26  ;;  %v5806_v7 = vsel %vm880_vm5, %v5413_v43, %v6730_v27  ;;  %3987 = vmatpush.xpose.msk.msrb.mxu3 %vm2532_vm6, %v2517_v59  ;;  %3993 = vmatpush.xpose.msk.msrb.mxu1 %vm2532_vm6, %v2519_v49  ;;  %v2521_v26 = vsel %vm880_vm5, %v2520_v11, %v5786_v15  ;;  %v1108_v52 = vrot.slane %v1071_v40, 4 }
 0x316   : > { %v5820_v43 = vperm.slane %v1097_v38, %v5034_v50  ;;  %v1111_v54 = vsel %vm880_vm5, %v1071_v40, %v1110_v29  ;;  %3999 = vmatpush.xpose.msk.msra.mxu0 %vm2532_vm6, %v2521_v26  ;;  %v1150_v3 = vrot.slane %v5813_v63, 4  ;;  %v6731_v22 = vrot.slane %v5407_v10, 4 }
 0x317   : > { %v5825_v53 = vperm.slane %v1111_v54, %v5034_v50  ;;  %v1109_v55 = vsel %vm880_vm5, %v1108_v52, %v5694_v8  ;;  %v6732_v39 = vrot.slane %v5424_v20, 4  ;;  %v6733_v27 = vrot.slane %v5441_v47, 4 }
 0x318   : > { %v5832_v46 = vsel %vm880_vm5, %v6731_v22, %v5389_v28  ;;  %v1146_v29 = vrot.slane %v5820_v43, 4  ;;  %v5844_v33 = vperm.slane %v1109_v55, %v5034_v50  ;;  %v6734_v49 = vrot.slane %v5429_v13, 4 }
 0x319   : > { %v2308_v40 = vrot.slane %v5832_v46, 4  ;;  %v2321_v11 = vsel %vm880_vm5, %v6732_v39, %v5806_v7  ;;  %v2333_v59 = vsel %vm880_vm5, %v6733_v27, %v5468_v19  ;;  %v6735_v26 = vrot.slane %v5432_v25, 4 }
 0x31a   : > { %v2327_v30 = vperm.slane %v2321_v11, %v5017_v31  ;;  %v2345_v38 = vsel %vm880_vm5, %v6734_v49, %v5438_v51  ;;  %v2339_v55 = vperm.slane %v2333_v59, %v5017_v31  ;;  %v6736_v27 = vrot.slane %v5461_v44, 4 }
 0x31b   : > { %v2309_v8 = vsel %vm880_vm5, %v2308_v40, %v5800_v61  ;;  %v2247_v52 = vsel %vm880_vm5, %v5447_v42, %v6735_v26  ;;  %v2351_v40 = vperm.slane %v2345_v38, %v5017_v31  ;;  %v6737_v25 = vrot.slane %v5159_v21, 4 }
 0x31c   : > { %v2315_v22 = vperm.slane %v2309_v8, %v5017_v31  ;;  %v2356_v39 = vrot.slane %v2327_v30, 4  ;;  %v2255_v11 = vperm.slane %v2247_v52, %v5034_v50  ;;  %v2271_v49 = vsel %vm880_vm5, %v5464_v12, %v6736_v27 }
 0x31d   : > { %v1209_v42 = vsel %vm880_vm5, 0.0, %v6737_v25  ;;  %v2380_v26 = vrot.slane %v2351_v40, 4  ;;  %v2279_v23 = vperm.slane %v2271_v49, %v5034_v50  ;;  %v2382_v10 = vrot.slane %v2339_v55, 4 }
 0x31e   : > { %v2358_v8 = vrot.slane %v2315_v22, 4  ;;  %v2357_v59 = vsel %vm880_vm5, %v2356_v39, %v2315_v22  ;;  %v1494_v38 = vsel %vm880_vm5, %v5161_v5, %v5159_v21  ;;  %v6738_v44 = vrot.slane %v5169_v41, 4 }
 0x31f   : > { %v1528_v12 = vrot.slane %v5194_v24, 4  ;;  %v2363_v27 = vperm.slane %v2357_v59, %v5034_v50  ;;  %v2381_v25 = vsel %vm880_vm5, %v2380_v26, %v2339_v55  ;;  %v2296_v54 = vrot.slane %v2279_v23, 4 }
 0x320   : > { %v1500_v52 = vsel %vm880_vm5, %v6738_v44, %v1209_v42  ;;  %v2359_v49 = vsel %vm880_vm5, %v2327_v30, %v2358_v8  ;;  %v2387_v28 = vperm.slane %v2381_v25, %v5034_v50  ;;  %v2383_v21 = vsel %vm880_vm5, %v2351_v40, %v2382_v10 }
 0x321   : > { %v5889_v22 = vperm.slane %v2359_v49, %v5034_v50  ;;  %v1498_v5 = vperm.slane %v1494_v38, %v5017_v31  ;;  %v2297_v41 = vsel %vm880_vm5, %v2296_v54, %v2255_v11  ;;  %v2406_v39 = vrot.slane %v2363_v27, 4 }
 0x322   : > { %v5895_v42 = vperm.slane %v2383_v21, %v5034_v50  ;;  %v1504_v55 = vperm.slane %v1500_v52, %v5017_v31  ;;  %v2404_v26 = vrot.slane %v2387_v28, 4  ;;  %v1529_v30 = vsel %vm880_vm5, %v1528_v12, %v5176_v48 }
 0x323   : > { %v1518_v59 = vrot.slane %v1498_v5, 4  ;;  %v2298_v8 = vrot.slane %v2255_v11, 4  ;;  %v2407_v44 = vsel %vm880_vm5, %v2387_v28, %v2406_v39  ;;  %v1535_v38 = vperm.slane %v1529_v30, %v5034_v50 }
 0x324   : > { %v2408_v10 = vrot.slane %v5895_v42, 4  ;;  %v1516_v40 = vrot.slane %v1504_v55, 4  ;;  %v2405_v54 = vsel %vm880_vm5, %v2404_v26, %v2363_v27  ;;  %3994 = vmatpush.xpose.msk.msrb.mxu1 %vm2532_vm6, %v2407_v44  ;;  %v2134_v52 = vrot.slane %v5295_v36, 4 }
 0x325   : > { %v2299_v25 = vsel %vm880_vm5, %v2279_v23, %v2298_v8  ;;  %v2158_v49 = vrot.slane %v5487_v34, 4  ;;  %3988 = vmatpush.xpose.msk.msrb.mxu3 %vm2532_vm6, %v2405_v54  ;;  %v1540_v12 = vrot.slane %v1535_v38, 4  ;;  %v1519_v27 = vsel %vm880_vm5, %v1504_v55, %v1518_v59 }
 0x326   : > { %v2409_v28 = vsel %vm880_vm5, %v2408_v10, %v5889_v22  ;;  %v1517_v11 = vsel %vm880_vm5, %v1516_v40, %v1498_v5  ;;  %v2135_v34 = vsel %vm880_vm5, %v5306_v17, %v2134_v52  ;;  %v2522_v21 = vrot.slane %v5786_v15, 4  ;;  %v844_v52 = vpop.permute.xlu1 %843 }
 0x327   : > { %4000 = vmatpush.xpose.msk.msra.mxu0 %vm2532_vm6, %v2409_v28  ;;  %v1523_v36 = vperm.slane %v1517_v11, %v5034_v50  ;;  %v2159_v23 = vsel %vm880_vm5, %v5490_v32, %v2158_v49  ;;  %v2143_v5 = vperm.slane %v2135_v34, %v5034_v50  ;;  %v5925_v55 = vperm.slane %v1519_v27, %v5034_v50 }
 0x328   : > { %4002 = vmatpush.xpose.msk.msra.mxu1 %vm2532_vm6, %v2299_v25  ;;  %v2167_v39 = vperm.slane %v2159_v23, %v5034_v50  ;;  %v2523_v15 = vsel %vm880_vm5, %v5789_v14, %v2522_v21  ;;  %v6742_v10 = vrot.slane %v5717_v45, 4  ;;  %v6743_v25 = vrot.slane %v5731_v9, 4 }
 0x329   : > { %3996 = vmatpush.xpose.msk.msra.mxu3 %vm2532_vm6, %v2297_v41  ;;  %v6739_v41 = vrot.slane %v5176_v48, 4  ;;  %v5932_v59 = vsel %vm880_vm5, %v1540_v12, %v1523_v36  ;;  %v1542_v17 = vrot.slane %v1523_v36, 4  ;;  %v6740_v48 = vrot.slane %v5703_v4, 4 }
 0x32a   : > { %3989 = vmatmul.msk.f32.vlgmr.msrb.gmra.mxu3 %vm2532_vm6, %v5932_v59  ;;  %v2184_v30 = vrot.slane %v2167_v39, 4  ;;  %v5957_v14 = vsel %vm880_vm5, %v6742_v10, %v5548_v56  ;;  %v6744_v34 = vrot.slane %v5668_v37, 4  ;;  %v1086_v21 = vrot.slane %v844_v52, 4 }
 0x32b   : > { %v1531_v26 = vsel %vm880_vm5, %v5194_v24, %v6739_v41  ;;  %v5945_v8 = vsel %vm880_vm5, %v6740_v48, %v5572_v0  ;;  %v6741_v24 = vrot.slane %v5572_v0, 4  ;;  %v5960_v40 = vsel %vm880_vm5, %v1535_v38, %v1542_v17 }
 0x32c   : > { %v5935_v32 = vperm.slane %v1531_v26, %v5034_v50  ;;  %v1217_v0 = vsel %vm880_vm5, %v6743_v25, %v5721_v16  ;;  %3995 = vmatmul.msk.f32.vlgmr.msrb.gmra.mxu1 %vm2532_vm6, %v5960_v40  ;;  %v2185_v56 = vsel %vm880_vm5, %v2184_v30, %v2143_v5  ;;  %v1240_v38 = vrot.slane %v5957_v14, 4 }
 0x32d   : > { %v5951_v44 = vsel %vm880_vm5, %v5703_v4, %v6741_v24  ;;  %v1235_v4 = vperm.slane %v5751_v57, %v5017_v31  ;;  %v1223_v45 = vperm.slane %v1217_v0, %v5017_v31  ;;  %v1242_v49 = vrot.slane %v5945_v8, 4  ;;  %3997 = vmatpush.xpose.msk.msra.mxu3 %vm2532_vm6, %v2185_v56 }
 0x32e   : > { %v1544_v54 = vrot.slane %v5935_v32, 4  ;;  %v1252_v57 = vrot.slane %v5746_v6, 4  ;;  %v1254_v11 = vrot.slane %v5951_v44, 4  ;;  %v1241_v27 = vsel %vm880_vm5, %v1240_v38, %v5945_v8 }
 0x32f   : > { %v1264_v12 = vrot.slane %v1235_v4, 4  ;;  %v1266_v36 = vrot.slane %v1223_v45, 4  ;;  %v1085_v23 = vsel %vm880_vm5, %v6744_v34, %v844_v52  ;;  %v1247_v41 = vperm.slane %v1241_v27, %v5017_v31 }
 0x330   : > { %v5978_v28 = vsel %vm880_vm5, %v1544_v54, %v5925_v55  ;;  %v1253_v26 = vsel %vm880_vm5, %v1252_v57, %v5951_v44  ;;  %v1091_v30 = vperm.slane %v1085_v23, %v5017_v31  ;;  %v1087_v24 = vsel %vm880_vm5, %v5668_v37, %v1086_v21  ;;  %v6748_v44 = vld [vmem:[#allocation42_spill] sm:$0xff] }
 0x331   : > { %4001 = vmatmul.msk.f32.vlgmr.msra.gmra.mxu0 %vm2532_vm6, %v5978_v28  ;;  %4005 = vmatpush.xpose.msk.msrb.mxu3 %vm2532_vm6, %v2523_v15  ;;  %v1265_v17 = vsel %vm880_vm5, %v1264_v12, %v1223_v45  ;;  %v1259_v15 = vperm.slane %v1253_v26, %v5017_v31  ;;  %v2186_v10 = vrot.slane %v2143_v5, 4  ;;  %v1290_v54 = vrot.slane %v1247_v41, 4 }
 0x332   : > { %v1271_v48 = vperm.slane %v1265_v17, %v5034_v50  ;;  %v1095_v25 = vperm.slane %v1087_v24, %v5017_v31  ;;  %v1120_v0 = vrot.slane %v1091_v30, 4  ;;  %v1123_v52 = vsel %vm880_vm5, %v1091_v30, %v1122_v18 }
 0x333   : > { %v1288_v56 = vrot.slane %v1259_v15, 4  ;;  %v1131_v38 = vperm.slane %v1123_v52, %v5034_v50  ;;  %v2187_v57 = vsel %vm880_vm5, %v2167_v39, %v2186_v10  ;;  %v1267_v5 = vsel %vm880_vm5, %v1235_v4, %v1266_v36 }
 0x334   : > { %v1314_v45 = vrot.slane %v1271_v48, 4  ;;  %v1121_v12 = vsel %vm880_vm5, %v1120_v0, %v5769_v60  ;;  %v1132_v27 = vrot.slane %v1095_v25, 4  ;;  %v1135_v37 = vsel %vm880_vm5, %v1095_v25, %v1134_v35  ;;  %4003 = vmatpush.xpose.msk.msra.mxu1 %vm2532_vm6, %v2187_v57 }
 0x335   : > { %v1289_v18 = vsel %vm880_vm5, %v1288_v56, %v1247_v41  ;;  %v1127_v34 = vperm.slane %v1121_v12, %v5034_v50  ;;  %v1143_v23 = vperm.slane %v1135_v37, %v5034_v50  ;;  %v1148_v21 = vrot.slane %v1131_v38, 4 }
 0x336   : > { %v1295_v39 = vperm.slane %v1289_v18, %v5034_v50  ;;  %v1133_v60 = vsel %vm880_vm5, %v1132_v27, %v5777_v2  ;;  %v1151_v35 = vsel %vm880_vm5, %v1131_v38, %v1150_v3  ;;  %v1275_v26 = vperm.slane %v1267_v5, %v5034_v50 }
 0x337   : > { %v6023_v4 = vperm.slane %v1133_v60, %v5034_v50  ;;  %v1144_v36 = vrot.slane %v1127_v34, 4  ;;  %v1147_v41 = vsel %vm880_vm5, %v1127_v34, %v1146_v29  ;;  %v6030_v17 = vsel %vm880_vm5, %v1148_v21, %v5813_v63 }
 0x338   : > { %v1312_v30 = vrot.slane %v1295_v39, 4  ;;  %v1315_v2 = vsel %vm880_vm5, %v1295_v39, %v1314_v45  ;;  %v1156_v24 = vrot.slane %v1143_v23, 4  ;;  %v6745_v3 = vrot.slane %v5825_v53, 4 }
 0x339   : > { %4012 = vmatpush.xpose.msk.msrb.mxu2 %vm2532_vm6, %v1315_v2  ;;  %v6041_v25 = vsel %vm880_vm5, %v1144_v36, %v5820_v43  ;;  %v1152_v29 = vrot.slane %v6023_v4, 4  ;;  %v6746_v63 = vrot.slane %v5844_v33, 4  ;;  %v1382_v52 = vrot.slane %v6030_v17, 4  ;;  %v6753_v2 = vld [vmem:[#allocation26_spill] sm:$0xff] }
 0x33a   : > { %v6036_v10 = vsel %vm880_vm5, %v1143_v23, %v6745_v3  ;;  %v6053_v56 = vsel %vm880_vm5, %v1156_v24, %v5825_v53  ;;  %v1384_v45 = vrot.slane %v6041_v25, 4  ;;  %v1394_v38 = vrot.slane %v1151_v35, 4 }
 0x33b   : > { %v6048_v0 = vsel %vm880_vm5, %v6023_v4, %v6746_v63  ;;  %v1396_v57 = vrot.slane %v1147_v41, 4  ;;  %v1406_v43 = vrot.slane %v6053_v56, 4  ;;  %v1418_v12 = vrot.slane %v6036_v10, 4 }
 0x33c   : > { %v1420_v27 = vrot.slane %v6048_v0, 4  ;;  %v1313_v37 = vsel %vm880_vm5, %v1312_v30, %v1271_v48  ;;  %v1395_v5 = vsel %vm880_vm5, %v1394_v38, %v1147_v41  ;;  %v1291_v53 = vsel %vm880_vm5, %v1259_v15, %v1290_v54  ;;  %4013 = vmatmul.msk.f32.vlgmr.msrb.gmra.mxu2 %vm2532_vm6, %v5603_v62  ;;  %v6751_v30 = vld [vmem:[#allocation44_spill] sm:$0xff] }
 0x33d   : > { %v1397_v18 = vsel %vm880_vm5, %v1151_v35, %v1396_v57  ;;  %4008 = vmatpush.xpose.msk.msrb.mxu0 %vm2532_vm6, %v1313_v37  ;;  %v1318_v34 = vrot.slane %v1275_v26, 4  ;;  %v6067_v23 = vperm.slane %v1395_v5, %v5017_v31  ;;  %v1299_v48 = vperm.slane %v1291_v53, %v5034_v50 }
 0x33e   : > { %v6070_v21 = vperm.slane %v1397_v18, %v5017_v31  ;;  %v2410_v39 = vrot.slane %v5889_v22, 4  ;;  %v6747_v60 = vrot.slane %v5721_v16, 4  ;;  %v1239_v15 = vperm.slane %v5735_v58, %v5017_v31 }
 0x33f   : > { %v1243_v62 = vsel %vm880_vm5, %v5957_v14, %v1242_v49  ;;  %v1255_v54 = vsel %vm880_vm5, %v5746_v6, %v1254_v11  ;;  %v1319_v22 = vsel %vm880_vm5, %v1299_v48, %v1318_v34  ;;  %v1316_v36 = vrot.slane %v1299_v48, 4  ;;  %v6750_v49 = vld [vmem:[#allocation43_spill] sm:$0xff] }
 0x340   : > { %v1219_v35 = vsel %vm880_vm5, %v5731_v9, %v6747_v60  ;;  %v2411_v16 = vsel %vm880_vm5, %v5895_v42, %v2410_v39  ;;  %4009 = vmatmul.msk.f32.vlgmr.msrb.gmra.mxu0 %vm2532_vm6, %v5612_v1  ;;  %4020 = vmatpush.xpose.msk.msra.mxu2 %vm2532_vm6, %v1319_v22  ;;  %v1251_v58 = vperm.slane %v1243_v62, %v5017_v31  ;;  %v1276_v6 = vrot.slane %v1239_v15, 4 }
 0x341   : > { %v1227_v9 = vperm.slane %v1219_v35, %v5017_v31  ;;  %4006 = vmatpush.xpose.msk.msrb.mxu3 %vm2532_vm6, %v2411_v16  ;;  %v1263_v8 = vperm.slane %v1255_v54, %v5017_v31  ;;  %v6749_v14 = vrot.slane %v6748_v44, 4  ;;  %v1317_v11 = vsel %vm880_vm5, %v1316_v36, %v1275_v26 }
 0x342   : > { %v6752_v1 = vrot.slane %v6751_v30, 4  ;;  %4016 = vmatpush.xpose.msk.msra.mxu0 %vm2532_vm6, %v1317_v11  ;;  %v1302_v37 = vrot.slane %v1251_v58, 4  ;;  %v1546_v53 = vrot.slane %v5925_v55, 4  ;;  %v1153_v36 = vsel %vm880_vm5, %v1152_v29, %v5844_v33 }
 0x343   : > { %v1353_v42 = vsel %vm880_vm5, %v6750_v49, %v6749_v14  ;;  %v1278_v3 = vrot.slane %v1227_v9, 4  ;;  %v1277_v63 = vsel %vm880_vm5, %v1276_v6, %v1227_v9  ;;  %v1300_v38 = vrot.slane %v1263_v8, 4 }
 0x344   : > { %v1361_v41 = vperm.slane %v1353_v42, %v5034_v50  ;;  %v1365_v24 = vsel %vm880_vm5, %v6753_v2, %v6752_v1  ;;  %v1283_v5 = vperm.slane %v1277_v63, %v5034_v50  ;;  %v1303_v60 = vsel %vm880_vm5, %v1263_v8, %v1302_v37 }
 0x345   : > { %v1373_v57 = vperm.slane %v1365_v24, %v5034_v50  ;;  %v1279_v26 = vsel %vm880_vm5, %v1239_v15, %v1278_v3  ;;  %v1301_v34 = vsel %vm880_vm5, %v1300_v38, %v1251_v58  ;;  %v1311_v22 = vperm.slane %v1303_v60, %v5034_v50 }
 0x346   : > { %v1380_v18 = vrot.slane %v1361_v41, 4  ;;  %v1287_v39 = vperm.slane %v1279_v26, %v5034_v50  ;;  %v1307_v35 = vperm.slane %v1301_v34, %v5034_v50  ;;  %v1322_v62 = vrot.slane %v1283_v5, 4 }
 0x347   : > { %v1378_v48 = vrot.slane %v1373_v57, 4  ;;  %v6125_v15 = vsel %vm880_vm5, %v5935_v32, %v1546_v53  ;;  %v1324_v8 = vrot.slane %v1311_v22, 4  ;;  %v1383_v6 = vsel %vm880_vm5, %v1382_v52, %v6041_v25 }
 0x348   : > { %v1381_v54 = vsel %vm880_vm5, %v1373_v57, %v1380_v18  ;;  %v1326_v55 = vrot.slane %v1287_v39, 4  ;;  %v1323_v9 = vsel %vm880_vm5, %v1307_v35, %v1322_v62  ;;  %v1320_v58 = vrot.slane %v1307_v35, 4 }
 0x349   : > { %v1379_v16 = vsel %vm880_vm5, %v1378_v48, %v1361_v41  ;;  %4004 = vmatmul.msk.f32.vlgmr.msra.gmra.mxu1 %vm2532_vm6, %v1381_v54  ;;  %4021 = vmatmul.msk.f32.vlgmr.msra.gmra.mxu2 %vm2532_vm6, %v1381_v54  ;;  %v1389_v4 = vperm.slane %v1383_v6, %v5017_v31  ;;  %v1407_v33 = vsel %vm880_vm5, %v1406_v43, %v1153_v36  ;;  %v1430_v42 = vrot.slane %v6067_v23, 4 }
 0x34a   : > { %3998 = vmatmul.msk.f32.vlgmr.msra.gmra.mxu3 %vm2532_vm6, %v1379_v16  ;;  %4017 = vmatmul.msk.f32.vlgmr.msra.gmra.mxu0 %vm2532_vm6, %v1379_v16  ;;  %v1327_v32 = vsel %vm880_vm5, %v1311_v22, %v1326_v55  ;;  %v1419_v29 = vsel %vm880_vm5, %v1418_v12, %v6048_v0  ;;  %v1321_v44 = vsel %vm880_vm5, %v1320_v58, %v1283_v5  ;;  %v1408_v41 = vrot.slane %v1153_v36, 4 }
 0x34b   : > { %3326 = vmatpush.msrb.mxu2 %v1323_v9  ;;  %v1325_v14 = vsel %vm880_vm5, %v1324_v8, %v1287_v39  ;;  %v1413_v52 = vperm.slane %v1407_v33, %v5017_v31  ;;  %v1425_v49 = vperm.slane %v1419_v29, %v5017_v31  ;;  %3280 = vmatpush.msrb.mxu0 %v1321_v44  ;;  %v1432_v11 = vrot.slane %v1389_v4, 4  ;;  %v6754_v8 = vld [vmem:[#allocation38_spill] sm:$0xff]  ;;  %v6757_v44 = vld [vmem:[#allocation39_spill] sm:$0xff] }
 0x34c   : > { %v1385_v43 = vsel %vm880_vm5, %v6030_v17, %v1384_v45  ;;  %v1421_v2 = vsel %vm880_vm5, %v6036_v10, %v1420_v27  ;;  %v1431_v24 = vsel %vm880_vm5, %v1430_v42, %v1389_v4  ;;  %v1409_v25 = vsel %vm880_vm5, %v6053_v56, %v1408_v41  ;;  %v6760_v41 = vld [vmem:[#allocation41_spill] sm:$0xff] }
 0x34d   : > { %3418 = vmatpush.msra.mxu2 %v1327_v32  ;;  %3372 = vmatpush.msra.mxu0 %v1325_v14  ;;  %v1454_v12 = vrot.slane %v1425_v49, 4  ;;  %v1456_v30 = vrot.slane %v1413_v52, 4  ;;  %v1393_v1 = vperm.slane %v1385_v43, %v5017_v31  ;;  %v1433_v3 = vsel %vm880_vm5, %v6067_v23, %v1432_v11  ;;  %v6756_v32 = vld [vmem:[#allocation40_spill] sm:$0xff] }
 0x34e   : > { %v1429_v17 = vperm.slane %v1421_v2, %v5017_v31  ;;  %v1437_v45 = vperm.slane %v1431_v24, %v5034_v50  ;;  %v1441_v38 = vperm.slane %v1433_v3, %v5034_v50  ;;  %v1417_v57 = vperm.slane %v1409_v25, %v5017_v31  ;;  %v6763_v25 = vld [vmem:[#allocation37_spill] sm:$0xff] }
 0x34f   : > { %v1455_v63 = vsel %vm880_vm5, %v1454_v12, %v1413_v52  ;;  %v1457_v0 = vsel %vm880_vm5, %v1425_v49, %v1456_v30  ;;  %v1442_v23 = vrot.slane %v6070_v21, 4  ;;  %v1444_v18 = vrot.slane %v1393_v1, 4  ;;  %v6759_v52 = vld [vmem:[#allocation35_spill] sm:$0xff]  ;;  %v6762_v30 = vld [vmem:[#allocation36_spill] sm:$0xff] }
 0x350   : > { %v1461_v10 = vperm.slane %v1455_v63, %v5034_v50  ;;  %v1465_v27 = vperm.slane %v1457_v0, %v5034_v50  ;;  %v1480_v56 = vrot.slane %v1437_v45, 4  ;;  %v1484_v37 = vrot.slane %v1441_v38, 4 }
 0x351   : > { %v1466_v5 = vrot.slane %v1429_v17, 4  ;;  %v1443_v34 = vsel %vm880_vm5, %v1442_v23, %v1393_v1  ;;  %v1468_v48 = vrot.slane %v1417_v57, 4  ;;  %v1445_v55 = vsel %vm880_vm5, %v6070_v21, %v1444_v18  ;;  %v6769_v23 = vld [vmem:[#allocation29_spill] sm:$0xff] }
 0x352   : > { %4007 = vmatmul.msk.f32.vlgmr.msrb.gmra.mxu3 %vm2532_vm6, %v6125_v15  ;;  %v1478_v26 = vrot.slane %v1461_v10, 4  ;;  %v1482_v53 = vrot.slane %v1465_v27, 4  ;;  %v1481_v39 = vsel %vm880_vm5, %v1461_v10, %v1480_v56  ;;  %v1485_v60 = vsel %vm880_vm5, %v1465_v27, %v1484_v37  ;;  %v6766_v10 = vld [vmem:[#allocation28_spill] sm:$0xff] }
 0x353   : > { %v1449_v35 = vperm.slane %v1443_v34, %v5034_v50  ;;  %v1467_v62 = vsel %vm880_vm5, %v1466_v5, %v1417_v57  ;;  %4014 = vmatpush.xpose.msk.msra.mxu3 %vm2532_vm6, %v1481_v39  ;;  %v1453_v9 = vperm.slane %v1445_v55, %v5034_v50  ;;  %v1469_v58 = vsel %vm880_vm5, %v1429_v17, %v1468_v48  ;;  %v6770_v34 = vld [vmem:[#allocation33_spill] sm:$0xff]  ;;  %v6772_v39 = vld [vmem:[#allocation31_spill] sm:$0xff] }
 0x354   : > { %v1479_v54 = vsel %vm880_vm5, %v1478_v26, %v1437_v45  ;;  %v1483_v22 = vsel %vm880_vm5, %v1482_v53, %v1441_v38  ;;  %v1473_v16 = vperm.slane %v1467_v62, %v5034_v50  ;;  %v6755_v6 = vrot.slane %v6754_v8, 4  ;;  %v6764_v38 = vld [vmem:[#allocation32_spill] sm:$0xff] }
 0x355   : > { %4010 = vmatpush.xpose.msk.msrb.mxu1 %vm2532_vm6, %v1479_v54  ;;  %v1488_v36 = vrot.slane %v1449_v35, 4  ;;  %v1477_v29 = vperm.slane %v1469_v58, %v5034_v50  ;;  %v6758_v14 = vrot.slane %v6757_v44, 4  ;;  %v1492_v11 = vrot.slane %v1453_v9, 4  ;;  %v6775_v54 = vld [vmem:[#allocation30_spill] sm:$0xff] }
 0x356   : > { %v2199_v4 = vsel %vm880_vm5, %v6756_v32, %v6755_v6  ;;  %v1486_v33 = vrot.slane %v1473_v16, 4  ;;  %v6761_v12 = vrot.slane %v6760_v41, 4  ;;  %v2280_v17 = vrot.slane %v6763_v25, 4 }
 0x357   : > { %4022 = vmatpush.xpose.msk.msrb.mxu3 %vm2532_vm6, %v1485_v60  ;;  %v2207_v21 = vperm.slane %v2199_v4, %v5017_v31  ;;  %v2211_v49 = vsel %vm880_vm5, %v6759_v52, %v6758_v14  ;;  %v1489_v42 = vsel %vm880_vm5, %v1473_v16, %v1488_v36  ;;  %v1490_v24 = vrot.slane %v1477_v29, 4 }
 0x358   : > { %v2219_v43 = vperm.slane %v2211_v49, %v5017_v31  ;;  %v2223_v1 = vsel %vm880_vm5, %v6762_v30, %v6761_v12  ;;  %4011 = vmatmul.msk.f32.vlgmr.msrb.gmra.mxu1 %vm2532_vm6, %v5932_v59  ;;  %v1487_v2 = vsel %vm880_vm5, %v1486_v33, %v1449_v35  ;;  %v1493_v45 = vsel %vm880_vm5, %v1477_v29, %v1492_v11  ;;  %v6767_v59 = vld [vmem:[#allocation27_spill] sm:$0xff]  ;;  %v6773_v35 = vld [vmem:[#allocation34_spill] sm:$0xff] }
 0x359   : > { %4018 = vmatpush.xpose.msk.msra.mxu1 %vm2532_vm6, %v1483_v22  ;;  %v2231_v3 = vperm.slane %v2223_v1, %v5017_v31  ;;  %v6765_v0 = vrot.slane %v6764_v38, 4  ;;  %v6768_v57 = vrot.slane %v6767_v59, 4  ;;  %v1491_v37 = vsel %vm880_vm5, %v1490_v24, %v1453_v9 }
 0x35a   : > { %4015 = vmatmul.msk.f32.vlgmr.msra.gmra.mxu3 %vm2532_vm6, %v5960_v40  ;;  %v2256_v63 = vrot.slane %v2219_v43, 4  ;;  %v6771_v48 = vrot.slane %v6770_v34, 4  ;;  %v6774_v62 = vrot.slane %v6773_v35, 4  ;;  %v2258_v8 = vrot.slane %v2207_v21, 4 }
 0x35b   : > { %v2087_v27 = vsel %vm880_vm5, %v6766_v10, %v6765_v0  ;;  %v2099_v56 = vsel %vm880_vm5, %v6769_v23, %v6768_v57  ;;  %3349 = vmatpush.msra.mxu3 %v1489_v42  ;;  %v2281_v5 = vsel %vm880_vm5, %v2280_v17, %v2231_v3  ;;  %v2282_v6 = vrot.slane %v2231_v3, 4 }
 0x35c   : > { %v2095_v40 = vperm.slane %v2087_v27, %v5017_v31  ;;  %v2107_v18 = vperm.slane %v2099_v56, %v5017_v31  ;;  %v2257_v26 = vsel %vm880_vm5, %v2256_v63, %v2207_v21  ;;  %v2287_v53 = vperm.slane %v2281_v5, %v5034_v50 }
 0x35d   : > { %3303 = vmatpush.msrb.mxu1 %v1487_v2  ;;  %v2111_v60 = vsel %vm880_vm5, %v6772_v39, %v6771_v48  ;;  %v2123_v22 = vsel %vm880_vm5, %v6775_v54, %v6774_v62  ;;  %v2263_v16 = vperm.slane %v2257_v26, %v5034_v50  ;;  %v2259_v49 = vsel %vm880_vm5, %v2219_v43, %v2258_v8 }
 0x35e   : > { %v2119_v55 = vperm.slane %v2111_v60, %v5017_v31  ;;  %v2131_v36 = vperm.slane %v2123_v22, %v5017_v31  ;;  %v2144_v9 = vrot.slane %v2107_v18, 4  ;;  %v2300_v58 = vrot.slane %v2287_v53, 4 }
 0x35f   : > { %v2146_v32 = vrot.slane %v2095_v40, 4  ;;  %v2302_v29 = vrot.slane %v2263_v16, 4  ;;  %v2283_v42 = vsel %vm880_vm5, %v6763_v25, %v2282_v6  ;;  %v2267_v41 = vperm.slane %v2259_v49, %v5034_v50  ;;  %v6781_v49 = vld [vmem:[#allocation49_spill] sm:$0xff] }
 0x360   : > { %v2145_v4 = vsel %vm880_vm5, %v2144_v9, %v2095_v40  ;;  %v2168_v33 = vrot.slane %v2131_v36, 4  ;;  %v2170_v44 = vrot.slane %v2119_v55, 4  ;;  %v6244_v14 = vsel %vm880_vm5, %v2300_v58, %v2263_v16  ;;  %4019 = vmatmul.msk.f32.vlgmr.msra.gmra.mxu1 %vm2532_vm6, %v5978_v28 }
 0x361   : > { %v2151_v52 = vperm.slane %v2145_v4, %v5034_v50  ;;  %v6254_v11 = vsel %vm880_vm5, %v2287_v53, %v2302_v29  ;;  %v2291_v12 = vperm.slane %v2283_v42, %v5034_v50  ;;  %3395 = vmatpush.msra.mxu1 %v1491_v37  ;;  %v2147_v1 = vsel %vm880_vm5, %v2107_v18, %v2146_v32 }
 0x362   : > { %v2169_v21 = vsel %vm880_vm5, %v2168_v33, %v2119_v55  ;;  %4023 = vmatmul.msk.f32.vlgmr.msrb.gmra.mxu3 %vm2532_vm6, %v6125_v15  ;;  %v2171_v28 = vsel %vm880_vm5, %v2131_v36, %v2170_v44  ;;  %v2306_v2 = vrot.slane %v2267_v41, 4  ;;  %v2155_v3 = vperm.slane %v2147_v1, %v5034_v50  ;;  %v6779_v33 = vld [vmem:[#allocation47_spill] sm:$0xff]  ;;  %v6780_v44 = vld [vmem:[#allocation50_spill] sm:$0xff] }
 0x363   : > { %v2175_v43 = vperm.slane %v2169_v21, %v5034_v50  ;;  %v2190_v30 = vrot.slane %v2151_v52, 4  ;;  %3441 = vmatpush.msrb.mxu3 %v1493_v45  ;;  %v2304_v24 = vrot.slane %v2291_v12, 4  ;;  %v2179_v25 = vperm.slane %v2171_v28, %v5034_v50  ;;  %v6782_v21 = vld [vmem:[#allocation48_spill] sm:$0xff] }
 0x364   : > { %v2334_v15 = vrot.slane %v5468_v19, 4  ;;  %v6776_v38 = vrot.slane %v5438_v51, 4  ;;  %v6274_v10 = vsel %vm880_vm5, %v2291_v12, %v2306_v2  ;;  %v2194_v27 = vrot.slane %v2155_v3, 4  ;;  %v6783_v12 = vld [vmem:[#allocation45_spill] sm:$0xff] }
 0x365   : > { %v2188_v17 = vrot.slane %v2175_v43, 4  ;;  %v6266_v63 = vsel %vm880_vm5, %v2175_v43, %v2190_v30  ;;  %v6277_v45 = vsel %vm880_vm5, %v2304_v24, %v2267_v41  ;;  %v2192_v59 = vrot.slane %v2179_v25, 4  ;;  %v6784_v30 = vld [vmem:[#allocation46_spill] sm:$0xff] }
 0x366   : > { %v2347_v0 = vsel %vm880_vm5, %v5429_v13, %v6776_v38  ;;  %v6777_v23 = vrot.slane %v5806_v7, 4  ;;  %v2335_v51 = vsel %vm880_vm5, %v5441_v47, %v2334_v15  ;;  %v6290_v56 = vsel %vm880_vm5, %v2179_v25, %v2194_v27 }
 0x367   : > { %v6280_v57 = vsel %vm880_vm5, %v2188_v17, %v2151_v52  ;;  %v2355_v13 = vperm.slane %v2347_v0, %v5017_v31  ;;  %v6293_v37 = vsel %vm880_vm5, %v2192_v59, %v2155_v3  ;;  %v6778_v5 = vrot.slane %v5800_v61, 4  ;;  %v6785_v17 = vld [vmem:[#allocation51_spill] sm:$0xff] }
 0x368   : > { %v2323_v19 = vsel %vm880_vm5, %v5424_v20, %v6777_v23  ;;  %v2343_v18 = vperm.slane %v2335_v51, %v5017_v31  ;;  %v2446_v29 = vrot.slane %v6779_v33, 4  ;;  %v2434_v52 = vrot.slane %v6780_v44, 4 }
 0x369   : > { %v2311_v40 = vsel %vm880_vm5, %v5832_v46, %v6778_v5  ;;  %v2331_v7 = vperm.slane %v2323_v19, %v5017_v31  ;;  %v2392_v47 = vrot.slane %v2355_v13, 4  ;;  %v2422_v42 = vrot.slane %v6781_v49, 4 }
 0x36a   : > { %v2319_v20 = vperm.slane %v2311_v40, %v5017_v31  ;;  %v2394_v48 = vrot.slane %v2343_v18, 4  ;;  %v2467_v41 = vperm.slane %v6782_v21, %v5017_v31  ;;  %v2435_v43 = vsel %vm880_vm5, %v6783_v12, %v2434_v52 }
 0x36b   : > { %v2368_v26 = vrot.slane %v2331_v7, 4  ;;  %v2393_v53 = vsel %vm880_vm5, %v2392_v47, %v2343_v18  ;;  %v2447_v1 = vsel %vm880_vm5, %v6784_v30, %v2446_v29  ;;  %v2443_v2 = vperm.slane %v2435_v43, %v5017_v31 }
 0x36c   : > { %v2370_v34 = vrot.slane %v2319_v20, 4  ;;  %v2399_v60 = vperm.slane %v2393_v53, %v5034_v50  ;;  %v2395_v35 = vsel %vm880_vm5, %v2355_v13, %v2394_v48  ;;  %v2455_v24 = vperm.slane %v2447_v1, %v5017_v31 }
 0x36d   : > { %v2369_v39 = vsel %vm880_vm5, %v2368_v26, %v2319_v20  ;;  %v2403_v22 = vperm.slane %v2395_v35, %v5034_v50  ;;  %v2504_v3 = vrot.slane %v2467_v41, 4  ;;  %v2423_v15 = vsel %vm880_vm5, %v6785_v17, %v2422_v42 }
 0x36e   : > { %v2375_v61 = vperm.slane %v2369_v39, %v5034_v50  ;;  %v2371_v46 = vsel %vm880_vm5, %v2331_v7, %v2370_v34  ;;  %v2412_v62 = vrot.slane %v2399_v60, 4  ;;  %v2431_v38 = vperm.slane %v2423_v15, %v5017_v31 }
 0x36f   : > { %v2379_v54 = vperm.slane %v2371_v46, %v5034_v50  ;;  %v2416_v9 = vrot.slane %v2403_v22, 4  ;;  %v2480_v0 = vrot.slane %v2443_v2, 4  ;;  %v2505_v27 = vsel %vm880_vm5, %v2504_v3, %v2455_v24 }
 0x370   : > { %v2414_v16 = vrot.slane %v2375_v61, 4  ;;  %v6311_v55 = vsel %vm880_vm5, %v2412_v62, %v2375_v61  ;;  %v2506_v59 = vrot.slane %v2455_v24, 4  ;;  %v2511_v23 = vperm.slane %v2505_v27, %v5034_v50 }
 0x371   : > { %v2418_v36 = vrot.slane %v2379_v54, 4  ;;  %v6320_v6 = vsel %vm880_vm5, %v2416_v9, %v2379_v54  ;;  %v2481_v19 = vsel %vm880_vm5, %v2480_v0, %v2431_v38  ;;  %v2482_v51 = vrot.slane %v2431_v38, 4 }
 0x372   : > { %v6314_v58 = vsel %vm880_vm5, %v2399_v60, %v2414_v16  ;;  %v6322_v32 = vpop.f32.mrf.mxu0  ;;  %v2507_v13 = vsel %vm880_vm5, %v2467_v41, %v2506_v59  ;;  %v2487_v5 = vperm.slane %v2481_v19, %v5034_v50  ;;  %v2524_v40 = vrot.slane %v2511_v23, 4 }
 0x373   : > { %v6317_v8 = vsel %vm880_vm5, %v2403_v22, %v2418_v36  ;;  %v2955_v4 = vsel %vm2532_vm6, %v6322_v32, -inf  ;;  %v2515_v7 = vperm.slane %v2507_v13, %v5034_v50  ;;  %v2483_v20 = vsel %vm880_vm5, %v2443_v2, %v2482_v51 }
 0x374   : > { %2956 = vmax.xlane.f32.xlu0 %v2955_v4  ;;  %v2526_v18 = vrot.slane %v2487_v5, 4  ;;  %v6352_v31 = vsel %vm880_vm5, %v2524_v40, %v2487_v5  ;;  %v2491_v47 = vperm.slane %v2483_v20, %v5034_v50 }
 0x375   : > { %v2528_v26 = vrot.slane %v2515_v7, 4 }
 0x376   : > { %v6356_v53 = vsel %vm880_vm5, %v2511_v23, %v2526_v18  ;;  %v2530_v34 = vrot.slane %v2491_v47, 4 }
 0x377   : > { %v6359_v48 = vsel %vm880_vm5, %v2528_v26, %v2491_v47  ;;  %v4160_v47 = vld [vmem:[%s4765_s1] ss:$0 sm:$0xff] }
 0x378   : > { %v6362_v39 = vsel %vm880_vm5, %v2515_v7, %v2530_v34 }
 0x379   : > { %v6335_v28 = vpop.f32.mrf.mxu3 }
 0x37a   : > { %v2949_v25 = vsel %vm2532_vm6, %v6335_v28, -inf }
 0x37b   : > { %2950 = vmax.xlane.f32.xlu1 %v2949_v25 }
 0x3a9   : > { %v6370_v50 = vpop.f32.mrf.mxu1 }
 0x3aa   : > { %v2958_v42 = vsel %vm2532_vm6, %v6370_v50, -inf }
 0x3ad   : > { %v6364_v60 = vpop.f32.mrf.mxu3 }
 0x3ae   : > { %v2952_v61 = vsel %vm2532_vm6, %v6364_v60, -inf  ;;  %v6368_v46 = vpop.f32.mrf.mxu0 }
 0x3af   : > { %2953 = vmax.xlane.f32.xlu1 %v2952_v61  ;;  %v2964_v21 = vsel %vm2532_vm6, %v6368_v46, -inf }
 0x3bd   : > { %v2785_v35 = vpop.f32.mrf.mxu0 }
 0x3be   : > { %v2974_v62 = vsel %vm2973_vm7, %v2785_v35, -inf }
 0x3bf   : > { %2975 = vmax.xlane.f32.xlu0 %v2974_v62  ;;  %v2831_v54 = vpop.f32.mrf.mxu2 }
 0x3c0   : > { %v2980_v22 = vsel %vm2973_vm7, %v2831_v54, -inf }
 0x3c1   : > { %2981 = vmax.xlane.f32.xlu2 %v2980_v22 }
 0x3c6   : > { %v6374_v16 = vpop.f32.mrf.mxu1 }
 0x3c7   : > { %v2967_v36 = vsel %vm2532_vm6, %v6374_v16, -inf  ;;  %v6378_v9 = vpop.f32.mrf.mxu0 }
 0x3c8   : > { %2968 = vmax.xlane.f32.xlu1 %v2967_v36  ;;  %v2986_v52 = vsel %vm2973_vm7, %v6378_v9, -inf }
 0x3cc   : > { %v6380_v4 = vpop.f32.mrf.mxu2 }
 0x3cd   : > { %v6382_v33 = vpop.f32.mrf.mxu3  ;;  %v2992_v29 = vsel %vm2973_vm7, %v6380_v4, -inf }
 0x3ce   : > { %v2961_v44 = vsel %vm2532_vm6, %v6382_v33, -inf  ;;  %2993 = vmax.xlane.f32.xlu2 %v2992_v29 }
 0x3cf   : > { %2962 = vmax.xlane.f32.xlu0 %v2961_v44 }
 0x3d0   : > { %2987 = vmax.xlane.f32.xlu1 %v2986_v52 }
 0x3d5   : > { %v6390_v49 = vpop.f32.mrf.mxu3  ;;  %v6396_v41 = vpop.f32.mrf.mxu1 }
 0x3d6   : > { %2959 = vmax.xlane.f32.xlu2 %v2958_v42  ;;  %v2977_v43 = vsel %vm2973_vm7, %v6396_v41, -inf  ;;  %v2970_v2 = vsel %vm2532_vm6, %v6390_v49, -inf }
 0x3d8   : > { %2965 = vmax.xlane.f32.xlu1 %v2964_v21 }
 0x3dd   : > { %v6398_v12 = vpop.f32.mrf.mxu3  ;;  %v6410_v3 = vpop.f32.mrf.mxu1 }
 0x3de   : > { %v2983_v30 = vsel %vm2973_vm7, %v6398_v12, -inf  ;;  %2978 = vmax.xlane.f32.xlu2 %v2977_v43  ;;  %v2989_v25 = vsel %vm2973_vm7, %v6410_v3, -inf }
 0x3df   : > { %2984 = vmax.xlane.f32.xlu0 %v2983_v30 }
 0x3e5   : > { %v6404_v1 = vpop.f32.mrf.mxu3 }
 0x3e6   : > { %v2995_v24 = vsel %vm2973_vm7, %v6404_v1, -inf }
 0x3e7   : > { %2971 = vmax.xlane.f32.xlu0 %v2970_v2  ;;  %2996 = vmax.xlane.f32.xlu2 %v2995_v24  ;;  %v2957_v15 = vpop.xlane.xlu0 %2956 }
 0x3ee   : > { %v2951_v17 = vpop.xlane.xlu1 %2950 }
 0x3ef   : > { %2990 = vmax.xlane.f32.xlu0 %v2989_v25 }
 0x422   : > { %v6414_v38 = vpop.xlane.xlu1 %2953 }
 0x432   : > { %v2976_v0 = vpop.xlane.xlu0 %2975 }
 0x433   : > { %v2998_v27 = vmax.f32 %v2951_v17, %v2976_v0 }
 0x434   : > { %v2982_v23 = vpop.xlane.xlu2 %2981 }
 0x435   : > { %v3048_v59 = vsub.f32 %v2785_v35, %v2998_v27  ;;  %v3000_v19 = vmax.f32 %v2957_v15, %v2982_v23  ;;  %v3010_v40 = vsub.f32 %v6335_v28, %v2998_v27 }
 0x437   : > { %v3056_v51 = vmul.f32 1.442695, %v3048_v59  ;;  %v3012_v13 = vsub.f32 %v6322_v32, %v3000_v19  ;;  %v3050_v5 = vsub.f32 %v2831_v54, %v3000_v19  ;;  %v3018_v26 = vmul.f32 1.442695, %v3010_v40  ;;  %v6422_v54 = vld [vmem:[%s4763_s25] ss:$0 sm:$0xff] }
 0x439   : > { %4178 = vpow2.f32 %v3056_v51  ;;  %v3022_v20 = vmul.f32 1.442695, %v3012_v13  ;;  %v3060_v18 = vmul.f32 1.442695, %v3050_v5 }
 0x43b   : > { %v2969_v7 = vpop.xlane.xlu1 %2968  ;;  %4180 = vpow2.f32 %v3022_v20 }
 0x43c   : > { %4182 = vpow2.f32 %v3060_v18 }
 0x43d   : > { %4184 = vpow2.f32 %v3018_v26 }
 0x43f   : > { %v4179_v61 = vpop.eup %4178 }
 0x440   : > { %v6419_v62 = vmul.f32 %v4179_v61, %v4160_v47 }
 0x441   : > { %v2994_v34 = vpop.xlane.xlu2 %2993  ;;  %v4181_v28 = vpop.eup %4180 }
 0x442   : > { %v3004_v35 = vmax.f32 %v2969_v7, %v2994_v34  ;;  %v2963_v22 = vpop.xlane.xlu0 %2962  ;;  %v4183_v52 = vpop.eup %4182  ;;  %4024 = vmatmul.msk.f32.vlgmr.msrb.gmra.mxu0 %vm2973_vm7, %v6419_v62  ;;  %v3042_v42 = vmul.f32 %v4181_v28, %v6422_v54 }
 0x443   : > { %v2988_v32 = vpop.xlane.xlu1 %2987  ;;  %v3080_v21 = vmul.f32 %v4183_v52, %v4160_v47  ;;  %3463 = vmatpush.msrb.mxu0 %v6244_v14 }
 0x444   : > { %v3016_v36 = vsub.f32 %v6374_v16, %v3004_v35  ;;  %v3054_v29 = vsub.f32 %v6380_v4, %v3004_v35  ;;  %v3002_v44 = vmax.f32 %v2963_v22, %v2988_v32  ;;  %v3092_v24 = vsel %vm2532_vm6, %v3042_v42, 0.0  ;;  %v4185_v4 = vpop.eup %4184 }
 0x445   : > { %4026 = vmatmul.msk.f32.vlgmr.msrb.gmra.mxu2 %vm2973_vm7, %v3080_v21  ;;  %3464 = vmatpush.msrb.mxu0 %v6280_v57  ;;  %v3116_v16 = vsel %vm2973_vm7, %v3080_v21, 0.0  ;;  %v3040_v14 = vmul.f32 %v4185_v4, %v6422_v54 }
 0x446   : > { %v3030_v43 = vmul.f32 1.442695, %v3016_v36  ;;  %v3068_v30 = vmul.f32 1.442695, %v3054_v29  ;;  %v3052_v2 = vsub.f32 %v6378_v9, %v3002_v44  ;;  %3509 = vmatpush.msrb.mxu2 %v6254_v11  ;;  %3117 = vadd.xlane.f32.xlu1 %v3116_v16  ;;  %v3014_v9 = vsub.f32 %v6382_v33, %v3002_v44 }
 0x447   : > { %3093 = vadd.xlane.f32.xlu0 %v3092_v24  ;;  %v3086_v59 = vsel %vm2532_vm6, %v3040_v14, 0.0 }
 0x448   : > { %4186 = vpow2.f32 %v3030_v43  ;;  %v3064_v25 = vmul.f32 1.442695, %v3052_v2  ;;  %3510 = vmatpush.msrb.mxu2 %v6266_v63  ;;  %v3026_v19 = vmul.f32 1.442695, %v3014_v9 }
 0x449   : > { %4188 = vpow2.f32 %v3068_v30  ;;  %v2960_v17 = vpop.xlane.xlu2 %2959 }
 0x44a   : > { %4190 = vpow2.f32 %v3064_v25 }
 0x44b   : > { %4192 = vpow2.f32 %v3026_v19  ;;  %v2966_v44 = vpop.xlane.xlu1 %2965 }
 0x44e   : > { %v4187_v15 = vpop.eup %4186  ;;  %3087 = vadd.xlane.f32.xlu1 %v3086_v59 }
 0x44f   : > { %v4189_v0 = vpop.eup %4188  ;;  %v3046_v57 = vmul.f32 %v4187_v15, %v6422_v54 }
 0x450   : > { %v3084_v27 = vmul.f32 %v4189_v0, %v4160_v47  ;;  %v4191_v23 = vpop.eup %4190 }
 0x451   : > { %v2979_v51 = vpop.xlane.xlu2 %2978  ;;  %v3104_v11 = vsel %vm2532_vm6, %v3046_v57, 0.0  ;;  %v3082_v13 = vmul.f32 %v4191_v23, %v4160_v47 }
 0x452   : > { %v2985_v5 = vpop.xlane.xlu0 %2984  ;;  %v2999_v63 = vmax.f32 %v6414_v38, %v2979_v51  ;;  %4030 = vmatmul.msk.f32.vlgmr.msra.gmra.mxu2 %vm2973_vm7, %v3084_v27  ;;  %v3128_v33 = vsel %vm2973_vm7, %v3084_v27, 0.0  ;;  %3105 = vadd.xlane.f32.xlu0 %v3104_v11 }
 0x453   : > { %v3001_v40 = vmax.f32 %v2960_v17, %v2985_v5  ;;  %3601 = vmatpush.msra.mxu2 %v6274_v10  ;;  %3129 = vadd.xlane.f32.xlu2 %v3128_v33  ;;  %v3122_v10 = vsel %vm2973_vm7, %v3082_v13, 0.0  ;;  %v3639_v33 = vld [vmem:[#allocation11 + $0x8] sm:$0xff] }
 0x454   : > { %v3049_v7 = vsub.f32 %v6396_v41, %v2999_v63  ;;  %4028 = vmatmul.msk.f32.vlgmr.msra.gmra.mxu0 %vm2973_vm7, %v3082_v13  ;;  %v3011_v18 = vsub.f32 %v6364_v60, %v2999_v63  ;;  %v3110_v60 = vsel %vm2973_vm7, %v6419_v62, 0.0 }
 0x455   : > { %v3051_v20 = vsub.f32 %v6398_v12, %v3001_v40  ;;  %3555 = vmatpush.msra.mxu0 %v6277_v45  ;;  %3602 = vmatpush.msra.mxu2 %v6290_v56  ;;  %v4193_v45 = vpop.eup %4192  ;;  %v4163_v12 = vld [vmem:[%s4765_s1 + $0x1] ss:$0 sm:$0xff]  ;;  %v3013_v22 = vsub.f32 %v6370_v50, %v3001_v40  ;;  %v3640_v40 = vld [vmem:[#allocation11 + $0x10] sm:$0xff] }
 0x456   : > { %v3058_v47 = vmul.f32 1.442695, %v3049_v7  ;;  %v3020_v26 = vmul.f32 1.442695, %v3011_v18  ;;  %3123 = vadd.xlane.f32.xlu1 %v3122_v10  ;;  %v3044_v35 = vmul.f32 %v4193_v45, %v6422_v54  ;;  %v4162_v54 = vld [vmem:[%s4763_s25 + $0x1] ss:$0 sm:$0xff] }
 0x457   : > { %v3062_v38 = vmul.f32 1.442695, %v3051_v20  ;;  %3556 = vmatpush.msra.mxu0 %v6293_v37  ;;  %v3024_v21 = vmul.f32 1.442695, %v3013_v22  ;;  %v3638_v7 = vld [vmem:[#allocation11] sm:$0xff]  ;;  %s4056_s25 = sshll.u32 %s4585_s17, 4 }
 0x458   : > { %s3790_s22 = scalar_lea.hbm %s6792_s19, %s4056_s25  ;;  %s3779_s17 = scalar_lea.sflag [#allocation4], %s4744_s11 }
 0x459   : > { %4194 = vpow2.f32 %v3062_v38  ;;  %s3793_s23 = sshll.u32 %s3790_s22, 4  ;;  %s3794_s23 = int_to_ptr.hbm [resolvable:$true] %s3793_s23 }
 0x45a   : > { %v2972_v41 = vpop.xlane.xlu0 %2971  ;;  %v2997_v34 = vpop.xlane.xlu2 %2996  ;;  %4034 = vmatmul.msk.f32.vlgmr.msrb.gmra.mxu2 %vm2532_vm6, %v3042_v42  ;;  %4196 = vpow2.f32 %v3058_v47  ;;  %s4420_s15 = sshra.s32 %s3794_s23, 4  ;;  %s4421_s15 = int_to_ptr.hbm [resolvable:$true] %s4420_s15 }
 0x45b   : > { %v3005_v56 = vmax.f32 %v2972_v41, %v2997_v34  ;;  %3111 = vadd.xlane.f32.xlu2 %v3110_v60  ;;  %4198 = vpow2.f32 %v3020_v26  ;;  %s4422_s20 = scalar_lea.hbm %s4421_s15, 16  ;;  %p4427_p1 = scmp.lt.s32.totalorder %s4421_s15, %s6792_s19 }
 0x45c   : > { %4032 = vmatmul.msk.f32.vlgmr.msrb.gmra.mxu0 %vm2532_vm6, %v3040_v14  ;;  %p4423_p4 = scmp.ne.s32.totalorder %s4421_s15, %s4422_s20  ;;  %p4428_p11 = scmp.lt.s32.totalorder %s4426_s10, %s4422_s20 }
 0x45d   : > { %v3017_v37 = vsub.f32 %v6390_v49, %v3005_v56  ;;  %v3055_v61 = vsub.f32 %v6404_v1, %v3005_v56  ;;  %v3098_v49 = vsel %vm2532_vm6, %v3044_v35, 0.0  ;;  %3666 = vmatpush.msrb.mxu0 %v3639_v33  ;;  %v3645_v56 = vld [vmem:[#allocation11 + $0x38] sm:$0xff] }
 0x45e   : > { %p4424_p3 = pnand %p4423_p4, %p4637_p5  ;;  %p4429_p10 = por %p4428_p11, %p4427_p1 }
 0x45f   : > { %v3032_v32 = vmul.f32 1.442695, %v3017_v37  ;;  %v3070_v28 = vmul.f32 1.442695, %v3055_v61  ;;  %v4195_v62 = vpop.eup %4194  ;;  %3667 = vmatpush.msrb.mxu0 %v3638_v7  ;;  %v3644_v37 = vld [vmem:[#allocation11 + $0x30] sm:$0xff] }
 0x460   : > { %v4197_v36 = vpop.eup %4196  ;;  %v3081_v29 = vmul.f32 %v4195_v62, %v4163_v12  ;;  %p4425_p7 = pneg %p4424_p3 }
 0x461   : > { %4200 = vpow2.f32 %v3032_v32  ;;  %v3079_v52 = vmul.f32 %v4197_v36, %v4163_v12  ;;  %v4199_v1 = vpop.eup %4198 }
 0x462   : > { %4202 = vpow2.f32 %v3070_v28  ;;  %v2991_v42 = vpop.xlane.xlu0 %2990  ;;  %4038 = vmatmul.msk.f32.vlgmr.msra.gmra.mxu2 %vm2532_vm6, %v3046_v57  ;;  %4027 = vmatmul.msk.f32.vlgmr.msra.gmra.mxu3 %vm2973_vm7, %v3081_v29  ;;  %v3041_v2 = vmul.f32 %v4199_v1, %v4162_v54  ;;  %v3119_v27 = vsel %vm2973_vm7, %v3081_v29, 0.0  ;;  %p4430_p2 = pnand %p4429_p10, %p4425_p7 }
 0x463   : > { %v3003_v50 = vmax.f32 %v2966_v44, %v2991_v42  ;;  %3099 = vadd.xlane.f32.xlu2 %v3098_v49  ;;  %3532 = vmatpush.msra.mxu3 %v6356_v53  ;;  %4204 = vpow2.f32 %v3024_v21 }
 0x464   : > { %4025 = vmatmul.msk.f32.vlgmr.msrb.gmra.mxu1 %vm2973_vm7, %v3079_v52  ;;  %4036 = vmatmul.msk.f32.vlgmr.msra.gmra.mxu0 %vm2532_vm6, %v3044_v35  ;;  %v3642_v35 = vld [vmem:[#allocation11 + $0x20] sm:$0xff] }
 0x465   : > { %v3015_v43 = vsub.f32 %v6368_v46, %v3003_v50  ;;  %v3053_v30 = vsub.f32 %v6410_v3, %v3003_v50  ;;  %3486 = vmatpush.msrb.mxu1 %v6352_v31  ;;  %3533 = vmatpush.msra.mxu3 %v6314_v58  ;;  %v3089_v46 = vsel %vm2532_vm6, %v3041_v2, 0.0 }
 0x467   : > { %v4201_v24 = vpop.eup %4200  ;;  %v3028_v16 = vmul.f32 1.442695, %v3015_v43  ;;  %v3066_v4 = vmul.f32 1.442695, %v3053_v30  ;;  %3487 = vmatpush.msrb.mxu1 %v6311_v55 }
 0x468   : > { %v4203_v53 = vpop.eup %4202  ;;  %v3047_v25 = vmul.f32 %v4201_v24, %v4162_v54 }
 0x469   : > { %v3085_v17 = vmul.f32 %v4203_v53, %v4163_v12  ;;  %4206 = vpow2.f32 %v3028_v16  ;;  %v4205_v58 = vpop.eup %4204 }
 0x46a   : > { %4208 = vpow2.f32 %v3066_v4  ;;  %v3107_v31 = vsel %vm2532_vm6, %v3047_v25, 0.0  ;;  %v3043_v14 = vmul.f32 %v4205_v58, %v4162_v54 }
 0x46b   : > { %4031 = vmatmul.msk.f32.vlgmr.msrb.gmra.mxu3 %vm2973_vm7, %v3085_v17  ;;  %3090 = vadd.xlane.f32.xlu2 %v3089_v46 }
 0x46c   : > { %3624 = vmatpush.msrb.mxu3 %v6362_v39  ;;  %3108 = vadd.xlane.f32.xlu1 %v3107_v31  ;;  %v3095_v39 = vsel %vm2532_vm6, %v3043_v14, 0.0 }
 0x46e   : > { %3625 = vmatpush.msrb.mxu3 %v6317_v8  ;;  %v3131_v8 = vsel %vm2973_vm7, %v3085_v17, 0.0 }
 0x46f   : > { %v4207_v3 = vpop.eup %4206 }
 0x470   : > { %v4209_v55 = vpop.eup %4208  ;;  %v3045_v9 = vmul.f32 %v4207_v3, %v4162_v54 }
 0x471   : > { %v3083_v15 = vmul.f32 %v4209_v55, %v4163_v12  ;;  %v3643_v12 = vld [vmem:[#allocation11 + $0x28] sm:$0xff] }
 0x472   : > { %v3101_v0 = vsel %vm2532_vm6, %v3045_v9, 0.0  ;;  %3724 = vmatpush.msrb.mxu2 %v3643_v12 }
 0x473   : > { %4029 = vmatmul.msk.f32.vlgmr.msra.gmra.mxu1 %vm2973_vm7, %v3083_v15  ;;  %3102 = vadd.xlane.f32.xlu0 %v3101_v0  ;;  %v3125_v57 = vsel %vm2973_vm7, %v3083_v15, 0.0 }
 0x474   : > { %3578 = vmatpush.msra.mxu1 %v6359_v48  ;;  %4035 = vmatmul.msk.f32.vlgmr.msra.gmra.mxu3 %vm2532_vm6, %v3043_v14  ;;  %v3113_v48 = vsel %vm2973_vm7, %v3079_v52, 0.0 }
 0x475   : > { %3096 = vadd.xlane.f32.xlu1 %v3095_v39  ;;  %3126 = vadd.xlane.f32.xlu2 %v3125_v57 }
 0x476   : > { %3579 = vmatpush.msra.mxu1 %v6320_v6  ;;  %v3641_v6 = vld [vmem:[#allocation11 + $0x18] sm:$0xff]  ;;  %3753 = vmatpush.msra.mxu3 %v3645_v56 }
 0x477   : > { %3725 = vmatpush.msrb.mxu2 %v3642_v35 }
 0x478   : > { %3754 = vmatpush.msra.mxu3 %v3644_v37 }
 0x47b   : > { %4033 = vmatmul.msk.f32.vlgmr.msrb.gmra.mxu1 %vm2532_vm6, %v3041_v2  ;;  %3132 = vadd.xlane.f32.xlu0 %v3131_v8 }
 0x47c   : > { %4039 = vmatmul.msk.f32.vlgmr.msrb.gmra.mxu3 %vm2532_vm6, %v3047_v25  ;;  %3695 = vmatpush.msrb.mxu1 %v3641_v6 }
 0x47d   : > { %3120 = vadd.xlane.f32.xlu2 %v3119_v27 }
 0x47e   : > { %3696 = vmatpush.msrb.mxu1 %v3640_v40 }
 0x483   : > { %4037 = vmatmul.msk.f32.vlgmr.msra.gmra.mxu1 %vm2532_vm6, %v3045_v9  ;;  %3114 = vadd.xlane.f32.xlu0 %v3113_v48 }
 0x4b9   : > { %v3118_v59 = vpop.xlane.xlu1 %3117 }
 0x4ba   : > { %v3094_v23 = vpop.xlane.xlu0 %3093 }
 0x4bb   : > { %v3136_v19 = vadd.f32 %v3118_v59, %v3094_v23 }
 0x4bd   : > { %4210 = vrcp.f32 %v3136_v19  ;;  %v3183_v52 = vand.u32 2147483648, %v3136_v19  ;;  %vm3177_vm9 = vweird.f32 %v3136_v19  ;;  %v3181_v42 = vand.u32 2147483647, %v3136_v19 }
 0x4bf   : > { %v6495_v63 = vpop.f32.mrf.mxu0  ;;  %v3184_v2 = vor.u32 1.1754944e-38, %v3183_v52  ;;  %vm3182_vm12 = vcmp.eq.f32.partialorder %v3181_v42, 8.507059e+37 }
 0x4c1   : > { %v3088_v38 = vpop.xlane.xlu1 %3087 }
 0x4c3   : > { %v4211_v5 = vpop.eup %4210 }
 0x4c4   : > { %v3173_v20 = vmul.f32 %v4211_v5, %v3136_v19  ;;  %vm3178_vm8 = vweird.f32 %v4211_v5 }
 0x4c5   : > { %v3106_v51 = vpop.xlane.xlu0 %3105  ;;  %vm3179_vm10 = vmor %vm3177_vm9, %vm3178_vm8 }
 0x4c6   : > { %v3130_v11 = vpop.xlane.xlu2 %3129  ;;  %v3174_v10 = vsub.f32 1.0, %v3173_v20 }
 0x4c7   : > { %v6493_v13 = vadd.f32 %v3130_v11, %v3106_v51 }
 0x4c8   : > { %v3328_v18 = vpop.f32.mrf.mxu2  ;;  %v3175_v45 = vmul.f32 %v4211_v5, %v3174_v10 }
 0x4c9   : > { %4212 = vrcp.f32 %v6493_v13  ;;  %v3124_v22 = vpop.xlane.xlu1 %3123  ;;  %v3243_v15 = vand.u32 2147483648, %v6493_v13  ;;  %vm3237_vm2 = vweird.f32 %v6493_v13  ;;  %v3241_v57 = vand.u32 2147483647, %v6493_v13 }
 0x4ca   : > { %v3176_v29 = vadd.f32 %v4211_v5, %v3175_v45 }
 0x4cb   : > { %v3244_v51 = vor.u32 1.1754944e-38, %v3243_v15  ;;  %vm3242_vm7 = vcmp.eq.f32.partialorder %v3241_v57, 8.507059e+37 }
 0x4cc   : > { %v3180_v54 = vsel %vm3179_vm10, %v4211_v5, %v3176_v29 }
 0x4cd   : > { %v3185_v4 = vsel %vm3182_vm12, %v3184_v2, %v3180_v54 }
 0x4ce   : > { %v3112_v47 = vpop.xlane.xlu2 %3111 }
 0x4cf   : > { %v3134_v26 = vadd.f32 %v3112_v47, %v3088_v38  ;;  %v6498_v41 = vpop.eup %4212 }
 0x4d0   : > { %v3233_v60 = vmul.f32 %v6498_v41, %v6493_v13  ;;  %vm3238_vm1 = vweird.f32 %v6498_v41 }
 0x4d1   : > { %4214 = vrcp.f32 %v3134_v26  ;;  %v6500_v34 = vpop.f32.mrf.mxu0  ;;  %v3151_v1 = vand.u32 2147483647, %v3134_v26  ;;  %v3153_v21 = vand.u32 2147483648, %v3134_v26  ;;  %vm3147_vm13 = vweird.f32 %v3134_v26  ;;  %vm6521_vm3 = vmor %vm3237_vm2, %vm3238_vm1 }
 0x4d2   : > { %v3234_v62 = vsub.f32 1.0, %v3233_v60 }
 0x4d3   : > { %vm3152_vm15 = vcmp.eq.f32.partialorder %v3151_v1, 8.507059e+37  ;;  %v3154_v46 = vor.u32 1.1754944e-38, %v3153_v21 }
 0x4d4   : > { %v3235_v43 = vmul.f32 %v6498_v41, %v3234_v62 }
 0x4d5   : > { %v6504_v61 = vpop.f32.mrf.mxu2 }
 0x4d6   : > { %v3100_v32 = vpop.xlane.xlu2 %3099  ;;  %v3236_v31 = vadd.f32 %v6498_v41, %v3235_v43 }
 0x4d7   : > { %v4215_v28 = vpop.eup %4214  ;;  %v6506_v36 = vadd.f32 %v3124_v22, %v3100_v32 }
 0x4d8   : > { %v3143_v44 = vmul.f32 %v4215_v28, %v3134_v26  ;;  %vm3148_vm11 = vweird.f32 %v4215_v28  ;;  %v3240_v19 = vsel %vm6521_vm3, %v6498_v41, %v3236_v31 }
 0x4d9   : > { %4216 = vrcp.f32 %v6506_v36  ;;  %v3466_v50 = vpop.f32.mrf.mxu0  ;;  %vm3149_vm14 = vmor %vm3147_vm13, %vm3148_vm11  ;;  %v3213_v8 = vand.u32 2147483648, %v6506_v36  ;;  %v3211_v23 = vand.u32 2147483647, %v6506_v36  ;;  %vm3207_vm5 = vweird.f32 %v6506_v36 }
 0x4da   : > { %v3144_v49 = vsub.f32 1.0, %v3143_v44  ;;  %v3467_v55 = vadd.f32 %v3466_v50, %v6495_v63  ;;  %v3245_v7 = vsel %vm3242_vm7, %v3244_v51, %v3240_v19 }
 0x4db   : > { %v3214_v40 = vor.u32 1.1754944e-38, %v3213_v8  ;;  %vm3212_vm9 = vcmp.eq.f32.partialorder %v3211_v23, 8.507059e+37 }
 0x4dc   : > { %v3145_v30 = vmul.f32 %v4215_v28, %v3144_v49 }
 0x4dd   : > { %v3512_v24 = vpop.f32.mrf.mxu2 }
 0x4de   : > { %v3146_v16 = vadd.f32 %v4215_v28, %v3145_v30  ;;  %v3513_v53 = vadd.f32 %v3512_v24, %v3328_v18  ;;  %v6510_v25 = vpop.xlane.xlu2 %3090 }
 0x4df   : > { %v4217_v17 = vpop.eup %4216  ;;  %v3109_v48 = vpop.xlane.xlu1 %3108 }
 0x4e0   : > { %v3203_v58 = vmul.f32 %v4217_v17, %v6506_v36  ;;  %v3150_v3 = vsel %vm3149_vm14, %v4215_v28, %v3146_v16  ;;  %v3632_v14 = vmul.f32 %v3513_v53, %v3185_v4  ;;  %vm3208_vm4 = vweird.f32 %v4217_v17 }
 0x4e1   : > { %v3155_v9 = vsel %vm3152_vm15, %v3154_v46, %v3150_v3  ;;  %v3558_v6 = vpop.f32.mrf.mxu0  ;;  %vm3209_vm8 = vmor %vm3207_vm5, %vm3208_vm4  ;;  %v6534_v20 = vpop.f32.mrf.mxu1 }
 0x4e2   : > { %v3204_v0 = vsub.f32 1.0, %v3203_v58  ;;  %v3630_v39 = vmul.f32 %v3467_v55, %v3155_v9  ;;  %4042 = vmatmul.msk.f32.vlgmr.msrb.gmra.mxu1 %vm2532_vm6, %v3632_v14  ;;  %v3559_v38 = vadd.f32 %v3558_v6, %v6500_v34 }
 0x4e4   : > { %v3205_v59 = vmul.f32 %v4217_v17, %v3204_v0  ;;  %4040 = vmatmul.msk.f32.vlgmr.msrb.gmra.mxu0 %vm2532_vm6, %v3630_v39 }
 0x4e5   : > { %v3604_v11 = vpop.f32.mrf.mxu2  ;;  %v6531_v5 = vpop.f32.mrf.mxu3 }
 0x4e6   : > { %v3206_v13 = vadd.f32 %v4217_v17, %v3205_v59  ;;  %v3103_v63 = vpop.xlane.xlu0 %3102  ;;  %v3605_v33 = vadd.f32 %v3604_v11, %v6504_v61 }
 0x4e8   : > { %v3210_v18 = vsel %vm3209_vm8, %v4217_v17, %v3206_v13  ;;  %v3636_v47 = vmul.f32 %v3605_v33, %v3245_v7  ;;  %v3127_v10 = vpop.xlane.xlu2 %3126  ;;  %v3097_v12 = vpop.xlane.xlu1 %3096 }
 0x4e9   : > { %v3215_v26 = vsel %vm3212_vm9, %v3214_v40, %v3210_v18  ;;  %v3139_v41 = vadd.f32 %v3127_v10, %v3103_v63 }
 0x4ea   : > { %v3634_v60 = vmul.f32 %v3559_v38, %v3215_v26  ;;  %4046 = vmatmul.msk.f32.vlgmr.msra.gmra.mxu3 %vm2532_vm6, %v3636_v47 }
 0x4eb   : > { %4218 = vrcp.f32 %v3139_v41  ;;  %v3226_v21 = vand.u32 2147483647, %v3139_v41  ;;  %v3228_v50 = vand.u32 2147483648, %v3139_v41  ;;  %vm3222_vm12 = vweird.f32 %v3139_v41 }
 0x4ec   : > { %4044 = vmatmul.msk.f32.vlgmr.msrb.gmra.mxu2 %vm2532_vm6, %v3634_v60 }
 0x4ed   : > { %vm6543_vm13 = vcmp.eq.f32.partialorder %v3226_v21, 8.507059e+37  ;;  %v3229_v46 = vor.u32 1.1754944e-38, %v3228_v50 }
 0x4ee   : > { %v3133_v45 = vpop.xlane.xlu0 %3132  ;;  %v3443_v56 = vpop.f32.mrf.mxu3 }
 0x4ef   : > { %v3141_v37 = vadd.f32 %v3133_v45, %v3109_v48 }
 0x4f0   : > { %v3397_v61 = vpop.f32.mrf.mxu1  ;;  %v3121_v35 = vpop.xlane.xlu2 %3120 }
 0x4f1   : > { %v4219_v22 = vpop.eup %4218  ;;  %4220 = vrcp.f32 %v3141_v37  ;;  %v3137_v32 = vadd.f32 %v3121_v35, %v3097_v12  ;;  %v3256_v2 = vand.u32 2147483647, %v3141_v37  ;;  %v3258_v24 = vand.u32 2147483648, %v3141_v37 }
 0x4f2   : > { %v3218_v34 = vmul.f32 %v4219_v22, %v3139_v41  ;;  %vm3223_vm10 = vweird.f32 %v4219_v22  ;;  %vm3252_vm1 = vweird.f32 %v3141_v37 }
 0x4f3   : > { %4222 = vrcp.f32 %v3137_v32  ;;  %v3196_v4 = vand.u32 2147483647, %v3137_v32  ;;  %vm6547_vm15 = vmor %vm3222_vm12, %vm3223_vm10  ;;  %vm3192_vm2 = vweird.f32 %v3137_v32  ;;  %vm3257_vm4 = vcmp.eq.f32.partialorder %v3256_v2, 8.507059e+37 }
 0x4f4   : > { %v3219_v28 = vsub.f32 1.0, %v3218_v34  ;;  %v3259_v9 = vor.u32 1.1754944e-38, %v3258_v24 }
 0x4f5   : > { %vm3197_vm5 = vcmp.eq.f32.partialorder %v3196_v4, 8.507059e+37 }
 0x4f6   : > { %v3115_v62 = vpop.xlane.xlu0 %3114  ;;  %v3220_v52 = vmul.f32 %v4219_v22, %v3219_v28 }
 0x4f7   : > { %v4221_v36 = vpop.eup %4220  ;;  %v6540_v29 = vadd.f32 %v3115_v62, %v6510_v25  ;;  %v3535_v44 = vpop.f32.mrf.mxu3  ;;  %v3198_v25 = vand.u32 2147483648, %v3137_v32 }
 0x4f8   : > { %v3248_v42 = vmul.f32 %v4221_v36, %v3141_v37  ;;  %v3489_v49 = vpop.f32.mrf.mxu1  ;;  %v3221_v30 = vadd.f32 %v4219_v22, %v3220_v52  ;;  %vm3253_vm11 = vweird.f32 %v4221_v36  ;;  %v3536_v51 = vadd.f32 %v3535_v44, %v6531_v5 }
 0x4f9   : > { %v4223_v1 = vpop.eup %4222  ;;  %4224 = vrcp.f32 %v6540_v29  ;;  %vm3254_vm3 = vmor %vm3252_vm1, %vm3253_vm11  ;;  %v3199_v27 = vor.u32 1.1754944e-38, %v3198_v25  ;;  %v3168_v13 = vand.u32 2147483648, %v6540_v29  ;;  %v3166_v18 = vand.u32 2147483647, %v6540_v29 }
 0x4fa   : > { %v3249_v54 = vsub.f32 1.0, %v3248_v42  ;;  %v3188_v43 = vmul.f32 %v4223_v1, %v3137_v32  ;;  %vm3193_vm14 = vweird.f32 %v4223_v1  ;;  %v3225_v14 = vsel %vm6547_vm15, %v4219_v22, %v3221_v30 }
 0x4fb   : > { %vm3194_vm7 = vmor %vm3192_vm2, %vm3193_vm14  ;;  %v3230_v11 = vsel %vm6543_vm13, %v3229_v46, %v3225_v14  ;;  %vm3162_vm9 = vweird.f32 %v6540_v29  ;;  %v3169_v5 = vor.u32 1.1754944e-38, %v3168_v13  ;;  %vm3167_vm11 = vcmp.eq.f32.partialorder %v3166_v18, 8.507059e+37 }
 0x4fc   : > { %v3189_v16 = vsub.f32 1.0, %v3188_v43  ;;  %v3250_v53 = vmul.f32 %v4221_v36, %v3249_v54  ;;  %v3490_v26 = vadd.f32 %v3489_v49, %v6534_v20 }
 0x4fe   : > { %v3190_v31 = vmul.f32 %v4223_v1, %v3189_v16  ;;  %v3251_v3 = vadd.f32 %v4221_v36, %v3250_v53 }
 0x4ff   : > { %v4225_v55 = vpop.eup %4224  ;;  %v3627_v15 = vpop.f32.mrf.mxu3 }
 0x500   : > { %v3158_v0 = vmul.f32 %v4225_v55, %v6540_v29  ;;  %v3191_v39 = vadd.f32 %v4223_v1, %v3190_v31  ;;  %v3581_v57 = vpop.f32.mrf.mxu1  ;;  %v3255_v8 = vsel %vm3254_vm3, %v4221_v36, %v3251_v3  ;;  %v3628_v23 = vadd.f32 %v3627_v15, %v3443_v56 }
 0x501   : > { %v3582_v48 = vadd.f32 %v3581_v57, %v3397_v61  ;;  %v3260_v59 = vsel %vm3257_vm4, %v3259_v9, %v3255_v8  ;;  %vm3163_vm8 = vweird.f32 %v4225_v55 }
 0x502   : > { %v3159_v19 = vsub.f32 1.0, %v3158_v0  ;;  %v3195_v6 = vsel %vm3194_vm7, %v4223_v1, %v3191_v39  ;;  %v3637_v40 = vmul.f32 %v3628_v23, %v3260_v59  ;;  %vm3164_vm10 = vmor %vm3162_vm9, %vm3163_vm8 }
 0x503   : > { %v3200_v63 = vsel %vm3197_vm5, %v3199_v27, %v3195_v6  ;;  %v3635_v33 = vmul.f32 %v3582_v48, %v3230_v11 }
 0x504   : > { %v3160_v7 = vmul.f32 %v4225_v55, %v3159_v19  ;;  %v3633_v38 = vmul.f32 %v3536_v51, %v3200_v63  ;;  %4047 = vmatmul.msk.f32.gmra.mxu3 %vm2532_vm6, %v3637_v40 }
 0x505   : > { %4045 = vmatmul.msk.f32.gmra.mxu2 %vm2532_vm6, %v3635_v33 }
 0x506   : > { %v3161_v47 = vadd.f32 %v4225_v55, %v3160_v7  ;;  %4043 = vmatmul.msk.f32.gmra.mxu1 %vm2532_vm6, %v3633_v38 }
 0x508   : > { %v3165_v10 = vsel %vm3164_vm10, %v4225_v55, %v3161_v47 }
 0x509   : > { %v3170_v41 = vsel %vm3167_vm11, %v3169_v5, %v3165_v10 }
 0x50a   : > { %v3631_v60 = vmul.f32 %v3490_v26, %v3170_v41 }
 0x50c   : > { %4041 = vmatmul.msk.f32.gmra.mxu0 %vm2532_vm6, %v3631_v60 }
 0x55f   : > { %v3698_v56 = vpop.f32.mrf.mxu1 }
 0x560   : > { %v3763_v37 = vsel %vm546_vm0, %v3698_v56, 0.0 }
 0x561   : > { %v3669_v45 = vpop.f32.mrf.mxu0 }
 0x562   : > { %v3762_v12 = vsel %vm546_vm0, %v3669_v45, 0.0 }
 0x563   : > { %v3764_v61 = vadd.f32 %v3763_v37, %v3762_v12 }
 0x56d   : > { %v3756_v35 = vpop.f32.mrf.mxu3 }
 0x56e   : > { %v3767_v28 = vsel %vm546_vm0, %v3756_v35, 0.0 }
 0x56f   : > { %v3727_v22 = vpop.f32.mrf.mxu2 }
 0x570   : > { %v3765_v32 = vsel %vm546_vm0, %v3727_v22, 0.0 }
 0x571   : > { %v3766_v34 = vadd.f32 %v3765_v32, %v3764_v61 }
 0x573   : > { %v3768_v20 = vadd.f32 %v3767_v28, %v3766_v34 }
 0x575   : > { %3776 = vst.msk [vmem:[%s534_s9] sm:$0xff] %vm546_vm0, %v3768_v20 }
 0x583   : > { %v3701_v62 = vpop.f32.mrf.mxu1 }
 0x584   : > { %v3770_v44 = vsel %vm546_vm0, %v3701_v62, 0.0 }
 0x587   : > { %v3759_v42 = vpop.f32.mrf.mxu3 }
 0x588   : > { %v3730_v36 = vpop.f32.mrf.mxu2  ;;  %v3774_v50 = vsel %vm546_vm0, %v3759_v42, 0.0 }
 0x589   : > { %v3672_v29 = vpop.f32.mrf.mxu0  ;;  %v3772_v1 = vsel %vm546_vm0, %v3730_v36, 0.0 }
 0x58a   : > { %v3769_v52 = vsel %vm546_vm0, %v3672_v29, 0.0 }
 0x58b   : > { %v3771_v49 = vadd.f32 %v3770_v44, %v3769_v52 }
 0x58d   : > { %v3773_v21 = vadd.f32 %v3772_v1, %v3771_v49 }
 0x58f   : > { %v3775_v54 = vadd.f32 %v3774_v50, %v3773_v21 }
 0x591   : > { %3777 = vst.msk [vmem:[%s534_s9 + $0x8] sm:$0xff] %vm546_vm0, %v3775_v54 }
 0x592   : > { %4433 = shalt.err (!%p4430_p2)
}
 0x593   : > { %s4507_s11 = smov 128   ;;  %s4508_s27 = smov 8  }
 0x594   : > { %4073 = dma.vmem_to_hbm [thread:$0]  (%p4637_p5), %s3792_s18, 256, %s3794_s23, %s3779_s17, %s4507_s11, %s4507_s11, %s4508_s27  }
 0x595 PF: > { %s6794_s24 = sld [smem:[#allocation20_spill]]  ;;  %p6796_p13 = scmp.ge.s32.totalorder %s4488_s16, 2 }
 0x597   : > { %p4096_p8 = pnand %p6796_p13, %p4599_p6 }
 0x599   : > { %p4097_p9 = pneg %p4096_p8 }
 0x59b   : > { %s3808_s21 = sand.u32 1, %s6794_s24  }
 0x59c   : > { %s3809_s9 = scalar_lea.sflag [#allocation4], %s3808_s21 }
 0x59d   : > { %4471 = dma.done.wait (%p4097_p9), %s3809_s9, 256  }
 0x59e   : > { %4473 = vsyncadd (%p4097_p9), %s3809_s9, 4294967040  ;;  %s6797_s16 = sld [smem:[#allocation23_spill]]  ;;  %s6800_s13 = smov %s4480_s14 }
 0x59f   : > { %s6798_s25 = sld [smem:[#allocation21_spill]] }
 0x5a0   : > { %s6799_s15 = sld [smem:[#allocation24_spill]] }
 0x5a4   : > { %p30_p12 = scmp.ge.s32.totalorder %s6797_s16, 4  }
 0x5a5   : > { %s6801_s14 = smov %s6798_s25 }
 0x5a6   :  { %32 = sbr.rel (!%p30_p12) target bundleno = 15 (0xf), region = 150 }
 0x5ab   :  { %3815 = vsyncpa [#allocation3], 1 }
 0x5ac   :  { %3817 = vsyncpa [#allocation3 + $0x1], 1 }
 0x5ad   :  { %3818 = vsyncpa [#allocation6], 1 }
 0x5ae   :  { %3820 = vsyncpa [#allocation6 + $0x1], 1 }
 0x5af   :  { %3821 = vsyncpa [#allocation9], 1 }
 0x5b0   :  { %3823 = vsyncpa [#allocation9 + $0x1], 1 }
 0x5b1   :  { %3824 = vsyncpa [#allocation12], 1 }
 0x5b2   :  { %3825 = vsyncpa [#allocation4], 1 }
 0x5b3   :  { %3827 = vsyncpa [#allocation4 + $0x1], 1 }

</bundles_post_ra>
